<compile_context>
chip_gen: v7x
topology: tpu7x:2x2x1
jax: 0.10.0
libtpu: 0.0.40
codegen_flags: <defaults>
</compile_context>

<pallas_src>
import numpy as np
import jax
import jax.numpy as jnp
from jax import lax
from jax.experimental import pallas as pl
from jax.experimental.pallas import tpu as pltpu

# ----------------------------- configuration -----------------------------
B = 2                # batch size
L = 8                # sequence length (== batch_max_seq_len)
VOCAB = 50
D = 32               # "BERT" hidden size
SPAN_MAX_LEN = 4     # args.span_maximum_length
SPAN_WIDTH_DIM = 8   # args.span_width_dim
DIST_DIM = 8         # args.triplet_distance_dim
FNN_HIDDEN = 32      # args.fnn_hidden_dim
CLASS_NUM = 3        # spans2id = {'O':0, 'aspect':1, 'opinion':2}
SENT_CLASS = 4       # args.sentiment_class
PRUNE_THRESH = 0.3   # args.span_pruned_threshold
ASPECT_ID, OPINION_ID = 1, 2
BUCKET_BINS = [0, 1, 2, 3, 4, 5, 7, 8, 15, 16, 31, 32, 63, 64]

SPAN_DIM = 2 * D + SPAN_WIDTH_DIM            # 72
PAIRS_DIM = 2 * SPAN_DIM + DIST_DIM          # 152

LANE = 128
SUBLANE = 8
NEG_BIG = -1e30      # bias for padded logit columns -> exp() underflows to 0

_VMEM = pl.BlockSpec(memory_space=pltpu.MemorySpace.VMEM)
_SMEM = pl.BlockSpec(memory_space=pltpu.MemorySpace.SMEM)


def _round_up(x, m):
    return (x + m - 1) // m * m


def _bucket_id(width):
    # [ix for ix, v in enumerate(bucket_bins) if width >= v][-1]
    return max(ix for ix, v in enumerate(BUCKET_BINS) if width >= v)


def build_span_indices(batch_max_seq_len, span_maximum_length):
    """Static span enumeration, as in SpanRepresentation (use_dep_span=False)."""
    span_indices = []
    max_window = min(batch_max_seq_len, span_maximum_length)
    for window in range(1, max_window + 1):
        for s in range(0, batch_max_seq_len - window + 1):
            span_indices.append((s, s + window))
    return span_indices


# ------------------------------ Pallas kernels ----------------------------
def _span_kernel(emb_ref, enc_w_ref, enc_b_ref,
                 sel_s_ref, sel_e_ref, shift_ref, wrep_ref,
                 w1_ref, b1_ref, w2_ref, b2_ref, w3_ref, b3_ref,
                 prob_ref, srep_ref):
    """Fused: encoder projection -> span representation -> span_fnn -> softmax.

    All operands are whole-array VMEM blocks.  Span endpoint gathers use
    constant one-hot matrices (exact, MXU); the [start | end | width] concat is
    realised as  xs + xe @ shift + wrep  (shift copies cols 0..D-1 -> D..2D-1).
    """
    x = jnp.tanh(jnp.dot(emb_ref[...], enc_w_ref[...],
                         preferred_element_type=jnp.float32) + enc_b_ref[...])
    xs = jnp.dot(sel_s_ref[...], x, preferred_element_type=jnp.float32)
    xe = jnp.dot(sel_e_ref[...], x, preferred_element_type=jnp.float32)
    srep = xs + jnp.dot(xe, shift_ref[...],
                        preferred_element_type=jnp.float32) + wrep_ref[...]
    srep_ref[...] = srep

    h = jnp.maximum(jnp.dot(srep, w1_ref[...],
                            preferred_element_type=jnp.float32) + b1_ref[...], 0.0)
    h = jnp.maximum(jnp.dot(h, w2_ref[...],
                            preferred_element_type=jnp.float32) + b2_ref[...], 0.0)
    logits = jnp.dot(h, w3_ref[...],
                     preferred_element_type=jnp.float32) + b3_ref[...]
    m = jnp.max(logits, axis=-1, keepdims=True)
    e = jnp.exp(logits - m)
    prob_ref[...] = e / jnp.sum(e, axis=-1, keepdims=True)   # exact divide


def _make_pairs_kernel(batch_size, nz, n_spans):
    """Fused PairRepresentation + pairs_fnn + softmax.

    Top-k indices and span start/end tables are SMEM scalars; the span
    representation (output of the span kernel) stays in VMEM and pair rows are
    gathered with dynamic sublane slices.  The 152-wide concat is folded into
    three split-w1 matmuls (target block, opinion block, distance block).
    """
    def kernel(tidx_ref, oidx_ref, starts_ref, ends_ref,        # SMEM int32
               srep_ref, dtab_ref,
               w1t_ref, w1o_ref, w1d_ref, b1_ref,
               w2_ref, b2_ref, w3_ref, b3_ref,
               o_ref, t_scr, o_scr, d_scr):
        # zero scratch so any padded rows stay finite
        t_scr[...] = jnp.zeros_like(t_scr)
        o_scr[...] = jnp.zeros_like(o_scr)
        d_scr[...] = jnp.zeros_like(d_scr)

        r = 0
        for b in range(batch_size):            # itertools.product order
            for i in range(nz):
                for j in range(nz):
                    t = tidx_ref[b, i]
                    o = oidx_ref[b, j]
                    a = starts_ref[t]
                    bb = ends_ref[t]
                    c = starts_ref[o]
                    d = ends_ref[o]
                    dist = jnp.minimum(jnp.abs(bb - c), jnp.abs(a - d))
                    dbk = jnp.array(-1, jnp.int32)
                    for v in BUCKET_BINS:      # bucket = #(bins <= dist) - 1
                        dbk = dbk + (dist >= v).astype(jnp.int32)
                    t_scr[pl.ds(r, 1), :] = srep_ref[pl.ds(b * n_spans + t, 1), :]
                    o_scr[pl.ds(r, 1), :] = srep_ref[pl.ds(b * n_spans + o, 1), :]
                    d_scr[pl.ds(r, 1), :] = dtab_ref[pl.ds(dbk, 1), :]
                    r += 1

        h = (jnp.dot(t_scr[...], w1t_ref[...], preferred_element_type=jnp.float32)
             + jnp.dot(o_scr[...], w1o_ref[...], preferred_element_type=jnp.float32)
             + jnp.dot(d_scr[...], w1d_ref[...], preferred_element_type=jnp.float32)
             + b1_ref[...])
        h = jnp.maximum(h, 0.0)
        h = jnp.maximum(jnp.dot(h, w2_ref[...],
                                preferred_element_type=jnp.float32) + b2_ref[...], 0.0)
        logits = jnp.dot(h, w3_ref[...],
                         preferred_element_type=jnp.float32) + b3_ref[...]
        m = jnp.max(logits, axis=-1, keepdims=True)
        e = jnp.exp(logits - m)
        o_ref[...] = e / jnp.sum(e, axis=-1, keepdims=True)    # exact divide
    return kernel


# ------------------------------ parameters --------------------------------
def init_params(key):
    ks = jax.random.split(key, 16)

    def xavier(k, shape):
        std = (2.0 / (shape[0] + shape[1])) ** 0.5
        return (jax.random.normal(k, shape) * std).astype(jnp.float32)

    p = {}
    p["tok_emb"] = (jax.random.normal(ks[0], (VOCAB, D)) * 0.02).astype(jnp.float32)
    p["pos_emb"] = (jax.random.normal(ks[1], (L, D)) * 0.02).astype(jnp.float32)
    p["enc_w"] = xavier(ks[2], (D, D))
    p["enc_b"] = jnp.zeros((1, D), jnp.float32)
    p["span_width_emb"] = (
        jax.random.normal(ks[3], (len(BUCKET_BINS), SPAN_WIDTH_DIM)) * 0.1
    ).astype(jnp.float32)
    p["dist_emb"] = (
        jax.random.normal(ks[4], (len(BUCKET_BINS), DIST_DIM)) * 0.1
    ).astype(jnp.float32)
    # span_fnn
    p["s_w1"] = xavier(ks[5], (SPAN_DIM, FNN_HIDDEN))
    p["s_b1"] = jnp.full((1, FNN_HIDDEN), 0.01, jnp.float32)
    p["s_w2"] = xavier(ks[6], (FNN_HIDDEN, FNN_HIDDEN))
    p["s_b2"] = jnp.full((1, FNN_HIDDEN), 0.01, jnp.float32)
    p["s_w3"] = xavier(ks[7], (FNN_HIDDEN, CLASS_NUM))
    p["s_b3"] = jnp.zeros((1, CLASS_NUM), jnp.float32)
    # pairs_fnn
    p["p_w1"] = xavier(ks[8], (PAIRS_DIM, FNN_HIDDEN))
    p["p_b1"] = jnp.full((1, FNN_HIDDEN), 0.01, jnp.float32)
    p["p_w2"] = xavier(ks[9], (FNN_HIDDEN, FNN_HIDDEN))
    p["p_b2"] = jnp.full((1, FNN_HIDDEN), 0.01, jnp.float32)
    p["p_w3"] = xavier(ks[10], (FNN_HIDDEN, SENT_CLASS))
    p["p_b3"] = jnp.zeros((1, SENT_CLASS), jnp.float32)
    return p


def _pad2(a, rows, cols, fill=0.0):
    a = np.asarray(a, np.float32)
    out = np.full((rows, cols), fill, np.float32)
    out[: a.shape[0], : a.shape[1]] = a
    return jnp.asarray(out)


def prepare(params, batch_size, seq_len, batch_max_seq_len):
    """One-time preparation: static span enumeration, constant selection /
    shift matrices, and lane-dense padded weights.  No per-call padding."""
    span_indices = build_span_indices(batch_max_seq_len, SPAN_MAX_LEN)
    n_spans = len(span_indices)
    ns = batch_size * n_spans
    ns_pad = _round_up(ns, SUBLANE)
    bl = batch_size * seq_len
    nz = max(int(batch_max_seq_len * PRUNE_THRESH), 1)   # guard nz >= 1
    n_pairs = batch_size * nz * nz
    n_pairs_pad = _round_up(n_pairs, SUBLANE)

    starts = np.array([s for s, _ in span_indices], np.int32)
    ends = np.array([e for _, e in span_indices], np.int32)
    wbuck = np.array([_bucket_id(abs(e - s)) for s, e in span_indices], np.int32)

    # one-hot endpoint selection matrices (static constants)
    sel_s = np.zeros((ns_pad, bl), np.float32)
    sel_e = np.zeros((ns_pad, bl), np.float32)
    for b in range(batch_size):
        for k in range(n_spans):
            r = b * n_spans + k
            sel_s[r, b * seq_len + int(starts[k])] = 1.0
            sel_e[r, b * seq_len + int(ends[k]) - 1] = 1.0

    # lane-shift matrix: cols [0, D) -> [D, 2D)
    shift = np.zeros((LANE, LANE), np.float32)
    for c in range(D):
        shift[c, D + c] = 1.0

    # width-embedding block of the span representation (cols 2D .. 2D+Wd)
    wtab = np.asarray(params["span_width_emb"], np.float32)
    wrep = np.zeros((ns_pad, LANE), np.float32)
    for b in range(batch_size):
        for k in range(n_spans):
            wrep[b * n_spans + k, 2 * D: 2 * D + SPAN_WIDTH_DIM] = wtab[wbuck[k]]

    p_w1 = np.asarray(params["p_w1"], np.float32)

    arrs = {
        # embedding tables padded to 128 lanes (no per-call pad of activations)
        "tok_emb_p": _pad2(params["tok_emb"], VOCAB, LANE),
        "pos_emb_p": _pad2(params["pos_emb"], seq_len, LANE),
        # encoder projection
        "enc_w_p": _pad2(params["enc_w"], LANE, LANE),
        "enc_b_p": _pad2(params["enc_b"], 1, LANE),
        # span construction constants
        "sel_s": jnp.asarray(sel_s),
        "sel_e": jnp.asarray(sel_e),
        "shift": jnp.asarray(shift),
        "wrep": jnp.asarray(wrep),
        # span_fnn (pre-padded once)
        "s_w1_p": _pad2(params["s_w1"], LANE, LANE),
        "s_b1_p": _pad2(params["s_b1"], 1, LANE),
        "s_w2_p": _pad2(params["s_w2"], LANE, LANE),
        "s_b2_p": _pad2(params["s_b2"], 1, LANE),
        "s_w3_p": _pad2(params["s_w3"], LANE, LANE),
        "s_b3_p": _pad2(params["s_b3"], 1, LANE, fill=NEG_BIG),
        # pairs_fnn (w1 split into target / opinion / distance blocks)
        "p_w1t": _pad2(p_w1[:SPAN_DIM], LANE, LANE),
        "p_w1o": _pad2(p_w1[SPAN_DIM:2 * SPAN_DIM], LANE, LANE),
        "p_w1d": _pad2(p_w1[2 * SPAN_DIM:], LANE, LANE),
        "p_b1_p": _pad2(params["p_b1"], 1, LANE),
        "p_w2_p": _pad2(params["p_w2"], LANE, LANE),
        "p_b2_p": _pad2(params["p_b2"], 1, LANE),
        "p_w3_p": _pad2(params["p_w3"], LANE, LANE),
        "p_b3_p": _pad2(params["p_b3"], 1, LANE, fill=NEG_BIG),
        # distance embedding table (padded) + static span tables (SMEM ints)
        "dtab_p": _pad2(params["dist_emb"], _round_up(len(BUCKET_BINS), SUBLANE), LANE),
        "starts_i32": jnp.asarray(starts),
        "ends_i32": jnp.asarray(ends),
    }
    cfg = {
        "batch_size": batch_size, "seq_len": seq_len,
        "batch_max_seq_len": batch_max_seq_len,
        "span_indices": span_indices, "n_spans": n_spans,
        "ns": ns, "ns_pad": ns_pad,
        "nz": nz, "n_pairs": n_pairs, "n_pairs_pad": n_pairs_pad,
    }
    return cfg, arrs


# ------------------------------ forward -----------------------------------
def make_forward(cfg):
    bsz, seq = cfg["batch_size"], cfg["seq_len"]
    n_spans, ns, ns_pad = cfg["n_spans"], cfg["ns"], cfg["ns_pad"]
    nz, n_pairs, n_pairs_pad = cfg["nz"], cfg["n_pairs"], cfg["n_pairs_pad"]

    pairs_kernel = _make_pairs_kernel(bsz, nz, n_spans)

    def forward(arrs, input_ids, attention_mask):
        # ----- "BERT" stand-in: token + position embedding (masked) -----
        # (the tanh(Linear) projection runs inside the span kernel)
        emb = arrs["tok_emb_p"][input_ids] + arrs["pos_emb_p"][None, :seq, :]
        emb = emb * attention_mask[..., None].astype(jnp.float32)
        emb = emb.reshape(bsz * seq, LANE)

        # ----- fused: encoder proj + SpanRepresentation + span_fnn + softmax -----
        prob_p, srep_p = pl.pallas_call(
            _span_kernel,
            out_shape=(jax.ShapeDtypeStruct((ns_pad, LANE), jnp.float32),
                       jax.ShapeDtypeStruct((ns_pad, LANE), jnp.float32)),
            in_specs=[_VMEM] * 13,
            out_specs=(_VMEM, _VMEM),
        )(emb, arrs["enc_w_p"], arrs["enc_b_p"],
          arrs["sel_s"], arrs["sel_e"], arrs["shift"], arrs["wrep"],
          arrs["s_w1_p"], arrs["s_b1_p"], arrs["s_w2_p"], arrs["s_b2_p"],
          arrs["s_w3_p"], arrs["s_b3_p"])

        spans_probability = prob_p[:ns, :CLASS_NUM].reshape(bsz, n_spans, CLASS_NUM)

        # ----- PrunedTargetOpinion: single merged top-k -----
        ao = jnp.stack([spans_probability[:, :, ASPECT_ID],
                        spans_probability[:, :, OPINION_ID]], axis=1)
        _, topk_idx = lax.top_k(ao, nz)                     # (B, 2, nz)
        target_indices = topk_idx[:, 0, :].astype(jnp.int32)
        opinion_indices = topk_idx[:, 1, :].astype(jnp.int32)

        # ----- fused: PairRepresentation + pairs_fnn + softmax -----
        cand_p = pl.pallas_call(
            pairs_kernel,
            out_shape=jax.ShapeDtypeStruct((n_pairs_pad, LANE), jnp.float32),
            in_specs=[_SMEM] * 4 + [_VMEM] * 10,
            out_specs=_VMEM,
            scratch_shapes=[pltpu.VMEM((n_pairs_pad, LANE), jnp.float32)] * 3,
        )(target_indices, opinion_indices, arrs["starts_i32"], arrs["ends_i32"],
          srep_p, arrs["dtab_p"],
          arrs["p_w1t"], arrs["p_w1o"], arrs["p_w1d"], arrs["p_b1_p"],
          arrs["p_w2_p"], arrs["p_b2_p"], arrs["p_w3_p"], arrs["p_b3_p"])

        candidate_probability = cand_p[:n_pairs, :SENT_CLASS].reshape(
            bsz, nz * nz, SENT_CLASS)

        # ----- candidate (a, b, c, d) indices, itertools.product order -----
        t_rep = jnp.repeat(target_indices, nz, axis=1)
        o_rep = jnp.tile(opinion_indices, (1, nz))
        a = arrs["starts_i32"][t_rep]
        b_e = arrs["ends_i32"][t_rep]
        c = arrs["starts_i32"][o_rep]
        d = arrs["ends_i32"][o_rep]
        candidate_indices = jnp.stack([a, b_e, c, d], axis=-1).reshape(-1, 4)

        return spans_probability, candidate_probability, candidate_indices

    return forward


# --------------------------------- main -----------------------------------
if __name__ == "__main__":
    key = jax.random.PRNGKey(0)
    pkey, dkey = jax.random.split(key)
    params = init_params(pkey)

    input_ids = jax.random.randint(dkey, (B, L), 1, VOCAB, dtype=jnp.int32)
    attention_mask = jnp.ones((B, L), jnp.int32)
    token_type_ids = jnp.zeros((B, L), jnp.int32)   # unused by the stand-in encoder
    sen_length = [L] * B
    batch_max_seq_len = int(max(sen_length))

    cfg, arrs = prepare(params, B, L, batch_max_seq_len)
    forward = jax.jit(make_forward(cfg))

    spans_prob, cand_prob, cand_idx = forward(arrs, input_ids, attention_mask)
    jax.block_until_ready((spans_prob, cand_prob, cand_idx))

    span_idx = cfg["span_indices"]
    nz = cfg["nz"]
    assert spans_prob.shape == (B, len(span_idx), CLASS_NUM)
    assert cand_prob.shape == (B, nz * nz, SENT_CLASS)
    assert cand_idx.shape == (B * nz * nz, 4)
    assert jnp.allclose(jnp.sum(spans_prob, -1), 1.0, atol=1e-4)
    assert jnp.allclose(jnp.sum(cand_prob, -1), 1.0, atol=1e-4)
    assert bool(jnp.all(jnp.isfinite(spans_prob)))
    assert bool(jnp.all(jnp.isfinite(cand_prob)))

    print("KERNEL_OK")
</pallas_src>

<mosaic_0001>
module attributes {stable_mosaic.version = 11 : i64} {
  func.func @_span_kernel(%arg0: memref<16x128xf32, #tpu.memory_space<vmem>>, %arg1: memref<128x128xf32, #tpu.memory_space<vmem>>, %arg2: memref<1x128xf32, #tpu.memory_space<vmem>>, %arg3: memref<56x16xf32, #tpu.memory_space<vmem>>, %arg4: memref<56x16xf32, #tpu.memory_space<vmem>>, %arg5: memref<128x128xf32, #tpu.memory_space<vmem>>, %arg6: memref<56x128xf32, #tpu.memory_space<vmem>>, %arg7: memref<128x128xf32, #tpu.memory_space<vmem>>, %arg8: memref<1x128xf32, #tpu.memory_space<vmem>>, %arg9: memref<128x128xf32, #tpu.memory_space<vmem>>, %arg10: memref<1x128xf32, #tpu.memory_space<vmem>>, %arg11: memref<128x128xf32, #tpu.memory_space<vmem>>, %arg12: memref<1x128xf32, #tpu.memory_space<vmem>>, %arg13: memref<56x128xf32, #tpu.memory_space<vmem>>, %arg14: memref<56x128xf32, #tpu.memory_space<vmem>>) attributes {dimension_semantics = [], scalar_prefetch = 0 : i64, scratch_operands = 0 : i64, tpu.core_type = #tpu.core_type<tc>} {
    %c0 = arith.constant 0 : index
    %c0_0 = arith.constant 0 : index
    %0 = vector.load %arg0[%c0, %c0_0] : memref<16x128xf32, #tpu.memory_space<vmem>>, vector<16x128xf32>
    %c0_1 = arith.constant 0 : index
    %c0_2 = arith.constant 0 : index
    %1 = vector.load %arg1[%c0_1, %c0_2] : memref<128x128xf32, #tpu.memory_space<vmem>>, vector<128x128xf32>
    %cst = arith.constant dense<0.000000e+00> : vector<16x128xf32>
    %2 = tpu.matmul %0, %1, %cst {dimension_numbers = #tpu.dot_dimension_numbers<[1], [0], [0], [1], [0, 0, 1, 1], [], []>} : vector<16x128xf32>, vector<128x128xf32>, vector<16x128xf32> -> vector<16x128xf32>
    %c0_3 = arith.constant 0 : index
    %c0_4 = arith.constant 0 : index
    %3 = vector.load %arg2[%c0_3, %c0_4] : memref<1x128xf32, #tpu.memory_space<vmem>>, vector<1x128xf32>
    %4 = vector.broadcast %3 : vector<1x128xf32> to vector<16x128xf32>
    %5 = arith.addf %2, %4 : vector<16x128xf32>
    %6 = math.tanh %5 : vector<16x128xf32>
    %c0_5 = arith.constant 0 : index
    %c0_6 = arith.constant 0 : index
    %7 = vector.load %arg3[%c0_5, %c0_6] : memref<56x16xf32, #tpu.memory_space<vmem>>, vector<56x16xf32>
    %cst_7 = arith.constant dense<0.000000e+00> : vector<56x128xf32>
    %8 = tpu.matmul %7, %6, %cst_7 {dimension_numbers = #tpu.dot_dimension_numbers<[1], [0], [0], [1], [0, 0, 1, 1], [], []>} : vector<56x16xf32>, vector<16x128xf32>, vector<56x128xf32> -> vector<56x128xf32>
    %c0_8 = arith.constant 0 : index
    %c0_9 = arith.constant 0 : index
    %9 = vector.load %arg4[%c0_8, %c0_9] : memref<56x16xf32, #tpu.memory_space<vmem>>, vector<56x16xf32>
    %cst_10 = arith.constant dense<0.000000e+00> : vector<56x128xf32>
    %10 = tpu.matmul %9, %6, %cst_10 {dimension_numbers = #tpu.dot_dimension_numbers<[1], [0], [0], [1], [0, 0, 1, 1], [], []>} : vector<56x16xf32>, vector<16x128xf32>, vector<56x128xf32> -> vector<56x128xf32>
    %c0_11 = arith.constant 0 : index
    %c0_12 = arith.constant 0 : index
    %11 = vector.load %arg5[%c0_11, %c0_12] : memref<128x128xf32, #tpu.memory_space<vmem>>, vector<128x128xf32>
    %cst_13 = arith.constant dense<0.000000e+00> : vector<56x128xf32>
    %12 = tpu.matmul %10, %11, %cst_13 {dimension_numbers = #tpu.dot_dimension_numbers<[1], [0], [0], [1], [0, 0, 1, 1], [], []>} : vector<56x128xf32>, vector<128x128xf32>, vector<56x128xf32> -> vector<56x128xf32>
    %13 = arith.addf %8, %12 : vector<56x128xf32>
    %c0_14 = arith.constant 0 : index
    %c0_15 = arith.constant 0 : index
    %14 = vector.load %arg6[%c0_14, %c0_15] : memref<56x128xf32, #tpu.memory_space<vmem>>, vector<56x128xf32>
    %15 = arith.addf %13, %14 : vector<56x128xf32>
    %c0_16 = arith.constant 0 : index
    %c0_17 = arith.constant 0 : index
    %16 = vector.load %arg14[%c0_16, %c0_17] : memref<56x128xf32, #tpu.memory_space<vmem>>, vector<56x128xf32>
    tpu.vector_store %arg14[%c0_16, %c0_17], %15 {strides = array<i32>} : memref<56x128xf32, #tpu.memory_space<vmem>>, vector<56x128xf32>,
    %c0_18 = arith.constant 0 : index
    %c0_19 = arith.constant 0 : index
    %17 = vector.load %arg7[%c0_18, %c0_19] : memref<128x128xf32, #tpu.memory_space<vmem>>, vector<128x128xf32>
    %cst_20 = arith.constant dense<0.000000e+00> : vector<56x128xf32>
    %18 = tpu.matmul %15, %17, %cst_20 {dimension_numbers = #tpu.dot_dimension_numbers<[1], [0], [0], [1], [0, 0, 1, 1], [], []>} : vector<56x128xf32>, vector<128x128xf32>, vector<56x128xf32> -> vector<56x128xf32>
    %c0_21 = arith.constant 0 : index
    %c0_22 = arith.constant 0 : index
    %19 = vector.load %arg8[%c0_21, %c0_22] : memref<1x128xf32, #tpu.memory_space<vmem>>, vector<1x128xf32>
    %20 = vector.broadcast %19 : vector<1x128xf32> to vector<56x128xf32>
    %21 = arith.addf %18, %20 : vector<56x128xf32>
    %cst_23 = arith.constant 0.000000e+00 : f32
    %22 = vector.broadcast %cst_23 : f32 to vector<56x128xf32>
    %23 = arith.maximumf %21, %22 : vector<56x128xf32>
    %c0_24 = arith.constant 0 : index
    %c0_25 = arith.constant 0 : index
    %24 = vector.load %arg9[%c0_24, %c0_25] : memref<128x128xf32, #tpu.memory_space<vmem>>, vector<128x128xf32>
    %cst_26 = arith.constant dense<0.000000e+00> : vector<56x128xf32>
    %25 = tpu.matmul %23, %24, %cst_26 {dimension_numbers = #tpu.dot_dimension_numbers<[1], [0], [0], [1], [0, 0, 1, 1], [], []>} : vector<56x128xf32>, vector<128x128xf32>, vector<56x128xf32> -> vector<56x128xf32>
    %c0_27 = arith.constant 0 : index
    %c0_28 = arith.constant 0 : index
    %26 = vector.load %arg10[%c0_27, %c0_28] : memref<1x128xf32, #tpu.memory_space<vmem>>, vector<1x128xf32>
    %27 = vector.broadcast %26 : vector<1x128xf32> to vector<56x128xf32>
    %28 = arith.addf %25, %27 : vector<56x128xf32>
    %cst_29 = arith.constant 0.000000e+00 : f32
    %29 = vector.broadcast %cst_29 : f32 to vector<56x128xf32>
    %30 = arith.maximumf %28, %29 : vector<56x128xf32>
    %c0_30 = arith.constant 0 : index
    %c0_31 = arith.constant 0 : index
    %31 = vector.load %arg11[%c0_30, %c0_31] : memref<128x128xf32, #tpu.memory_space<vmem>>, vector<128x128xf32>
    %cst_32 = arith.constant dense<0.000000e+00> : vector<56x128xf32>
    %32 = tpu.matmul %30, %31, %cst_32 {dimension_numbers = #tpu.dot_dimension_numbers<[1], [0], [0], [1], [0, 0, 1, 1], [], []>} : vector<56x128xf32>, vector<128x128xf32>, vector<56x128xf32> -> vector<56x128xf32>
    %c0_33 = arith.constant 0 : index
    %c0_34 = arith.constant 0 : index
    %33 = vector.load %arg12[%c0_33, %c0_34] : memref<1x128xf32, #tpu.memory_space<vmem>>, vector<1x128xf32>
    %34 = vector.broadcast %33 : vector<1x128xf32> to vector<56x128xf32>
    %35 = arith.addf %32, %34 : vector<56x128xf32>
    %cst_35 = arith.constant dense<0xFF800000> : vector<56xf32>
    %36 = vector.multi_reduction <maximumf>, %35, %cst_35 [1] : vector<56x128xf32> to vector<56xf32>
    %37 = vector.shape_cast %36 : vector<56xf32> to vector<56x1xf32>
    %38 = vector.broadcast %37 : vector<56x1xf32> to vector<56x128xf32>
    %39 = arith.subf %35, %38 : vector<56x128xf32>
    %40 = math.exp %39 : vector<56x128xf32>
    %cst_36 = arith.constant dense<0.000000e+00> : vector<56xf32>
    %41 = vector.multi_reduction <add>, %40, %cst_36 [1] : vector<56x128xf32> to vector<56xf32>
    %42 = vector.shape_cast %41 : vector<56xf32> to vector<56x1xf32>
    %43 = vector.broadcast %42 : vector<56x1xf32> to vector<56x128xf32>
    %44 = arith.divf %40, %43 : vector<56x128xf32>
    %c0_37 = arith.constant 0 : index
    %c0_38 = arith.constant 0 : index
    %45 = vector.load %arg13[%c0_37, %c0_38] : memref<56x128xf32, #tpu.memory_space<vmem>>, vector<56x128xf32>
    tpu.vector_store %arg13[%c0_37, %c0_38], %44 {strides = array<i32>} : memref<56x128xf32, #tpu.memory_space<vmem>>, vector<56x128xf32>,
    return
  }
}

module attributes {stable_mosaic.version = 11 : i64} {
  func.func @kernel(%arg0: memref<2x2xi32, #tpu.memory_space<smem>>, %arg1: memref<2x2xi32, #tpu.memory_space<smem>>, %arg2: memref<26xi32, #tpu.memory_space<smem>>, %arg3: memref<26xi32, #tpu.memory_space<smem>>, %arg4: memref<56x128xf32, #tpu.memory_space<vmem>>, %arg5: memref<16x128xf32, #tpu.memory_space<vmem>>, %arg6: memref<128x128xf32, #tpu.memory_space<vmem>>, %arg7: memref<128x128xf32, #tpu.memory_space<vmem>>, %arg8: memref<128x128xf32, #tpu.memory_space<vmem>>, %arg9: memref<1x128xf32, #tpu.memory_space<vmem>>, %arg10: memref<128x128xf32, #tpu.memory_space<vmem>>, %arg11: memref<1x128xf32, #tpu.memory_space<vmem>>, %arg12: memref<128x128xf32, #tpu.memory_space<vmem>>, %arg13: memref<1x128xf32, #tpu.memory_space<vmem>>, %arg14: memref<8x128xf32, #tpu.memory_space<vmem>>, %arg15: memref<8x128xf32, #tpu.memory_space<vmem>>, %arg16: memref<8x128xf32, #tpu.memory_space<vmem>>, %arg17: memref<8x128xf32, #tpu.memory_space<vmem>>) attributes {dimension_semantics = [], scalar_prefetch = 0 : i64, scratch_operands = 3 : i64, tpu.core_type = #tpu.core_type<tc>} {
    %cst = arith.constant 0.000000e+00 : f32
    %0 = vector.broadcast %cst : f32 to vector<8x128xf32>
    %c0 = arith.constant 0 : index
    %c0_0 = arith.constant 0 : index
    %1 = vector.load %arg15[%c0, %c0_0] : memref<8x128xf32, #tpu.memory_space<vmem>>, vector<8x128xf32>
    tpu.vector_store %arg15[%c0, %c0_0], %0 {strides = array<i32>} : memref<8x128xf32, #tpu.memory_space<vmem>>, vector<8x128xf32>,
    %cst_1 = arith.constant 0.000000e+00 : f32
    %2 = vector.broadcast %cst_1 : f32 to vector<8x128xf32>
    %c0_2 = arith.constant 0 : index
    %c0_3 = arith.constant 0 : index
    %3 = vector.load %arg16[%c0_2, %c0_3] : memref<8x128xf32, #tpu.memory_space<vmem>>, vector<8x128xf32>
    tpu.vector_store %arg16[%c0_2, %c0_3], %2 {strides = array<i32>} : memref<8x128xf32, #tpu.memory_space<vmem>>, vector<8x128xf32>,
    %cst_4 = arith.constant 0.000000e+00 : f32
    %4 = vector.broadcast %cst_4 : f32 to vector<8x128xf32>
    %c0_5 = arith.constant 0 : index
    %c0_6 = arith.constant 0 : index
    %5 = vector.load %arg17[%c0_5, %c0_6] : memref<8x128xf32, #tpu.memory_space<vmem>>, vector<8x128xf32>
    tpu.vector_store %arg17[%c0_5, %c0_6], %4 {strides = array<i32>} : memref<8x128xf32, #tpu.memory_space<vmem>>, vector<8x128xf32>,
    %c0_7 = arith.constant 0 : index
    %c0_8 = arith.constant 0 : index
    %6 = memref.load %arg0[%c0_7, %c0_8] : memref<2x2xi32, #tpu.memory_space<smem>>
    %c0_9 = arith.constant 0 : index
    %c0_10 = arith.constant 0 : index
    %7 = memref.load %arg1[%c0_9, %c0_10] : memref<2x2xi32, #tpu.memory_space<smem>>
    %8 = arith.index_cast %6 : i32 to index
    %9 = memref.load %arg2[%8] : memref<26xi32, #tpu.memory_space<smem>>
    %10 = arith.index_cast %6 : i32 to index
    %11 = memref.load %arg3[%10] : memref<26xi32, #tpu.memory_space<smem>>
    %12 = arith.index_cast %7 : i32 to index
    %13 = memref.load %arg2[%12] : memref<26xi32, #tpu.memory_space<smem>>
    %14 = arith.index_cast %7 : i32 to index
    %15 = memref.load %arg3[%14] : memref<26xi32, #tpu.memory_space<smem>>
    %16 = arith.subi %11, %13 : i32
    %17 = math.absi %16 : i32
    %18 = arith.subi %9, %15 : i32
    %19 = math.absi %18 : i32
    %20 = arith.minsi %17, %19 : i32
    %c0_i32 = arith.constant 0 : i32
    %21 = arith.cmpi sge, %20, %c0_i32 : i32
    %22 = arith.extui %21 : i1 to i32
    %c-1_i32 = arith.constant -1 : i32
    %23 = arith.addi %c-1_i32, %22 : i32
    %c1_i32 = arith.constant 1 : i32
    %24 = arith.cmpi sge, %20, %c1_i32 : i32
    %25 = arith.extui %24 : i1 to i32
    %26 = arith.addi %23, %25 : i32
    %c2_i32 = arith.constant 2 : i32
    %27 = arith.cmpi sge, %20, %c2_i32 : i32
    %28 = arith.extui %27 : i1 to i32
    %29 = arith.addi %26, %28 : i32
    %c3_i32 = arith.constant 3 : i32
    %30 = arith.cmpi sge, %20, %c3_i32 : i32
    %31 = arith.extui %30 : i1 to i32
    %32 = arith.addi %29, %31 : i32
    %c4_i32 = arith.constant 4 : i32
    %33 = arith.cmpi sge, %20, %c4_i32 : i32
    %34 = arith.extui %33 : i1 to i32
    %35 = arith.addi %32, %34 : i32
    %c5_i32 = arith.constant 5 : i32
    %36 = arith.cmpi sge, %20, %c5_i32 : i32
    %37 = arith.extui %36 : i1 to i32
    %38 = arith.addi %35, %37 : i32
    %c7_i32 = arith.constant 7 : i32
    %39 = arith.cmpi sge, %20, %c7_i32 : i32
    %40 = arith.extui %39 : i1 to i32
    %41 = arith.addi %38, %40 : i32
    %c8_i32 = arith.constant 8 : i32
    %42 = arith.cmpi sge, %20, %c8_i32 : i32
    %43 = arith.extui %42 : i1 to i32
    %44 = arith.addi %41, %43 : i32
    %c15_i32 = arith.constant 15 : i32
    %45 = arith.cmpi sge, %20, %c15_i32 : i32
    %46 = arith.extui %45 : i1 to i32
    %47 = arith.addi %44, %46 : i32
    %c16_i32 = arith.constant 16 : i32
    %48 = arith.cmpi sge, %20, %c16_i32 : i32
    %49 = arith.extui %48 : i1 to i32
    %50 = arith.addi %47, %49 : i32
    %c31_i32 = arith.constant 31 : i32
    %51 = arith.cmpi sge, %20, %c31_i32 : i32
    %52 = arith.extui %51 : i1 to i32
    %53 = arith.addi %50, %52 : i32
    %c32_i32 = arith.constant 32 : i32
    %54 = arith.cmpi sge, %20, %c32_i32 : i32
    %55 = arith.extui %54 : i1 to i32
    %56 = arith.addi %53, %55 : i32
    %c63_i32 = arith.constant 63 : i32
    %57 = arith.cmpi sge, %20, %c63_i32 : i32
    %58 = arith.extui %57 : i1 to i32
    %59 = arith.addi %56, %58 : i32
    %c64_i32 = arith.constant 64 : i32
    %60 = arith.cmpi sge, %20, %c64_i32 : i32
    %61 = arith.extui %60 : i1 to i32
    %62 = arith.addi %59, %61 : i32
    %c0_i32_11 = arith.constant 0 : i32
    %63 = arith.addi %c0_i32_11, %6 : i32
    %64 = arith.index_cast %63 : i32 to index
    %c0_12 = arith.constant 0 : index
    %65 = vector.load %arg4[%64, %c0_12] : memref<56x128xf32, #tpu.memory_space<vmem>>, vector<1x128xf32>
    %c0_13 = arith.constant 0 : index
    %c0_14 = arith.constant 0 : index
    %66 = vector.load %arg15[%c0_13, %c0_14] : memref<8x128xf32, #tpu.memory_space<vmem>>, vector<1x128xf32>
    tpu.vector_store %arg15[%c0_13, %c0_14], %65 {strides = array<i32>} : memref<8x128xf32, #tpu.memory_space<vmem>>, vector<1x128xf32>,
    %c0_i32_15 = arith.constant 0 : i32
    %67 = arith.addi %c0_i32_15, %7 : i32
    %68 = arith.index_cast %67 : i32 to index
    %c0_16 = arith.constant 0 : index
    %69 = vector.load %arg4[%68, %c0_16] : memref<56x128xf32, #tpu.memory_space<vmem>>, vector<1x128xf32>
    %c0_17 = arith.constant 0 : index
    %c0_18 = arith.constant 0 : index
    %70 = vector.load %arg16[%c0_17, %c0_18] : memref<8x128xf32, #tpu.memory_space<vmem>>, vector<1x128xf32>
    tpu.vector_store %arg16[%c0_17, %c0_18], %69 {strides = array<i32>} : memref<8x128xf32, #tpu.memory_space<vmem>>, vector<1x128xf32>,
    %71 = arith.index_cast %62 : i32 to index
    %c0_19 = arith.constant 0 : index
    %72 = vector.load %arg5[%71, %c0_19] : memref<16x128xf32, #tpu.memory_space<vmem>>, vector<1x128xf32>
    %c0_20 = arith.constant 0 : index
    %c0_21 = arith.constant 0 : index
    %73 = vector.load %arg17[%c0_20, %c0_21] : memref<8x128xf32, #tpu.memory_space<vmem>>, vector<1x128xf32>
    tpu.vector_store %arg17[%c0_20, %c0_21], %72 {strides = array<i32>} : memref<8x128xf32, #tpu.memory_space<vmem>>, vector<1x128xf32>,
    %c0_22 = arith.constant 0 : index
    %c0_23 = arith.constant 0 : index
    %74 = memref.load %arg0[%c0_22, %c0_23] : memref<2x2xi32, #tpu.memory_space<smem>>
    %c0_24 = arith.constant 0 : index
    %c1 = arith.constant 1 : index
    %75 = memref.load %arg1[%c0_24, %c1] : memref<2x2xi32, #tpu.memory_space<smem>>
    %76 = arith.index_cast %74 : i32 to index
    %77 = memref.load %arg2[%76] : memref<26xi32, #tpu.memory_space<smem>>
    %78 = arith.index_cast %74 : i32 to index
    %79 = memref.load %arg3[%78] : memref<26xi32, #tpu.memory_space<smem>>
    %80 = arith.index_cast %75 : i32 to index
    %81 = memref.load %arg2[%80] : memref<26xi32, #tpu.memory_space<smem>>
    %82 = arith.index_cast %75 : i32 to index
    %83 = memref.load %arg3[%82] : memref<26xi32, #tpu.memory_space<smem>>
    %84 = arith.subi %79, %81 : i32
    %85 = math.absi %84 : i32
    %86 = arith.subi %77, %83 : i32
    %87 = math.absi %86 : i32
    %88 = arith.minsi %85, %87 : i32
    %c0_i32_25 = arith.constant 0 : i32
    %89 = arith.cmpi sge, %88, %c0_i32_25 : i32
    %90 = arith.extui %89 : i1 to i32
    %c-1_i32_26 = arith.constant -1 : i32
    %91 = arith.addi %c-1_i32_26, %90 : i32
    %c1_i32_27 = arith.constant 1 : i32
    %92 = arith.cmpi sge, %88, %c1_i32_27 : i32
    %93 = arith.extui %92 : i1 to i32
    %94 = arith.addi %91, %93 : i32
    %c2_i32_28 = arith.constant 2 : i32
    %95 = arith.cmpi sge, %88, %c2_i32_28 : i32
    %96 = arith.extui %95 : i1 to i32
    %97 = arith.addi %94, %96 : i32
    %c3_i32_29 = arith.constant 3 : i32
    %98 = arith.cmpi sge, %88, %c3_i32_29 : i32
    %99 = arith.extui %98 : i1 to i32
    %100 = arith.addi %97, %99 : i32
    %c4_i32_30 = arith.constant 4 : i32
    %101 = arith.cmpi sge, %88, %c4_i32_30 : i32
    %102 = arith.extui %101 : i1 to i32
    %103 = arith.addi %100, %102 : i32
    %c5_i32_31 = arith.constant 5 : i32
    %104 = arith.cmpi sge, %88, %c5_i32_31 : i32
    %105 = arith.extui %104 : i1 to i32
    %106 = arith.addi %103, %105 : i32
    %c7_i32_32 = arith.constant 7 : i32
    %107 = arith.cmpi sge, %88, %c7_i32_32 : i32
    %108 = arith.extui %107 : i1 to i32
    %109 = arith.addi %106, %108 : i32
    %c8_i32_33 = arith.constant 8 : i32
    %110 = arith.cmpi sge, %88, %c8_i32_33 : i32
    %111 = arith.extui %110 : i1 to i32
    %112 = arith.addi %109, %111 : i32
    %c15_i32_34 = arith.constant 15 : i32
    %113 = arith.cmpi sge, %88, %c15_i32_34 : i32
    %114 = arith.extui %113 : i1 to i32
    %115 = arith.addi %112, %114 : i32
    %c16_i32_35 = arith.constant 16 : i32
    %116 = arith.cmpi sge, %88, %c16_i32_35 : i32
    %117 = arith.extui %116 : i1 to i32
    %118 = arith.addi %115, %117 : i32
    %c31_i32_36 = arith.constant 31 : i32
    %119 = arith.cmpi sge, %88, %c31_i32_36 : i32
    %120 = arith.extui %119 : i1 to i32
    %121 = arith.addi %118, %120 : i32
    %c32_i32_37 = arith.constant 32 : i32
    %122 = arith.cmpi sge, %88, %c32_i32_37 : i32
    %123 = arith.extui %122 : i1 to i32
    %124 = arith.addi %121, %123 : i32
    %c63_i32_38 = arith.constant 63 : i32
    %125 = arith.cmpi sge, %88, %c63_i32_38 : i32
    %126 = arith.extui %125 : i1 to i32
    %127 = arith.addi %124, %126 : i32
    %c64_i32_39 = arith.constant 64 : i32
    %128 = arith.cmpi sge, %88, %c64_i32_39 : i32
    %129 = arith.extui %128 : i1 to i32
    %130 = arith.addi %127, %129 : i32
    %c0_i32_40 = arith.constant 0 : i32
    %131 = arith.addi %c0_i32_40, %74 : i32
    %132 = arith.index_cast %131 : i32 to index
    %c0_41 = arith.constant 0 : index
    %133 = vector.load %arg4[%132, %c0_41] : memref<56x128xf32, #tpu.memory_space<vmem>>, vector<1x128xf32>
    %c1_42 = arith.constant 1 : index
    %c0_43 = arith.constant 0 : index
    %134 = vector.load %arg15[%c1_42, %c0_43] : memref<8x128xf32, #tpu.memory_space<vmem>>, vector<1x128xf32>
    tpu.vector_store %arg15[%c1_42, %c0_43], %133 {strides = array<i32>} : memref<8x128xf32, #tpu.memory_space<vmem>>, vector<1x128xf32>,
    %c0_i32_44 = arith.constant 0 : i32
    %135 = arith.addi %c0_i32_44, %75 : i32
    %136 = arith.index_cast %135 : i32 to index
    %c0_45 = arith.constant 0 : index
    %137 = vector.load %arg4[%136, %c0_45] : memref<56x128xf32, #tpu.memory_space<vmem>>, vector<1x128xf32>
    %c1_46 = arith.constant 1 : index
    %c0_47 = arith.constant 0 : index
    %138 = vector.load %arg16[%c1_46, %c0_47] : memref<8x128xf32, #tpu.memory_space<vmem>>, vector<1x128xf32>
    tpu.vector_store %arg16[%c1_46, %c0_47], %137 {strides = array<i32>} : memref<8x128xf32, #tpu.memory_space<vmem>>, vector<1x128xf32>,
    %139 = arith.index_cast %130 : i32 to index
    %c0_48 = arith.constant 0 : index
    %140 = vector.load %arg5[%139, %c0_48] : memref<16x128xf32, #tpu.memory_space<vmem>>, vector<1x128xf32>
    %c1_49 = arith.constant 1 : index
    %c0_50 = arith.constant 0 : index
    %141 = vector.load %arg17[%c1_49, %c0_50] : memref<8x128xf32, #tpu.memory_space<vmem>>, vector<1x128xf32>
    tpu.vector_store %arg17[%c1_49, %c0_50], %140 {strides = array<i32>} : memref<8x128xf32, #tpu.memory_space<vmem>>, vector<1x128xf32>,
    %c0_51 = arith.constant 0 : index
    %c1_52 = arith.constant 1 : index
    %142 = memref.load %arg0[%c0_51, %c1_52] : memref<2x2xi32, #tpu.memory_space<smem>>
    %c0_53 = arith.constant 0 : index
    %c0_54 = arith.constant 0 : index
    %143 = memref.load %arg1[%c0_53, %c0_54] : memref<2x2xi32, #tpu.memory_space<smem>>
    %144 = arith.index_cast %142 : i32 to index
    %145 = memref.load %arg2[%144] : memref<26xi32, #tpu.memory_space<smem>>
    %146 = arith.index_cast %142 : i32 to index
    %147 = memref.load %arg3[%146] : memref<26xi32, #tpu.memory_space<smem>>
    %148 = arith.index_cast %143 : i32 to index
    %149 = memref.load %arg2[%148] : memref<26xi32, #tpu.memory_space<smem>>
    %150 = arith.index_cast %143 : i32 to index
    %151 = memref.load %arg3[%150] : memref<26xi32, #tpu.memory_space<smem>>
    %152 = arith.subi %147, %149 : i32
    %153 = math.absi %152 : i32
    %154 = arith.subi %145, %151 : i32
    %155 = math.absi %154 : i32
    %156 = arith.minsi %153, %155 : i32
    %c0_i32_55 = arith.constant 0 : i32
    %157 = arith.cmpi sge, %156, %c0_i32_55 : i32
    %158 = arith.extui %157 : i1 to i32
    %c-1_i32_56 = arith.constant -1 : i32
    %159 = arith.addi %c-1_i32_56, %158 : i32
    %c1_i32_57 = arith.constant 1 : i32
    %160 = arith.cmpi sge, %156, %c1_i32_57 : i32
    %161 = arith.extui %160 : i1 to i32
    %162 = arith.addi %159, %161 : i32
    %c2_i32_58 = arith.constant 2 : i32
    %163 = arith.cmpi sge, %156, %c2_i32_58 : i32
    %164 = arith.extui %163 : i1 to i32
    %165 = arith.addi %162, %164 : i32
    %c3_i32_59 = arith.constant 3 : i32
    %166 = arith.cmpi sge, %156, %c3_i32_59 : i32
    %167 = arith.extui %166 : i1 to i32
    %168 = arith.addi %165, %167 : i32
    %c4_i32_60 = arith.constant 4 : i32
    %169 = arith.cmpi sge, %156, %c4_i32_60 : i32
    %170 = arith.extui %169 : i1 to i32
    %171 = arith.addi %168, %170 : i32
    %c5_i32_61 = arith.constant 5 : i32
    %172 = arith.cmpi sge, %156, %c5_i32_61 : i32
    %173 = arith.extui %172 : i1 to i32
    %174 = arith.addi %171, %173 : i32
    %c7_i32_62 = arith.constant 7 : i32
    %175 = arith.cmpi sge, %156, %c7_i32_62 : i32
    %176 = arith.extui %175 : i1 to i32
    %177 = arith.addi %174, %176 : i32
    %c8_i32_63 = arith.constant 8 : i32
    %178 = arith.cmpi sge, %156, %c8_i32_63 : i32
    %179 = arith.extui %178 : i1 to i32
    %180 = arith.addi %177, %179 : i32
    %c15_i32_64 = arith.constant 15 : i32
    %181 = arith.cmpi sge, %156, %c15_i32_64 : i32
    %182 = arith.extui %181 : i1 to i32
    %183 = arith.addi %180, %182 : i32
    %c16_i32_65 = arith.constant 16 : i32
    %184 = arith.cmpi sge, %156, %c16_i32_65 : i32
    %185 = arith.extui %184 : i1 to i32
    %186 = arith.addi %183, %185 : i32
    %c31_i32_66 = arith.constant 31 : i32
    %187 = arith.cmpi sge, %156, %c31_i32_66 : i32
    %188 = arith.extui %187 : i1 to i32
    %189 = arith.addi %186, %188 : i32
    %c32_i32_67 = arith.constant 32 : i32
    %190 = arith.cmpi sge, %156, %c32_i32_67 : i32
    %191 = arith.extui %190 : i1 to i32
    %192 = arith.addi %189, %191 : i32
    %c63_i32_68 = arith.constant 63 : i32
    %193 = arith.cmpi sge, %156, %c63_i32_68 : i32
    %194 = arith.extui %193 : i1 to i32
    %195 = arith.addi %192, %194 : i32
    %c64_i32_69 = arith.constant 64 : i32
    %196 = arith.cmpi sge, %156, %c64_i32_69 : i32
    %197 = arith.extui %196 : i1 to i32
    %198 = arith.addi %195, %197 : i32
    %c0_i32_70 = arith.constant 0 : i32
    %199 = arith.addi %c0_i32_70, %142 : i32
    %200 = arith.index_cast %199 : i32 to index
    %c0_71 = arith.constant 0 : index
    %201 = vector.load %arg4[%200, %c0_71] : memref<56x128xf32, #tpu.memory_space<vmem>>, vector<1x128xf32>
    %c2 = arith.constant 2 : index
    %c0_72 = arith.constant 0 : index
    %202 = vector.load %arg15[%c2, %c0_72] : memref<8x128xf32, #tpu.memory_space<vmem>>, vector<1x128xf32>
    tpu.vector_store %arg15[%c2, %c0_72], %201 {strides = array<i32>} : memref<8x128xf32, #tpu.memory_space<vmem>>, vector<1x128xf32>,
    %c0_i32_73 = arith.constant 0 : i32
    %203 = arith.addi %c0_i32_73, %143 : i32
    %204 = arith.index_cast %203 : i32 to index
    %c0_74 = arith.constant 0 : index
    %205 = vector.load %arg4[%204, %c0_74] : memref<56x128xf32, #tpu.memory_space<vmem>>, vector<1x128xf32>
    %c2_75 = arith.constant 2 : index
    %c0_76 = arith.constant 0 : index
    %206 = vector.load %arg16[%c2_75, %c0_76] : memref<8x128xf32, #tpu.memory_space<vmem>>, vector<1x128xf32>
    tpu.vector_store %arg16[%c2_75, %c0_76], %205 {strides = array<i32>} : memref<8x128xf32, #tpu.memory_space<vmem>>, vector<1x128xf32>,
    %207 = arith.index_cast %198 : i32 to index
    %c0_77 = arith.constant 0 : index
    %208 = vector.load %arg5[%207, %c0_77] : memref<16x128xf32, #tpu.memory_space<vmem>>, vector<1x128xf32>
    %c2_78 = arith.constant 2 : index
    %c0_79 = arith.constant 0 : index
    %209 = vector.load %arg17[%c2_78, %c0_79] : memref<8x128xf32, #tpu.memory_space<vmem>>, vector<1x128xf32>
    tpu.vector_store %arg17[%c2_78, %c0_79], %208 {strides = array<i32>} : memref<8x128xf32, #tpu.memory_space<vmem>>, vector<1x128xf32>,
    %c0_80 = arith.constant 0 : index
    %c1_81 = arith.constant 1 : index
    %210 = memref.load %arg0[%c0_80, %c1_81] : memref<2x2xi32, #tpu.memory_space<smem>>
    %c0_82 = arith.constant 0 : index
    %c1_83 = arith.constant 1 : index
    %211 = memref.load %arg1[%c0_82, %c1_83] : memref<2x2xi32, #tpu.memory_space<smem>>
    %212 = arith.index_cast %210 : i32 to index
    %213 = memref.load %arg2[%212] : memref<26xi32, #tpu.memory_space<smem>>
    %214 = arith.index_cast %210 : i32 to index
    %215 = memref.load %arg3[%214] : memref<26xi32, #tpu.memory_space<smem>>
    %216 = arith.index_cast %211 : i32 to index
    %217 = memref.load %arg2[%216] : memref<26xi32, #tpu.memory_space<smem>>
    %218 = arith.index_cast %211 : i32 to index
    %219 = memref.load %arg3[%218] : memref<26xi32, #tpu.memory_space<smem>>
    %220 = arith.subi %215, %217 : i32
    %221 = math.absi %220 : i32
    %222 = arith.subi %213, %219 : i32
    %223 = math.absi %222 : i32
    %224 = arith.minsi %221, %223 : i32
    %c0_i32_84 = arith.constant 0 : i32
    %225 = arith.cmpi sge, %224, %c0_i32_84 : i32
    %226 = arith.extui %225 : i1 to i32
    %c-1_i32_85 = arith.constant -1 : i32
    %227 = arith.addi %c-1_i32_85, %226 : i32
    %c1_i32_86 = arith.constant 1 : i32
    %228 = arith.cmpi sge, %224, %c1_i32_86 : i32
    %229 = arith.extui %228 : i1 to i32
    %230 = arith.addi %227, %229 : i32
    %c2_i32_87 = arith.constant 2 : i32
    %231 = arith.cmpi sge, %224, %c2_i32_87 : i32
    %232 = arith.extui %231 : i1 to i32
    %233 = arith.addi %230, %232 : i32
    %c3_i32_88 = arith.constant 3 : i32
    %234 = arith.cmpi sge, %224, %c3_i32_88 : i32
    %235 = arith.extui %234 : i1 to i32
    %236 = arith.addi %233, %235 : i32
    %c4_i32_89 = arith.constant 4 : i32
    %237 = arith.cmpi sge, %224, %c4_i32_89 : i32
    %238 = arith.extui %237 : i1 to i32
    %239 = arith.addi %236, %238 : i32
    %c5_i32_90 = arith.constant 5 : i32
    %240 = arith.cmpi sge, %224, %c5_i32_90 : i32
    %241 = arith.extui %240 : i1 to i32
    %242 = arith.addi %239, %241 : i32
    %c7_i32_91 = arith.constant 7 : i32
    %243 = arith.cmpi sge, %224, %c7_i32_91 : i32
    %244 = arith.extui %243 : i1 to i32
    %245 = arith.addi %242, %244 : i32
    %c8_i32_92 = arith.constant 8 : i32
    %246 = arith.cmpi sge, %224, %c8_i32_92 : i32
    %247 = arith.extui %246 : i1 to i32
    %248 = arith.addi %245, %247 : i32
    %c15_i32_93 = arith.constant 15 : i32
    %249 = arith.cmpi sge, %224, %c15_i32_93 : i32
    %250 = arith.extui %249 : i1 to i32
    %251 = arith.addi %248, %250 : i32
    %c16_i32_94 = arith.constant 16 : i32
    %252 = arith.cmpi sge, %224, %c16_i32_94 : i32
    %253 = arith.extui %252 : i1 to i32
    %254 = arith.addi %251, %253 : i32
    %c31_i32_95 = arith.constant 31 : i32
    %255 = arith.cmpi sge, %224, %c31_i32_95 : i32
    %256 = arith.extui %255 : i1 to i32
    %257 = arith.addi %254, %256 : i32
    %c32_i32_96 = arith.constant 32 : i32
    %258 = arith.cmpi sge, %224, %c32_i32_96 : i32
    %259 = arith.extui %258 : i1 to i32
    %260 = arith.addi %257, %259 : i32
    %c63_i32_97 = arith.constant 63 : i32
    %261 = arith.cmpi sge, %224, %c63_i32_97 : i32
    %262 = arith.extui %261 : i1 to i32
    %263 = arith.addi %260, %262 : i32
    %c64_i32_98 = arith.constant 64 : i32
    %264 = arith.cmpi sge, %224, %c64_i32_98 : i32
    %265 = arith.extui %264 : i1 to i32
    %266 = arith.addi %263, %265 : i32
    %c0_i32_99 = arith.constant 0 : i32
    %267 = arith.addi %c0_i32_99, %210 : i32
    %268 = arith.index_cast %267 : i32 to index
    %c0_100 = arith.constant 0 : index
    %269 = vector.load %arg4[%268, %c0_100] : memref<56x128xf32, #tpu.memory_space<vmem>>, vector<1x128xf32>
    %c3 = arith.constant 3 : index
    %c0_101 = arith.constant 0 : index
    %270 = vector.load %arg15[%c3, %c0_101] : memref<8x128xf32, #tpu.memory_space<vmem>>, vector<1x128xf32>
    tpu.vector_store %arg15[%c3, %c0_101], %269 {strides = array<i32>} : memref<8x128xf32, #tpu.memory_space<vmem>>, vector<1x128xf32>,
    %c0_i32_102 = arith.constant 0 : i32
    %271 = arith.addi %c0_i32_102, %211 : i32
    %272 = arith.index_cast %271 : i32 to index
    %c0_103 = arith.constant 0 : index
    %273 = vector.load %arg4[%272, %c0_103] : memref<56x128xf32, #tpu.memory_space<vmem>>, vector<1x128xf32>
    %c3_104 = arith.constant 3 : index
    %c0_105 = arith.constant 0 : index
    %274 = vector.load %arg16[%c3_104, %c0_105] : memref<8x128xf32, #tpu.memory_space<vmem>>, vector<1x128xf32>
    tpu.vector_store %arg16[%c3_104, %c0_105], %273 {strides = array<i32>} : memref<8x128xf32, #tpu.memory_space<vmem>>, vector<1x128xf32>,
    %275 = arith.index_cast %266 : i32 to index
    %c0_106 = arith.constant 0 : index
    %276 = vector.load %arg5[%275, %c0_106] : memref<16x128xf32, #tpu.memory_space<vmem>>, vector<1x128xf32>
    %c3_107 = arith.constant 3 : index
    %c0_108 = arith.constant 0 : index
    %277 = vector.load %arg17[%c3_107, %c0_108] : memref<8x128xf32, #tpu.memory_space<vmem>>, vector<1x128xf32>
    tpu.vector_store %arg17[%c3_107, %c0_108], %276 {strides = array<i32>} : memref<8x128xf32, #tpu.memory_space<vmem>>, vector<1x128xf32>,
    %c1_109 = arith.constant 1 : index
    %c0_110 = arith.constant 0 : index
    %278 = memref.load %arg0[%c1_109, %c0_110] : memref<2x2xi32, #tpu.memory_space<smem>>
    %c1_111 = arith.constant 1 : index
    %c0_112 = arith.constant 0 : index
    %279 = memref.load %arg1[%c1_111, %c0_112] : memref<2x2xi32, #tpu.memory_space<smem>>
    %280 = arith.index_cast %278 : i32 to index
    %281 = memref.load %arg2[%280] : memref<26xi32, #tpu.memory_space<smem>>
    %282 = arith.index_cast %278 : i32 to index
    %283 = memref.load %arg3[%282] : memref<26xi32, #tpu.memory_space<smem>>
    %284 = arith.index_cast %279 : i32 to index
    %285 = memref.load %arg2[%284] : memref<26xi32, #tpu.memory_space<smem>>
    %286 = arith.index_cast %279 : i32 to index
    %287 = memref.load %arg3[%286] : memref<26xi32, #tpu.memory_space<smem>>
    %288 = arith.subi %283, %285 : i32
    %289 = math.absi %288 : i32
    %290 = arith.subi %281, %287 : i32
    %291 = math.absi %290 : i32
    %292 = arith.minsi %289, %291 : i32
    %c0_i32_113 = arith.constant 0 : i32
    %293 = arith.cmpi sge, %292, %c0_i32_113 : i32
    %294 = arith.extui %293 : i1 to i32
    %c-1_i32_114 = arith.constant -1 : i32
    %295 = arith.addi %c-1_i32_114, %294 : i32
    %c1_i32_115 = arith.constant 1 : i32
    %296 = arith.cmpi sge, %292, %c1_i32_115 : i32
    %297 = arith.extui %296 : i1 to i32
    %298 = arith.addi %295, %297 : i32
    %c2_i32_116 = arith.constant 2 : i32
    %299 = arith.cmpi sge, %292, %c2_i32_116 : i32
    %300 = arith.extui %299 : i1 to i32
    %301 = arith.addi %298, %300 : i32
    %c3_i32_117 = arith.constant 3 : i32
    %302 = arith.cmpi sge, %292, %c3_i32_117 : i32
    %303 = arith.extui %302 : i1 to i32
    %304 = arith.addi %301, %303 : i32
    %c4_i32_118 = arith.constant 4 : i32
    %305 = arith.cmpi sge, %292, %c4_i32_118 : i32
    %306 = arith.extui %305 : i1 to i32
    %307 = arith.addi %304, %306 : i32
    %c5_i32_119 = arith.constant 5 : i32
    %308 = arith.cmpi sge, %292, %c5_i32_119 : i32
    %309 = arith.extui %308 : i1 to i32
    %310 = arith.addi %307, %309 : i32
    %c7_i32_120 = arith.constant 7 : i32
    %311 = arith.cmpi sge, %292, %c7_i32_120 : i32
    %312 = arith.extui %311 : i1 to i32
    %313 = arith.addi %310, %312 : i32
    %c8_i32_121 = arith.constant 8 : i32
    %314 = arith.cmpi sge, %292, %c8_i32_121 : i32
    %315 = arith.extui %314 : i1 to i32
    %316 = arith.addi %313, %315 : i32
    %c15_i32_122 = arith.constant 15 : i32
    %317 = arith.cmpi sge, %292, %c15_i32_122 : i32
    %318 = arith.extui %317 : i1 to i32
    %319 = arith.addi %316, %318 : i32
    %c16_i32_123 = arith.constant 16 : i32
    %320 = arith.cmpi sge, %292, %c16_i32_123 : i32
    %321 = arith.extui %320 : i1 to i32
    %322 = arith.addi %319, %321 : i32
    %c31_i32_124 = arith.constant 31 : i32
    %323 = arith.cmpi sge, %292, %c31_i32_124 : i32
    %324 = arith.extui %323 : i1 to i32
    %325 = arith.addi %322, %324 : i32
    %c32_i32_125 = arith.constant 32 : i32
    %326 = arith.cmpi sge, %292, %c32_i32_125 : i32
    %327 = arith.extui %326 : i1 to i32
    %328 = arith.addi %325, %327 : i32
    %c63_i32_126 = arith.constant 63 : i32
    %329 = arith.cmpi sge, %292, %c63_i32_126 : i32
    %330 = arith.extui %329 : i1 to i32
    %331 = arith.addi %328, %330 : i32
    %c64_i32_127 = arith.constant 64 : i32
    %332 = arith.cmpi sge, %292, %c64_i32_127 : i32
    %333 = arith.extui %332 : i1 to i32
    %334 = arith.addi %331, %333 : i32
    %c26_i32 = arith.constant 26 : i32
    %335 = arith.addi %c26_i32, %278 : i32
    %336 = arith.index_cast %335 : i32 to index
    %c0_128 = arith.constant 0 : index
    %337 = vector.load %arg4[%336, %c0_128] : memref<56x128xf32, #tpu.memory_space<vmem>>, vector<1x128xf32>
    %c4 = arith.constant 4 : index
    %c0_129 = arith.constant 0 : index
    %338 = vector.load %arg15[%c4, %c0_129] : memref<8x128xf32, #tpu.memory_space<vmem>>, vector<1x128xf32>
    tpu.vector_store %arg15[%c4, %c0_129], %337 {strides = array<i32>} : memref<8x128xf32, #tpu.memory_space<vmem>>, vector<1x128xf32>,
    %c26_i32_130 = arith.constant 26 : i32
    %339 = arith.addi %c26_i32_130, %279 : i32
    %340 = arith.index_cast %339 : i32 to index
    %c0_131 = arith.constant 0 : index
    %341 = vector.load %arg4[%340, %c0_131] : memref<56x128xf32, #tpu.memory_space<vmem>>, vector<1x128xf32>
    %c4_132 = arith.constant 4 : index
    %c0_133 = arith.constant 0 : index
    %342 = vector.load %arg16[%c4_132, %c0_133] : memref<8x128xf32, #tpu.memory_space<vmem>>, vector<1x128xf32>
    tpu.vector_store %arg16[%c4_132, %c0_133], %341 {strides = array<i32>} : memref<8x128xf32, #tpu.memory_space<vmem>>, vector<1x128xf32>,
    %343 = arith.index_cast %334 : i32 to index
    %c0_134 = arith.constant 0 : index
    %344 = vector.load %arg5[%343, %c0_134] : memref<16x128xf32, #tpu.memory_space<vmem>>, vector<1x128xf32>
    %c4_135 = arith.constant 4 : index
    %c0_136 = arith.constant 0 : index
    %345 = vector.load %arg17[%c4_135, %c0_136] : memref<8x128xf32, #tpu.memory_space<vmem>>, vector<1x128xf32>
    tpu.vector_store %arg17[%c4_135, %c0_136], %344 {strides = array<i32>} : memref<8x128xf32, #tpu.memory_space<vmem>>, vector<1x128xf32>,
    %c1_137 = arith.constant 1 : index
    %c0_138 = arith.constant 0 : index
    %346 = memref.load %arg0[%c1_137, %c0_138] : memref<2x2xi32, #tpu.memory_space<smem>>
    %c1_139 = arith.constant 1 : index
    %c1_140 = arith.constant 1 : index
    %347 = memref.load %arg1[%c1_139, %c1_140] : memref<2x2xi32, #tpu.memory_space<smem>>
    %348 = arith.index_cast %346 : i32 to index
    %349 = memref.load %arg2[%348] : memref<26xi32, #tpu.memory_space<smem>>
    %350 = arith.index_cast %346 : i32 to index
    %351 = memref.load %arg3[%350] : memref<26xi32, #tpu.memory_space<smem>>
    %352 = arith.index_cast %347 : i32 to index
    %353 = memref.load %arg2[%352] : memref<26xi32, #tpu.memory_space<smem>>
    %354 = arith.index_cast %347 : i32 to index
    %355 = memref.load %arg3[%354] : memref<26xi32, #tpu.memory_space<smem>>
    %356 = arith.subi %351, %353 : i32
    %357 = math.absi %356 : i32
    %358 = arith.subi %349, %355 : i32
    %359 = math.absi %358 : i32
    %360 = arith.minsi %357, %359 : i32
    %c0_i32_141 = arith.constant 0 : i32
    %361 = arith.cmpi sge, %360, %c0_i32_141 : i32
    %362 = arith.extui %361 : i1 to i32
    %c-1_i32_142 = arith.constant -1 : i32
    %363 = arith.addi %c-1_i32_142, %362 : i32
    %c1_i32_143 = arith.constant 1 : i32
    %364 = arith.cmpi sge, %360, %c1_i32_143 : i32
    %365 = arith.extui %364 : i1 to i32
    %366 = arith.addi %363, %365 : i32
    %c2_i32_144 = arith.constant 2 : i32
    %367 = arith.cmpi sge, %360, %c2_i32_144 : i32
    %368 = arith.extui %367 : i1 to i32
    %369 = arith.addi %366, %368 : i32
    %c3_i32_145 = arith.constant 3 : i32
    %370 = arith.cmpi sge, %360, %c3_i32_145 : i32
    %371 = arith.extui %370 : i1 to i32
    %372 = arith.addi %369, %371 : i32
    %c4_i32_146 = arith.constant 4 : i32
    %373 = arith.cmpi sge, %360, %c4_i32_146 : i32
    %374 = arith.extui %373 : i1 to i32
    %375 = arith.addi %372, %374 : i32
    %c5_i32_147 = arith.constant 5 : i32
    %376 = arith.cmpi sge, %360, %c5_i32_147 : i32
    %377 = arith.extui %376 : i1 to i32
    %378 = arith.addi %375, %377 : i32
    %c7_i32_148 = arith.constant 7 : i32
    %379 = arith.cmpi sge, %360, %c7_i32_148 : i32
    %380 = arith.extui %379 : i1 to i32
    %381 = arith.addi %378, %380 : i32
    %c8_i32_149 = arith.constant 8 : i32
    %382 = arith.cmpi sge, %360, %c8_i32_149 : i32
    %383 = arith.extui %382 : i1 to i32
    %384 = arith.addi %381, %383 : i32
    %c15_i32_150 = arith.constant 15 : i32
    %385 = arith.cmpi sge, %360, %c15_i32_150 : i32
    %386 = arith.extui %385 : i1 to i32
    %387 = arith.addi %384, %386 : i32
    %c16_i32_151 = arith.constant 16 : i32
    %388 = arith.cmpi sge, %360, %c16_i32_151 : i32
    %389 = arith.extui %388 : i1 to i32
    %390 = arith.addi %387, %389 : i32
    %c31_i32_152 = arith.constant 31 : i32
    %391 = arith.cmpi sge, %360, %c31_i32_152 : i32
    %392 = arith.extui %391 : i1 to i32
    %393 = arith.addi %390, %392 : i32
    %c32_i32_153 = arith.constant 32 : i32
    %394 = arith.cmpi sge, %360, %c32_i32_153 : i32
    %395 = arith.extui %394 : i1 to i32
    %396 = arith.addi %393, %395 : i32
    %c63_i32_154 = arith.constant 63 : i32
    %397 = arith.cmpi sge, %360, %c63_i32_154 : i32
    %398 = arith.extui %397 : i1 to i32
    %399 = arith.addi %396, %398 : i32
    %c64_i32_155 = arith.constant 64 : i32
    %400 = arith.cmpi sge, %360, %c64_i32_155 : i32
    %401 = arith.extui %400 : i1 to i32
    %402 = arith.addi %399, %401 : i32
    %c26_i32_156 = arith.constant 26 : i32
    %403 = arith.addi %c26_i32_156, %346 : i32
    %404 = arith.index_cast %403 : i32 to index
    %c0_157 = arith.constant 0 : index
    %405 = vector.load %arg4[%404, %c0_157] : memref<56x128xf32, #tpu.memory_space<vmem>>, vector<1x128xf32>
    %c5 = arith.constant 5 : index
    %c0_158 = arith.constant 0 : index
    %406 = vector.load %arg15[%c5, %c0_158] : memref<8x128xf32, #tpu.memory_space<vmem>>, vector<1x128xf32>
    tpu.vector_store %arg15[%c5, %c0_158], %405 {strides = array<i32>} : memref<8x128xf32, #tpu.memory_space<vmem>>, vector<1x128xf32>,
    %c26_i32_159 = arith.constant 26 : i32
    %407 = arith.addi %c26_i32_159, %347 : i32
    %408 = arith.index_cast %407 : i32 to index
    %c0_160 = arith.constant 0 : index
    %409 = vector.load %arg4[%408, %c0_160] : memref<56x128xf32, #tpu.memory_space<vmem>>, vector<1x128xf32>
    %c5_161 = arith.constant 5 : index
    %c0_162 = arith.constant 0 : index
    %410 = vector.load %arg16[%c5_161, %c0_162] : memref<8x128xf32, #tpu.memory_space<vmem>>, vector<1x128xf32>
    tpu.vector_store %arg16[%c5_161, %c0_162], %409 {strides = array<i32>} : memref<8x128xf32, #tpu.memory_space<vmem>>, vector<1x128xf32>,
    %411 = arith.index_cast %402 : i32 to index
    %c0_163 = arith.constant 0 : index
    %412 = vector.load %arg5[%411, %c0_163] : memref<16x128xf32, #tpu.memory_space<vmem>>, vector<1x128xf32>
    %c5_164 = arith.constant 5 : index
    %c0_165 = arith.constant 0 : index
    %413 = vector.load %arg17[%c5_164, %c0_165] : memref<8x128xf32, #tpu.memory_space<vmem>>, vector<1x128xf32>
    tpu.vector_store %arg17[%c5_164, %c0_165], %412 {strides = array<i32>} : memref<8x128xf32, #tpu.memory_space<vmem>>, vector<1x128xf32>,
    %c1_166 = arith.constant 1 : index
    %c1_167 = arith.constant 1 : index
    %414 = memref.load %arg0[%c1_166, %c1_167] : memref<2x2xi32, #tpu.memory_space<smem>>
    %c1_168 = arith.constant 1 : index
    %c0_169 = arith.constant 0 : index
    %415 = memref.load %arg1[%c1_168, %c0_169] : memref<2x2xi32, #tpu.memory_space<smem>>
    %416 = arith.index_cast %414 : i32 to index
    %417 = memref.load %arg2[%416] : memref<26xi32, #tpu.memory_space<smem>>
    %418 = arith.index_cast %414 : i32 to index
    %419 = memref.load %arg3[%418] : memref<26xi32, #tpu.memory_space<smem>>
    %420 = arith.index_cast %415 : i32 to index
    %421 = memref.load %arg2[%420] : memref<26xi32, #tpu.memory_space<smem>>
    %422 = arith.index_cast %415 : i32 to index
    %423 = memref.load %arg3[%422] : memref<26xi32, #tpu.memory_space<smem>>
    %424 = arith.subi %419, %421 : i32
    %425 = math.absi %424 : i32
    %426 = arith.subi %417, %423 : i32
    %427 = math.absi %426 : i32
    %428 = arith.minsi %425, %427 : i32
    %c0_i32_170 = arith.constant 0 : i32
    %429 = arith.cmpi sge, %428, %c0_i32_170 : i32
    %430 = arith.extui %429 : i1 to i32
    %c-1_i32_171 = arith.constant -1 : i32
    %431 = arith.addi %c-1_i32_171, %430 : i32
    %c1_i32_172 = arith.constant 1 : i32
    %432 = arith.cmpi sge, %428, %c1_i32_172 : i32
    %433 = arith.extui %432 : i1 to i32
    %434 = arith.addi %431, %433 : i32
    %c2_i32_173 = arith.constant 2 : i32
    %435 = arith.cmpi sge, %428, %c2_i32_173 : i32
    %436 = arith.extui %435 : i1 to i32
    %437 = arith.addi %434, %436 : i32
    %c3_i32_174 = arith.constant 3 : i32
    %438 = arith.cmpi sge, %428, %c3_i32_174 : i32
    %439 = arith.extui %438 : i1 to i32
    %440 = arith.addi %437, %439 : i32
    %c4_i32_175 = arith.constant 4 : i32
    %441 = arith.cmpi sge, %428, %c4_i32_175 : i32
    %442 = arith.extui %441 : i1 to i32
    %443 = arith.addi %440, %442 : i32
    %c5_i32_176 = arith.constant 5 : i32
    %444 = arith.cmpi sge, %428, %c5_i32_176 : i32
    %445 = arith.extui %444 : i1 to i32
    %446 = arith.addi %443, %445 : i32
    %c7_i32_177 = arith.constant 7 : i32
    %447 = arith.cmpi sge, %428, %c7_i32_177 : i32
    %448 = arith.extui %447 : i1 to i32
    %449 = arith.addi %446, %448 : i32
    %c8_i32_178 = arith.constant 8 : i32
    %450 = arith.cmpi sge, %428, %c8_i32_178 : i32
    %451 = arith.extui %450 : i1 to i32
    %452 = arith.addi %449, %451 : i32
    %c15_i32_179 = arith.constant 15 : i32
    %453 = arith.cmpi sge, %428, %c15_i32_179 : i32
    %454 = arith.extui %453 : i1 to i32
    %455 = arith.addi %452, %454 : i32
    %c16_i32_180 = arith.constant 16 : i32
    %456 = arith.cmpi sge, %428, %c16_i32_180 : i32
    %457 = arith.extui %456 : i1 to i32
    %458 = arith.addi %455, %457 : i32
    %c31_i32_181 = arith.constant 31 : i32
    %459 = arith.cmpi sge, %428, %c31_i32_181 : i32
    %460 = arith.extui %459 : i1 to i32
    %461 = arith.addi %458, %460 : i32
    %c32_i32_182 = arith.constant 32 : i32
    %462 = arith.cmpi sge, %428, %c32_i32_182 : i32
    %463 = arith.extui %462 : i1 to i32
    %464 = arith.addi %461, %463 : i32
    %c63_i32_183 = arith.constant 63 : i32
    %465 = arith.cmpi sge, %428, %c63_i32_183 : i32
    %466 = arith.extui %465 : i1 to i32
    %467 = arith.addi %464, %466 : i32
    %c64_i32_184 = arith.constant 64 : i32
    %468 = arith.cmpi sge, %428, %c64_i32_184 : i32
    %469 = arith.extui %468 : i1 to i32
    %470 = arith.addi %467, %469 : i32
    %c26_i32_185 = arith.constant 26 : i32
    %471 = arith.addi %c26_i32_185, %414 : i32
    %472 = arith.index_cast %471 : i32 to index
    %c0_186 = arith.constant 0 : index
    %473 = vector.load %arg4[%472, %c0_186] : memref<56x128xf32, #tpu.memory_space<vmem>>, vector<1x128xf32>
    %c6 = arith.constant 6 : index
    %c0_187 = arith.constant 0 : index
    %474 = vector.load %arg15[%c6, %c0_187] : memref<8x128xf32, #tpu.memory_space<vmem>>, vector<1x128xf32>
    tpu.vector_store %arg15[%c6, %c0_187], %473 {strides = array<i32>} : memref<8x128xf32, #tpu.memory_space<vmem>>, vector<1x128xf32>,
    %c26_i32_188 = arith.constant 26 : i32
    %475 = arith.addi %c26_i32_188, %415 : i32
    %476 = arith.index_cast %475 : i32 to index
    %c0_189 = arith.constant 0 : index
    %477 = vector.load %arg4[%476, %c0_189] : memref<56x128xf32, #tpu.memory_space<vmem>>, vector<1x128xf32>
    %c6_190 = arith.constant 6 : index
    %c0_191 = arith.constant 0 : index
    %478 = vector.load %arg16[%c6_190, %c0_191] : memref<8x128xf32, #tpu.memory_space<vmem>>, vector<1x128xf32>
    tpu.vector_store %arg16[%c6_190, %c0_191], %477 {strides = array<i32>} : memref<8x128xf32, #tpu.memory_space<vmem>>, vector<1x128xf32>,
    %479 = arith.index_cast %470 : i32 to index
    %c0_192 = arith.constant 0 : index
    %480 = vector.load %arg5[%479, %c0_192] : memref<16x128xf32, #tpu.memory_space<vmem>>, vector<1x128xf32>
    %c6_193 = arith.constant 6 : index
    %c0_194 = arith.constant 0 : index
    %481 = vector.load %arg17[%c6_193, %c0_194] : memref<8x128xf32, #tpu.memory_space<vmem>>, vector<1x128xf32>
    tpu.vector_store %arg17[%c6_193, %c0_194], %480 {strides = array<i32>} : memref<8x128xf32, #tpu.memory_space<vmem>>, vector<1x128xf32>,
    %c1_195 = arith.constant 1 : index
    %c1_196 = arith.constant 1 : index
    %482 = memref.load %arg0[%c1_195, %c1_196] : memref<2x2xi32, #tpu.memory_space<smem>>
    %c1_197 = arith.constant 1 : index
    %c1_198 = arith.constant 1 : index
    %483 = memref.load %arg1[%c1_197, %c1_198] : memref<2x2xi32, #tpu.memory_space<smem>>
    %484 = arith.index_cast %482 : i32 to index
    %485 = memref.load %arg2[%484] : memref<26xi32, #tpu.memory_space<smem>>
    %486 = arith.index_cast %482 : i32 to index
    %487 = memref.load %arg3[%486] : memref<26xi32, #tpu.memory_space<smem>>
    %488 = arith.index_cast %483 : i32 to index
    %489 = memref.load %arg2[%488] : memref<26xi32, #tpu.memory_space<smem>>
    %490 = arith.index_cast %483 : i32 to index
    %491 = memref.load %arg3[%490] : memref<26xi32, #tpu.memory_space<smem>>
    %492 = arith.subi %487, %489 : i32
    %493 = math.absi %492 : i32
    %494 = arith.subi %485, %491 : i32
    %495 = math.absi %494 : i32
    %496 = arith.minsi %493, %495 : i32
    %c0_i32_199 = arith.constant 0 : i32
    %497 = arith.cmpi sge, %496, %c0_i32_199 : i32
    %498 = arith.extui %497 : i1 to i32
    %c-1_i32_200 = arith.constant -1 : i32
    %499 = arith.addi %c-1_i32_200, %498 : i32
    %c1_i32_201 = arith.constant 1 : i32
    %500 = arith.cmpi sge, %496, %c1_i32_201 : i32
    %501 = arith.extui %500 : i1 to i32
    %502 = arith.addi %499, %501 : i32
    %c2_i32_202 = arith.constant 2 : i32
    %503 = arith.cmpi sge, %496, %c2_i32_202 : i32
    %504 = arith.extui %503 : i1 to i32
    %505 = arith.addi %502, %504 : i32
    %c3_i32_203 = arith.constant 3 : i32
    %506 = arith.cmpi sge, %496, %c3_i32_203 : i32
    %507 = arith.extui %506 : i1 to i32
    %508 = arith.addi %505, %507 : i32
    %c4_i32_204 = arith.constant 4 : i32
    %509 = arith.cmpi sge, %496, %c4_i32_204 : i32
    %510 = arith.extui %509 : i1 to i32
    %511 = arith.addi %508, %510 : i32
    %c5_i32_205 = arith.constant 5 : i32
    %512 = arith.cmpi sge, %496, %c5_i32_205 : i32
    %513 = arith.extui %512 : i1 to i32
    %514 = arith.addi %511, %513 : i32
    %c7_i32_206 = arith.constant 7 : i32
    %515 = arith.cmpi sge, %496, %c7_i32_206 : i32
    %516 = arith.extui %515 : i1 to i32
    %517 = arith.addi %514, %516 : i32
    %c8_i32_207 = arith.constant 8 : i32
    %518 = arith.cmpi sge, %496, %c8_i32_207 : i32
    %519 = arith.extui %518 : i1 to i32
    %520 = arith.addi %517, %519 : i32
    %c15_i32_208 = arith.constant 15 : i32
    %521 = arith.cmpi sge, %496, %c15_i32_208 : i32
    %522 = arith.extui %521 : i1 to i32
    %523 = arith.addi %520, %522 : i32
    %c16_i32_209 = arith.constant 16 : i32
    %524 = arith.cmpi sge, %496, %c16_i32_209 : i32
    %525 = arith.extui %524 : i1 to i32
    %526 = arith.addi %523, %525 : i32
    %c31_i32_210 = arith.constant 31 : i32
    %527 = arith.cmpi sge, %496, %c31_i32_210 : i32
    %528 = arith.extui %527 : i1 to i32
    %529 = arith.addi %526, %528 : i32
    %c32_i32_211 = arith.constant 32 : i32
    %530 = arith.cmpi sge, %496, %c32_i32_211 : i32
    %531 = arith.extui %530 : i1 to i32
    %532 = arith.addi %529, %531 : i32
    %c63_i32_212 = arith.constant 63 : i32
    %533 = arith.cmpi sge, %496, %c63_i32_212 : i32
    %534 = arith.extui %533 : i1 to i32
    %535 = arith.addi %532, %534 : i32
    %c64_i32_213 = arith.constant 64 : i32
    %536 = arith.cmpi sge, %496, %c64_i32_213 : i32
    %537 = arith.extui %536 : i1 to i32
    %538 = arith.addi %535, %537 : i32
    %c26_i32_214 = arith.constant 26 : i32
    %539 = arith.addi %c26_i32_214, %482 : i32
    %540 = arith.index_cast %539 : i32 to index
    %c0_215 = arith.constant 0 : index
    %541 = vector.load %arg4[%540, %c0_215] : memref<56x128xf32, #tpu.memory_space<vmem>>, vector<1x128xf32>
    %c7 = arith.constant 7 : index
    %c0_216 = arith.constant 0 : index
    %542 = vector.load %arg15[%c7, %c0_216] : memref<8x128xf32, #tpu.memory_space<vmem>>, vector<1x128xf32>
    tpu.vector_store %arg15[%c7, %c0_216], %541 {strides = array<i32>} : memref<8x128xf32, #tpu.memory_space<vmem>>, vector<1x128xf32>,
    %c26_i32_217 = arith.constant 26 : i32
    %543 = arith.addi %c26_i32_217, %483 : i32
    %544 = arith.index_cast %543 : i32 to index
    %c0_218 = arith.constant 0 : index
    %545 = vector.load %arg4[%544, %c0_218] : memref<56x128xf32, #tpu.memory_space<vmem>>, vector<1x128xf32>
    %c7_219 = arith.constant 7 : index
    %c0_220 = arith.constant 0 : index
    %546 = vector.load %arg16[%c7_219, %c0_220] : memref<8x128xf32, #tpu.memory_space<vmem>>, vector<1x128xf32>
    tpu.vector_store %arg16[%c7_219, %c0_220], %545 {strides = array<i32>} : memref<8x128xf32, #tpu.memory_space<vmem>>, vector<1x128xf32>,
    %547 = arith.index_cast %538 : i32 to index
    %c0_221 = arith.constant 0 : index
    %548 = vector.load %arg5[%547, %c0_221] : memref<16x128xf32, #tpu.memory_space<vmem>>, vector<1x128xf32>
    %c7_222 = arith.constant 7 : index
    %c0_223 = arith.constant 0 : index
    %549 = vector.load %arg17[%c7_222, %c0_223] : memref<8x128xf32, #tpu.memory_space<vmem>>, vector<1x128xf32>
    tpu.vector_store %arg17[%c7_222, %c0_223], %548 {strides = array<i32>} : memref<8x128xf32, #tpu.memory_space<vmem>>, vector<1x128xf32>,
    %c0_224 = arith.constant 0 : index
    %c0_225 = arith.constant 0 : index
    %550 = vector.load %arg15[%c0_224, %c0_225] : memref<8x128xf32, #tpu.memory_space<vmem>>, vector<8x128xf32>
    %c0_226 = arith.constant 0 : index
    %c0_227 = arith.constant 0 : index
    %551 = vector.load %arg6[%c0_226, %c0_227] : memref<128x128xf32, #tpu.memory_space<vmem>>, vector<128x128xf32>
    %cst_228 = arith.constant dense<0.000000e+00> : vector<8x128xf32>
    %552 = tpu.matmul %550, %551, %cst_228 {dimension_numbers = #tpu.dot_dimension_numbers<[1], [0], [0], [1], [0, 0, 1, 1], [], []>} : vector<8x128xf32>, vector<128x128xf32>, vector<8x128xf32> -> vector<8x128xf32>
    %c0_229 = arith.constant 0 : index
    %c0_230 = arith.constant 0 : index
    %553 = vector.load %arg16[%c0_229, %c0_230] : memref<8x128xf32, #tpu.memory_space<vmem>>, vector<8x128xf32>
    %c0_231 = arith.constant 0 : index
    %c0_232 = arith.constant 0 : index
    %554 = vector.load %arg7[%c0_231, %c0_232] : memref<128x128xf32, #tpu.memory_space<vmem>>, vector<128x128xf32>
    %cst_233 = arith.constant dense<0.000000e+00> : vector<8x128xf32>
    %555 = tpu.matmul %553, %554, %cst_233 {dimension_numbers = #tpu.dot_dimension_numbers<[1], [0], [0], [1], [0, 0, 1, 1], [], []>} : vector<8x128xf32>, vector<128x128xf32>, vector<8x128xf32> -> vector<8x128xf32>
    %556 = arith.addf %552, %555 : vector<8x128xf32>
    %c0_234 = arith.constant 0 : index
    %c0_235 = arith.constant 0 : index
    %557 = vector.load %arg17[%c0_234, %c0_235] : memref<8x128xf32, #tpu.memory_space<vmem>>, vector<8x128xf32>
    %c0_236 = arith.constant 0 : index
    %c0_237 = arith.constant 0 : index
    %558 = vector.load %arg8[%c0_236, %c0_237] : memref<128x128xf32, #tpu.memory_space<vmem>>, vector<128x128xf32>
    %cst_238 = arith.constant dense<0.000000e+00> : vector<8x128xf32>
    %559 = tpu.matmul %557, %558, %cst_238 {dimension_numbers = #tpu.dot_dimension_numbers<[1], [0], [0], [1], [0, 0, 1, 1], [], []>} : vector<8x128xf32>, vector<128x128xf32>, vector<8x128xf32> -> vector<8x128xf32>
    %560 = arith.addf %556, %559 : vector<8x128xf32>
    %c0_239 = arith.constant 0 : index
    %c0_240 = arith.constant 0 : index
    %561 = vector.load %arg9[%c0_239, %c0_240] : memref<1x128xf32, #tpu.memory_space<vmem>>, vector<1x128xf32>
    %562 = vector.broadcast %561 : vector<1x128xf32> to vector<8x128xf32>
    %563 = arith.addf %560, %562 : vector<8x128xf32>
    %cst_241 = arith.constant 0.000000e+00 : f32
    %564 = vector.broadcast %cst_241 : f32 to vector<8x128xf32>
    %565 = arith.maximumf %563, %564 : vector<8x128xf32>
    %c0_242 = arith.constant 0 : index
    %c0_243 = arith.constant 0 : index
    %566 = vector.load %arg10[%c0_242, %c0_243] : memref<128x128xf32, #tpu.memory_space<vmem>>, vector<128x128xf32>
    %cst_244 = arith.constant dense<0.000000e+00> : vector<8x128xf32>
    %567 = tpu.matmul %565, %566, %cst_244 {dimension_numbers = #tpu.dot_dimension_numbers<[1], [0], [0], [1], [0, 0, 1, 1], [], []>} : vector<8x128xf32>, vector<128x128xf32>, vector<8x128xf32> -> vector<8x128xf32>
    %c0_245 = arith.constant 0 : index
    %c0_246 = arith.constant 0 : index
    %568 = vector.load %arg11[%c0_245, %c0_246] : memref<1x128xf32, #tpu.memory_space<vmem>>, vector<1x128xf32>
    %569 = vector.broadcast %568 : vector<1x128xf32> to vector<8x128xf32>
    %570 = arith.addf %567, %569 : vector<8x128xf32>
    %cst_247 = arith.constant 0.000000e+00 : f32
    %571 = vector.broadcast %cst_247 : f32 to vector<8x128xf32>
    %572 = arith.maximumf %570, %571 : vector<8x128xf32>
    %c0_248 = arith.constant 0 : index
    %c0_249 = arith.constant 0 : index
    %573 = vector.load %arg12[%c0_248, %c0_249] : memref<128x128xf32, #tpu.memory_space<vmem>>, vector<128x128xf32>
    %cst_250 = arith.constant dense<0.000000e+00> : vector<8x128xf32>
    %574 = tpu.matmul %572, %573, %cst_250 {dimension_numbers = #tpu.dot_dimension_numbers<[1], [0], [0], [1], [0, 0, 1, 1], [], []>} : vector<8x128xf32>, vector<128x128xf32>, vector<8x128xf32> -> vector<8x128xf32>
    %c0_251 = arith.constant 0 : index
    %c0_252 = arith.constant 0 : index
    %575 = vector.load %arg13[%c0_251, %c0_252] : memref<1x128xf32, #tpu.memory_space<vmem>>, vector<1x128xf32>
    %576 = vector.broadcast %575 : vector<1x128xf32> to vector<8x128xf32>
    %577 = arith.addf %574, %576 : vector<8x128xf32>
    %cst_253 = arith.constant dense<0xFF800000> : vector<8xf32>
    %578 = vector.multi_reduction <maximumf>, %577, %cst_253 [1] : vector<8x128xf32> to vector<8xf32>
    %579 = vector.shape_cast %578 : vector<8xf32> to vector<8x1xf32>
    %580 = vector.broadcast %579 : vector<8x1xf32> to vector<8x128xf32>
    %581 = arith.subf %577, %580 : vector<8x128xf32>
    %582 = math.exp %581 : vector<8x128xf32>
    %cst_254 = arith.constant dense<0.000000e+00> : vector<8xf32>
    %583 = vector.multi_reduction <add>, %582, %cst_254 [1] : vector<8x128xf32> to vector<8xf32>
    %584 = vector.shape_cast %583 : vector<8xf32> to vector<8x1xf32>
    %585 = vector.broadcast %584 : vector<8x1xf32> to vector<8x128xf32>
    %586 = arith.divf %582, %585 : vector<8x128xf32>
    %c0_255 = arith.constant 0 : index
    %c0_256 = arith.constant 0 : index
    %587 = vector.load %arg14[%c0_255, %c0_256] : memref<8x128xf32, #tpu.memory_space<vmem>>, vector<8x128xf32>
    tpu.vector_store %arg14[%c0_255, %c0_256], %586 {strides = array<i32>} : memref<8x128xf32, #tpu.memory_space<vmem>>, vector<8x128xf32>,
    return
  }
}

</mosaic_0001>

<bundles_post_ra>
// kernel: forward.2
= control target key start
LH: loop header
LB: loop body
LE: loop exit
PB: predicated region body
PF: predicated region fallthrough
CT: control target
= control target key end

     0   :  { %20 = vsyncpa [#allocation3], 0  ;;  %s2459_s0 = inlined_call_operand.vmem [shape: f32[16,128], index: 0, kind: input, shape index: {}]   ;;  %s2460_s1 = inlined_call_operand.vmem [shape: f32[128,128], index: 1, kind: input, shape index: {}]   ;;  %s2461_s2 = inlined_call_operand.hbm [shape: f32[1,128], index: 2, kind: input, shape index: {}]   ;;  %s2462_s3 = inlined_call_operand.vmem [shape: f32[56,16], index: 3, kind: input, shape index: {}]   ;;  %s2463_s4 = inlined_call_operand.vmem [shape: f32[56,16], index: 4, kind: input, shape index: {}]   ;;  %s2464_s5 = inlined_call_operand.vmem [shape: f32[128,128], index: 5, kind: input, shape index: {}]   ;;  %s2465_s6 = inlined_call_operand.hbm [shape: f32[56,128], index: 6, kind: input, shape index: {}]   ;;  %s2466_s7 = inlined_call_operand.vmem [shape: f32[128,128], index: 7, kind: input, shape index: {}]   ;;  %s2467_s8 = inlined_call_operand.hbm [shape: f32[1,128], index: 8, kind: input, shape index: {}]   ;;  %s2468_s9 = inlined_call_operand.hbm [shape: f32[128,128], index: 9, kind: input, shape index: {}]   ;;  %s2469_s10 = inlined_call_operand.hbm [shape: f32[1,128], index: 10, kind: input, shape index: {}]   ;;  %s2470_s11 = inlined_call_operand.hbm [shape: f32[128,128], index: 11, kind: input, shape index: {}]   ;;  %s2471_s12 = inlined_call_operand.hbm [shape: f32[1,128], index: 12, kind: input, shape index: {}]   ;;  %s2472_s13 = inlined_call_operand.vmem [shape: f32[56,128], index: 13, kind: output, shape index: {0}]   ;;  %s2473_s14 = inlined_call_operand.vmem [shape: f32[56,128], index: 14, kind: output, shape index: {1}]  }
   0x1   :  { %21 = vsyncpa [#allocation5], 0 }
   0x2   :  { %22 = vsyncpa [#allocation8], 0 }
   0x3   :  { %23 = vsyncpa [#allocation11], 0  ;;  %s1893_s29 = smov [#allocation4]   ;;  %s1731_s17 = scalar_lea.hbm %s2465_s6, 896 }
   0x4   :  { %s49_s30 = sshll.u32 %s1893_s29, 4  ;;  %p1732_p0 = scmp.ne.s32.totalorder %s2465_s6, %s1731_s17  ;;  %s50_s30 = int_to_ptr.vmem [resolvable:$true] %s49_s30 }
   0x5   :  { %p1735_p1 = scmp.lt.u32.totalorder %s1731_s17, %s2465_s6 }
   0x7   :  { %p1737_p2 = pnand %p1735_p1, %p1732_p0 }
   0x9   :  { %1740 = shalt.err (!%p1737_p2)
}
   0xa   :  { %s1741_s22 = scalar_lea.vmem %s50_s30, 896  ;;  %p1746_p4 = scmp.lt.s32.totalorder %s50_s30, %s50_s30 }
   0xb   :  { %p1742_p3 = scmp.ne.s32.totalorder %s50_s30, %s1741_s22  ;;  %p1747_p5 = scmp.lt.s32.totalorder %s1741_s22, %s1741_s22 }
   0xd   :  { %p1748_p6 = por %p1747_p5, %p1746_p4 }
   0xf   :  { %p1749_p7 = pnand %p1748_p6, %p1742_p3 }
  0x11   :  { %1752 = shalt.err (!%p1749_p7)
}
  0x12   :  { %s1894_s23 = smov 128   ;;  %s1895_s24 = smov 8  }
  0x13   :  { %55 = dma.hbm_to_vmem [thread:$0]  %s2465_s6, 896, %s50_s30, [#allocation5], %s1894_s23, %s1894_s23, %s1895_s24  }
  0x14   :  { %s1896_s27 = smov [#allocation7]   ;;  %s1897_s29 = smov [#allocation10]  }
  0x15   :  { %s73_s28 = sshll.u32 %s1896_s27, 4  ;;  %s95_s15 = sshll.u32 %s1897_s29, 4  ;;  %s74_s28 = int_to_ptr.vmem [resolvable:$true] %s73_s28  ;;  %s96_s15 = int_to_ptr.vmem [resolvable:$true] %s95_s15 }
  0x16   :  { %s1753_s18 = scalar_lea.hbm %s2468_s9, 2048 }
  0x17   :  { %p1754_p8 = scmp.ne.s32.totalorder %s2468_s9, %s1753_s18  ;;  %p1757_p9 = scmp.lt.u32.totalorder %s1753_s18, %s2468_s9 }
  0x19   :  { %p1759_p10 = pnand %p1757_p9, %p1754_p8 }
  0x1b   :  { %1762 = shalt.err (!%p1759_p10)
}
  0x1c   :  { %s1763_s6 = scalar_lea.vmem %s74_s28, 2048  ;;  %p1768_p12 = scmp.lt.s32.totalorder %s74_s28, %s74_s28 }
  0x1d   :  { %p1764_p11 = scmp.ne.s32.totalorder %s74_s28, %s1763_s6  ;;  %p1769_p13 = scmp.lt.s32.totalorder %s1763_s6, %s1763_s6 }
  0x1f   :  { %p1770_p0 = por %p1769_p13, %p1768_p12 }
  0x21   :  { %p1771_p1 = pnand %p1770_p0, %p1764_p11 }
  0x23   :  { %1774 = shalt.err (!%p1771_p1)
}
  0x24   :  { %79 = dma.hbm_to_vmem [thread:$0]  %s2468_s9, 2048, %s74_s28, [#allocation8], %s1894_s23, %s1894_s23, %s1895_s24  }
  0x25   :  { %s1775_s29 = scalar_lea.hbm %s2470_s11, 2048 }
  0x26   :  { %p1776_p2 = scmp.ne.s32.totalorder %s2470_s11, %s1775_s29  ;;  %p1779_p3 = scmp.lt.u32.totalorder %s1775_s29, %s2470_s11 }
  0x28   :  { %p1781_p4 = pnand %p1779_p3, %p1776_p2 }
  0x2a   :  { %1784 = shalt.err (!%p1781_p4)
}
  0x2b   :  { %s1785_s20 = scalar_lea.vmem %s96_s15, 2048  ;;  %p1790_p6 = scmp.lt.s32.totalorder %s96_s15, %s96_s15 }
  0x2c   :  { %p1786_p5 = scmp.ne.s32.totalorder %s96_s15, %s1785_s20  ;;  %p1791_p7 = scmp.lt.s32.totalorder %s1785_s20, %s1785_s20 }
  0x2e   :  { %p1792_p8 = por %p1791_p7, %p1790_p6 }
  0x30   :  { %p1793_p9 = pnand %p1792_p8, %p1786_p5 }
  0x32   :  { %1796 = shalt.err (!%p1793_p9)
}
  0x33   :  { %101 = dma.hbm_to_vmem [thread:$0]  %s2470_s11, 2048, %s96_s15, [#allocation11], %s1894_s23, %s1894_s23, %s1895_s24  }
  0x34   :  { %s1898_s21 = smov [#allocation2]   ;;  %s1899_s6 = smov [#allocation6]  }
  0x35   :  { %s34_s22 = sshll.u32 %s1898_s21, 4  ;;  %s64_s30 = sshll.u32 %s1899_s6, 4  ;;  %s35_s22 = int_to_ptr.vmem [resolvable:$true] %s34_s22  ;;  %s65_s30 = int_to_ptr.vmem [resolvable:$true] %s64_s30 }
  0x36   :  { %s1797_s27 = scalar_lea.hbm %s2461_s2, 16 }
  0x37   :  { %p1798_p10 = scmp.ne.s32.totalorder %s2461_s2, %s1797_s27  ;;  %p1801_p11 = scmp.lt.u32.totalorder %s1797_s27, %s2461_s2 }
  0x39   :  { %p1803_p12 = pnand %p1801_p11, %p1798_p10 }
  0x3b   :  { %1806 = shalt.err (!%p1803_p12)
}
  0x3c   :  { %s1807_s11 = scalar_lea.vmem %s35_s22, 16  ;;  %s1811_s23 = scalar_lea.vmem %s35_s22, 32 }
  0x3d   :  { %p1808_p13 = scmp.ne.s32.totalorder %s35_s22, %s1807_s11  ;;  %p1812_p0 = scmp.lt.s32.totalorder %s35_s22, %s35_s22 }
  0x3e   :  { %p1813_p1 = scmp.lt.s32.totalorder %s1811_s23, %s1807_s11 }
  0x40   :  { %p1814_p2 = por %p1813_p1, %p1812_p0 }
  0x42   :  { %p1815_p3 = pnand %p1814_p2, %p1808_p13 }
  0x44   :  { %1818 = shalt.err (!%p1815_p3)
}
  0x45   :  { %37 = dma.hbm_to_vmem [thread:$0]  %s2461_s2, 16, %s35_s22, [#allocation3]  }
  0x46   :  { %s1819_s9 = scalar_lea.hbm %s2467_s8, 16 }
  0x47   :  { %p1820_p4 = scmp.ne.s32.totalorder %s2467_s8, %s1819_s9  ;;  %p1823_p5 = scmp.lt.u32.totalorder %s1819_s9, %s2467_s8 }
  0x49   :  { %p1825_p6 = pnand %p1823_p5, %p1820_p4 }
  0x4b   :  { %1828 = shalt.err (!%p1825_p6)
}
  0x4c   :  { %s1829_s26 = scalar_lea.vmem %s65_s30, 16  ;;  %s1833_s27 = scalar_lea.vmem %s65_s30, 32 }
  0x4d   :  { %p1830_p7 = scmp.ne.s32.totalorder %s65_s30, %s1829_s26  ;;  %p1834_p8 = scmp.lt.s32.totalorder %s65_s30, %s65_s30 }
  0x4e   :  { %p1835_p9 = scmp.lt.s32.totalorder %s1833_s27, %s1829_s26 }
  0x50   :  { %p1836_p10 = por %p1835_p9, %p1834_p8 }
  0x52   :  { %p1837_p11 = pnand %p1836_p10, %p1830_p7 }
  0x54   :  { %1840 = shalt.err (!%p1837_p11)
}
  0x55   :  { %67 = dma.hbm_to_vmem [thread:$0]  %s2467_s8, 16, %s65_s30, [#allocation5]  }
  0x56   :  { %s1900_s29 = smov [#allocation9]   ;;  %s1901_s17 = smov [#allocation12]  }
  0x57   :  { %s86_s16 = sshll.u32 %s1900_s29, 4  ;;  %s108_s18 = sshll.u32 %s1901_s17, 4  ;;  %s87_s16 = int_to_ptr.vmem [resolvable:$true] %s86_s16  ;;  %s109_s18 = int_to_ptr.vmem [resolvable:$true] %s108_s18 }
  0x58   :  { %s1841_s24 = scalar_lea.hbm %s2469_s10, 16 }
  0x59   :  { %p1842_p12 = scmp.ne.s32.totalorder %s2469_s10, %s1841_s24  ;;  %p1845_p13 = scmp.lt.u32.totalorder %s1841_s24, %s2469_s10 }
  0x5b   :  { %p1847_p0 = pnand %p1845_p13, %p1842_p12 }
  0x5d   :  { %1850 = shalt.err (!%p1847_p0)
}
  0x5e   :  { %s1851_s8 = scalar_lea.vmem %s87_s16, 16  ;;  %s1855_s30 = scalar_lea.vmem %s87_s16, 32 }
  0x5f   :  { %p1852_p1 = scmp.ne.s32.totalorder %s87_s16, %s1851_s8  ;;  %p1856_p2 = scmp.lt.s32.totalorder %s87_s16, %s87_s16 }
  0x60   :  { %p1857_p3 = scmp.lt.s32.totalorder %s1855_s30, %s1851_s8 }
  0x62   :  { %p1858_p4 = por %p1857_p3, %p1856_p2 }
  0x64   :  { %p1859_p5 = pnand %p1858_p4, %p1852_p1 }
  0x66   :  { %1862 = shalt.err (!%p1859_p5)
}
  0x67   :  { %89 = dma.hbm_to_vmem [thread:$0]  %s2469_s10, 16, %s87_s16, [#allocation8]  }
  0x68   :  { %s1863_s26 = scalar_lea.hbm %s2471_s12, 16 }
  0x69   :  { %p1864_p6 = scmp.ne.s32.totalorder %s2471_s12, %s1863_s26  ;;  %p1867_p7 = scmp.lt.u32.totalorder %s1863_s26, %s2471_s12 }
  0x6b   :  { %p1869_p8 = pnand %p1867_p7, %p1864_p6 }
  0x6d   :  { %1872 = shalt.err (!%p1869_p8)
}
  0x6e   :  { %s1873_s17 = scalar_lea.vmem %s109_s18, 16  ;;  %s1877_s11 = scalar_lea.vmem %s109_s18, 32 }
  0x6f   :  { %p1874_p9 = scmp.ne.s32.totalorder %s109_s18, %s1873_s17  ;;  %p1878_p10 = scmp.lt.s32.totalorder %s109_s18, %s109_s18 }
  0x70   :  { %p1879_p11 = scmp.lt.s32.totalorder %s1877_s11, %s1873_s17 }
  0x72   :  { %p1880_p12 = por %p1879_p11, %p1878_p10 }
  0x74   :  { %p1881_p13 = pnand %p1880_p12, %p1874_p9 }
  0x76   :  { %1884 = shalt.err (!%p1881_p13)
}
  0x77   :  { %111 = dma.hbm_to_vmem [thread:$0]  %s2471_s12, 16, %s109_s18, [#allocation11]  }
  0x78   :  { %1885 = dma.done.wait [#allocation3], 16  }
  0x79   :  { %1886 = vsyncadd [#allocation3], 4294967280 }
  0x7a   :  { %1887 = dma.done.wait [#allocation5], 912  }
  0x7b   :  { %1888 = vsyncadd [#allocation5], 4294966384 }
  0x7c   :  { %1889 = dma.done.wait [#allocation8], 2064  }
  0x7d   :  { %1890 = vsyncadd [#allocation8], 4294965232 }
  0x7e   :  { %1891 = dma.done.wait [#allocation11], 2064  }
  0x7f   :  { %1892 = vsyncadd [#allocation11], 4294965232  ;;  %v135_v0 = vld [vmem:[%s2460_s1] sm:$0xff]  ;;  %v136_v1 = vld [vmem:[%s2460_s1 + $0x8] sm:$0xff]  ;;  %v1902_v26 = vmov 0.0|0.0   ;;  %vm1903_vm0 = vmmov 0  }
  0x80   :  { %v137_v2 = vld [vmem:[%s2460_s1 + $0x10] sm:$0xff]  ;;  %v1537_v3 = vpack.c.bf16 %v136_v1, %v135_v0  ;;  %v138_v4 = vld [vmem:[%s2460_s1 + $0x18] sm:$0xff]  ;;  %v139_v6 = vld [vmem:[%s2460_s1 + $0x20] sm:$0xff]  ;;  %1569 = vmatprep.subr.bf16.mxu1 %v1902_v26  ;;  %v1904_v27 = vmov 0.0   ;;  %vm249_vm1 = vcmask 130048  }
  0x81   :  { %v1541_v5 = vpack.c.bf16 %v138_v4, %v137_v2  ;;  %v140_v7 = vld [vmem:[%s2460_s1 + $0x28] sm:$0xff]  ;;  %v133_v9 = vld [vmem:[%s2459_s0] sm:$0xff]  ;;  %v141_v10 = vld [vmem:[%s2460_s1 + $0x30] sm:$0xff]  ;;  %1279 = vmatprep.mubr.msk.f32.mxu1 %vm1903_vm0, %v1904_v27 }
  0x82   :  { %1538 = vmatprep.subr.bf16.mxu0 %v1537_v3  ;;  %v1545_v8 = vpack.c.bf16 %v140_v7, %v139_v6  ;;  %v142_v11 = vld [vmem:[%s2460_s1 + $0x38] sm:$0xff]  ;;  %1272 = vmatprep.mubr.f32.mxu0 %v133_v9  ;;  %v143_v13 = vld [vmem:[%s2460_s1 + $0x40] sm:$0xff]  ;;  %v144_v14 = vld [vmem:[%s2460_s1 + $0x48] sm:$0xff] }
  0x83   :  { %1540 = vmatpush3.bf16.msra.mxu0 %v1537_v3  ;;  %v1549_v12 = vpack.c.bf16 %v142_v11, %v141_v10  ;;  %v1553_v15 = vpack.c.bf16 %v144_v14, %v143_v13  ;;  %v145_v16 = vld [vmem:[%s2460_s1 + $0x50] sm:$0xff]  ;;  %v146_v17 = vld [vmem:[%s2460_s1 + $0x58] sm:$0xff]  ;;  %v147_v19 = vld [vmem:[%s2460_s1 + $0x60] sm:$0xff] }
  0x84   :  { %1542 = vmatprep.subr.bf16.mxu0 %v1541_v5  ;;  %v1557_v18 = vpack.c.bf16 %v146_v17, %v145_v16  ;;  %v148_v20 = vld [vmem:[%s2460_s1 + $0x68] sm:$0xff]  ;;  %v149_v22 = vld [vmem:[%s2460_s1 + $0x70] sm:$0xff]  ;;  %v150_v23 = vld [vmem:[%s2460_s1 + $0x78] sm:$0xff] }
  0x85   :  { %v1561_v21 = vpack.c.bf16 %v148_v20, %v147_v19  ;;  %v1565_v24 = vpack.c.bf16 %v150_v23, %v149_v22  ;;  %v134_v25 = vld [vmem:[%s2459_s0 + $0x8] sm:$0xff]  ;;  %v1094_v28 = vld [vmem:[#allocation2] ss:$0 sm:$0xff]  ;;  %v373_v40 = vld [vmem:[%s2464_s5 + $0x10] sm:$0xff] }
  0x86   :  { %v371_v35 = vld [vmem:[%s2464_s5] sm:$0xff]  ;;  %v372_v36 = vld [vmem:[%s2464_s5 + $0x8] sm:$0xff]  ;;  %v374_v41 = vld [vmem:[%s2464_s5 + $0x18] sm:$0xff] }
  0x87   :  { %1544 = vmatpush3.bf16.msra.mxu0 %v1541_v5  ;;  %v242_v38 = vld [vmem:[%s2463_s4] sm:$0xff]  ;;  %v1573_v39 = vpack.c.bf16 %v372_v36, %v371_v35  ;;  %v243_v42 = vld [vmem:[%s2463_s4 + $0x8] sm:$0xff]  ;;  %v1576_v43 = vpack.c.bf16 %v374_v41, %v373_v40  ;;  %v244_v46 = vld [vmem:[%s2463_s4 + $0x10] sm:$0xff] }
  0x88   :  { %1546 = vmatprep.subr.bf16.mxu0 %v1545_v8  ;;  %v375_v44 = vld [vmem:[%s2464_s5 + $0x20] sm:$0xff]  ;;  %v376_v45 = vld [vmem:[%s2464_s5 + $0x28] sm:$0xff]  ;;  %v377_v48 = vld [vmem:[%s2464_s5 + $0x30] sm:$0xff] }
  0x89   :  { %v1579_v47 = vpack.c.bf16 %v376_v45, %v375_v44  ;;  %v378_v49 = vld [vmem:[%s2464_s5 + $0x38] sm:$0xff]  ;;  %v379_v52 = vld [vmem:[%s2464_s5 + $0x40] sm:$0xff]  ;;  %v380_v53 = vld [vmem:[%s2464_s5 + $0x48] sm:$0xff] }
  0x8a   :  { %v245_v50 = vld [vmem:[%s2463_s4 + $0x18] sm:$0xff]  ;;  %v1582_v51 = vpack.c.bf16 %v378_v49, %v377_v48  ;;  %v246_v54 = vld [vmem:[%s2463_s4 + $0x20] sm:$0xff]  ;;  %v1585_v55 = vpack.c.bf16 %v380_v53, %v379_v52  ;;  %v381_v56 = vld [vmem:[%s2464_s5 + $0x50] sm:$0xff] }
  0x8b   :  { %1548 = vmatpush3.bf16.msra.mxu0 %v1545_v8  ;;  %v382_v57 = vld [vmem:[%s2464_s5 + $0x58] sm:$0xff]  ;;  %v247_v58 = vld [vmem:[%s2463_s4 + $0x28] sm:$0xff]  ;;  %v383_v60 = vld [vmem:[%s2464_s5 + $0x60] sm:$0xff] }
  0x8c   :  { %1550 = vmatprep.subr.bf16.mxu0 %v1549_v12  ;;  %v1588_v59 = vpack.c.bf16 %v382_v57, %v381_v56  ;;  %v384_v61 = vld [vmem:[%s2464_s5 + $0x68] sm:$0xff]  ;;  %v248_v62 = vld [vmem:[%s2463_s4 + $0x30] sm:$0xff]  ;;  %v386_v1 = vld [vmem:[%s2464_s5 + $0x78] sm:$0xff] }
  0x8d   :  { %v1591_v63 = vpack.c.bf16 %v384_v61, %v383_v60  ;;  %v385_v0 = vld [vmem:[%s2464_s5 + $0x70] sm:$0xff]  ;;  %v235_v3 = vld [vmem:[%s2462_s3] sm:$0xff]  ;;  %v236_v4 = vld [vmem:[%s2462_s3 + $0x8] sm:$0xff] }
  0x8e   :  { %v1594_v2 = vpack.c.bf16 %v386_v1, %v385_v0  ;;  %v237_v5 = vld [vmem:[%s2462_s3 + $0x10] sm:$0xff]  ;;  %v238_v6 = vld [vmem:[%s2462_s3 + $0x18] sm:$0xff]  ;;  %v239_v7 = vld [vmem:[%s2462_s3 + $0x20] sm:$0xff] }
  0x8f   :  { %1552 = vmatpush3.bf16.msra.mxu0 %v1549_v12  ;;  %v240_v8 = vld [vmem:[%s2462_s3 + $0x28] sm:$0xff]  ;;  %v241_v9 = vld [vmem:[%s2462_s3 + $0x30] sm:$0xff]  ;;  %v629_v10 = vld [vmem:[%s2466_s7] sm:$0xff] }
  0x90   :  { %1554 = vmatprep.subr.bf16.mxu0 %v1553_v15  ;;  %v630_v11 = vld [vmem:[%s2466_s7 + $0x8] sm:$0xff]  ;;  %v631_v12 = vld [vmem:[%s2466_s7 + $0x10] sm:$0xff]  ;;  %v632_v14 = vld [vmem:[%s2466_s7 + $0x18] sm:$0xff] }
  0x91   :  { %v1600_v13 = vpack.c.bf16 %v630_v11, %v629_v10  ;;  %v633_v16 = vld [vmem:[%s2466_s7 + $0x20] sm:$0xff]  ;;  %v634_v17 = vld [vmem:[%s2466_s7 + $0x28] sm:$0xff]  ;;  %v635_v19 = vld [vmem:[%s2466_s7 + $0x30] sm:$0xff] }
  0x92   :  { %v636_v20 = vld [vmem:[%s2466_s7 + $0x38] sm:$0xff]  ;;  %v637_v22 = vld [vmem:[%s2466_s7 + $0x40] sm:$0xff]  ;;  %v638_v23 = vld [vmem:[%s2466_s7 + $0x48] sm:$0xff] }
  0x93   :  { %1556 = vmatpush3.bf16.msra.mxu0 %v1553_v15  ;;  %v1603_v15 = vpack.c.bf16 %v632_v14, %v631_v12  ;;  %v643_v48 = vld [vmem:[%s2466_s7 + $0x70] sm:$0xff]  ;;  %v644_v49 = vld [vmem:[%s2466_s7 + $0x78] sm:$0xff]  ;;  %v760_v1 = vld [vmem:[#allocation7 + $0x8] sm:$0xff] }
  0x94   :  { %1558 = vmatprep.subr.bf16.mxu0 %v1557_v18  ;;  %v759_v0 = vld [vmem:[#allocation7] sm:$0xff]  ;;  %v766_v10 = vld [vmem:[#allocation7 + $0x38] sm:$0xff] }
  0x95   :  { %v767_v12 = vld [vmem:[#allocation7 + $0x40] sm:$0xff] }
  0x97   :  { %1560 = vmatpush3.bf16.msra.mxu0 %v1557_v18  ;;  %v1606_v18 = vpack.c.bf16 %v634_v17, %v633_v16  ;;  %v770_v16 = vld [vmem:[#allocation7 + $0x58] sm:$0xff] }
  0x98   :  { %1562 = vmatprep.subr.bf16.mxu0 %v1561_v21 }
  0x9b   :  { %1564 = vmatpush3.bf16.msra.mxu0 %v1561_v21  ;;  %v1609_v21 = vpack.c.bf16 %v636_v20, %v635_v19  ;;  %v772_v19 = vld [vmem:[#allocation7 + $0x68] sm:$0xff] }
  0x9c   :  { %1566 = vmatprep.subr.bf16.mxu0 %v1565_v24 }
  0x9f   :  { %1568 = vmatpush3.bf16.msra.mxu0 %v1565_v24  ;;  %v1612_v24 = vpack.c.bf16 %v638_v23, %v637_v22  ;;  %v608_v22 = vld [vmem:[#allocation4] sm:$0xff] }
  0xa0   :  { %1596 = vmatprep.subr.bf16.mxu0 %v1902_v26 }
  0xa2   :  { %1273 = vmatmul.mubr.f32.vlgmr.msra.gmra.mrb[0].mxu0 %v134_v25  ;;  %v639_v25 = vld [vmem:[%s2466_s7 + $0x50] sm:$0xff] }
  0xa3   :  { %1357 = vmatprep.mubr.msk.f32.mxu0 %vm1903_vm0, %v1904_v27 }
 0x175   :  { %v1274_v29 = vpop.f32.mrb[0].mxu0 }
 0x176   :  { %v230_v30 = vadd.f32 %v1274_v29, %v1094_v28  ;;  %v224_v31 = vpop.f32.mrb[1].mxu0 }
 0x177   :  { %v225_v32 = vadd.f32 %v1094_v28, %v224_v31  ;;  %v640_v28 = vld [vmem:[%s2466_s7 + $0x58] sm:$0xff]  ;;  %v642_v31 = vld [vmem:[%s2466_s7 + $0x68] sm:$0xff] }
 0x178   :  { %1699 = vtanh.f32 %v230_v30  ;;  %v1615_v29 = vpack.c.bf16 %v640_v28, %v639_v25  ;;  %v641_v30 = vld [vmem:[%s2466_s7 + $0x60] sm:$0xff] }
 0x179   :  { %1701 = vtanh.f32 %v225_v32  ;;  %v1618_v32 = vpack.c.bf16 %v642_v31, %v641_v30 }
 0x182   :  { %v1700_v33 = vpop.eup %1699 }
 0x183   :  { %v1702_v34 = vpop.eup %1701 }
 0x184   :  { %v1570_v37 = vpack.c.bf16 %v1700_v33, %v1702_v34 }
 0x186   :  { %1571 = vmatpush3.bf16.msra.mxu1 %v1570_v37  ;;  %1598 = vmatpush3.bf16.msra.mxu0 %v1570_v37 }
 0x187   :  { %1572 = vmatprep.subr.bf16.mxu1 %v1902_v26  ;;  %1599 = vmatprep.subr.bf16.mxu0 %v1902_v26 }
 0x189   :  { %1280 = vmatmul.mubr.msk.f32.vlgmr.msra.gmra.mrb[0].mxu1 %vm249_vm1, %v242_v38  ;;  %1358 = vmatmul.mubr.msk.f32.vlgmr.msra.gmra.mrb[2].mxu0 %vm249_vm1, %v235_v3  ;;  %v1624_v3 = vpack.c.bf16 %v760_v1, %v759_v0  ;;  %v892_v1 = vld [vmem:[#allocation10 + $0x18] sm:$0xff] }
 0x18a   :  { %1282 = vmatprep.mubr.msk.f32.mxu1 %vm1903_vm0, %v1904_v27  ;;  %1574 = vmatpush3.bf16.msra.mxu1 %v1573_v39 }
 0x18b   :  { %1575 = vmatprep.subr.bf16.mxu1 %v1902_v26  ;;  %1360 = vmatprep.mubr.msk.f32.mxu0 %vm1903_vm0, %v1904_v27 }
 0x18c   :  { %1601 = vmatpush3.bf16.msra.mxu0 %v1600_v13  ;;  %v768_v13 = vld [vmem:[#allocation7 + $0x48] sm:$0xff] }
 0x18d   :  { %1283 = vmatmul.mubr.msk.f32.gmra.mrb[2].mxu1 %vm249_vm1, %v243_v42  ;;  %1361 = vmatmul.mubr.msk.f32.gmra.mrb[4].mxu0 %vm249_vm1, %v236_v4  ;;  %v762_v4 = vld [vmem:[#allocation7 + $0x18] sm:$0xff]  ;;  %v1636_v14 = vpack.c.bf16 %v768_v13, %v767_v12 }
 0x18e   :  { %1285 = vmatprep.mubr.msk.f32.mxu1 %vm1903_vm0, %v1904_v27  ;;  %1577 = vmatpush3.bf16.msra.mxu1 %v1576_v43  ;;  %v899_v12 = vld [vmem:[#allocation10 + $0x50] sm:$0xff]  ;;  %v900_v13 = vld [vmem:[#allocation10 + $0x58] sm:$0xff] }
 0x18f   :  { %1578 = vmatprep.subr.bf16.mxu1 %v1902_v26  ;;  %1363 = vmatprep.mubr.msk.f32.mxu0 %vm1903_vm0, %v1904_v27 }
 0x190   :  { %1602 = vmatprep.subr.bf16.mxu0 %v1902_v26 }
 0x191   :  { %1286 = vmatmul.mubr.msk.f32.gmra.mrb[4].mxu1 %vm249_vm1, %v244_v46  ;;  %1364 = vmatmul.mubr.msk.f32.gmra.mrb[6].mxu0 %vm249_vm1, %v237_v5 }
 0x192   :  { %1288 = vmatprep.mubr.msk.f32.mxu1 %vm1903_vm0, %v1904_v27  ;;  %1580 = vmatpush3.bf16.msra.mxu1 %v1579_v47 }
 0x193   :  { %1581 = vmatprep.subr.bf16.mxu1 %v1902_v26  ;;  %1366 = vmatprep.mubr.msk.f32.mxu0 %vm1903_vm0, %v1904_v27 }
 0x194   :  { %1604 = vmatpush3.bf16.msra.mxu0 %v1603_v15  ;;  %v769_v15 = vld [vmem:[#allocation7 + $0x50] sm:$0xff] }
 0x195   :  { %1289 = vmatmul.mubr.msk.f32.gmra.mrb[6].mxu1 %vm249_vm1, %v245_v50  ;;  %1367 = vmatmul.mubr.msk.f32.gmra.mrb[8].mxu0 %vm249_vm1, %v238_v6  ;;  %v763_v6 = vld [vmem:[#allocation7 + $0x20] sm:$0xff]  ;;  %v1639_v17 = vpack.c.bf16 %v770_v16, %v769_v15  ;;  %v902_v16 = vld [vmem:[#allocation10 + $0x68] sm:$0xff] }
 0x196   :  { %1291 = vmatprep.mubr.msk.f32.mxu1 %vm1903_vm0, %v1904_v27  ;;  %1583 = vmatpush3.bf16.msra.mxu1 %v1582_v51  ;;  %v1621_v51 = vpack.c.bf16 %v644_v49, %v643_v48  ;;  %v613_v49 = vld [vmem:[#allocation4 + $0x28] sm:$0xff]  ;;  %v901_v15 = vld [vmem:[#allocation10 + $0x60] sm:$0xff] }
 0x197   :  { %1584 = vmatprep.subr.bf16.mxu1 %v1902_v26  ;;  %1369 = vmatprep.mubr.msk.f32.mxu0 %vm1903_vm0, %v1904_v27 }
 0x198   :  { %1605 = vmatprep.subr.bf16.mxu0 %v1902_v26 }
 0x199   :  { %1292 = vmatmul.mubr.msk.f32.gmra.mrb[8].mxu1 %vm249_vm1, %v246_v54  ;;  %1370 = vmatmul.mubr.msk.f32.gmra.mrb[10].mxu0 %vm249_vm1, %v239_v7  ;;  %v764_v7 = vld [vmem:[#allocation7 + $0x28] sm:$0xff] }
 0x19a   :  { %1294 = vmatprep.mubr.msk.f32.mxu1 %vm1903_vm0, %v1904_v27  ;;  %1586 = vmatpush3.bf16.msra.mxu1 %v1585_v55 }
 0x19b   :  { %1587 = vmatprep.subr.bf16.mxu1 %v1902_v26  ;;  %1372 = vmatprep.mubr.msk.f32.mxu0 %vm1903_vm0, %v1904_v27 }
 0x19c   :  { %1607 = vmatpush3.bf16.msra.mxu0 %v1606_v18  ;;  %v771_v18 = vld [vmem:[#allocation7 + $0x60] sm:$0xff] }
 0x19d   :  { %1295 = vmatmul.mubr.msk.f32.gmra.mrb[10].mxu1 %vm249_vm1, %v247_v58  ;;  %1373 = vmatmul.mubr.msk.f32.gmra.mrb[12].mxu0 %vm249_vm1, %v240_v8  ;;  %v1630_v8 = vpack.c.bf16 %v764_v7, %v763_v6  ;;  %v1642_v20 = vpack.c.bf16 %v772_v19, %v771_v18  ;;  %v895_v6 = vld [vmem:[#allocation10 + $0x30] sm:$0xff]  ;;  %v896_v7 = vld [vmem:[#allocation10 + $0x38] sm:$0xff] }
 0x19e   :  { %1297 = vmatprep.mubr.msk.f32.mxu1 %vm1903_vm0, %v1904_v27  ;;  %1589 = vmatpush3.bf16.msra.mxu1 %v1588_v59  ;;  %v1109_v18 = vld [vmem:[#allocation6] ss:$0 sm:$0xff] }
 0x19f   :  { %1590 = vmatprep.subr.bf16.mxu1 %v1902_v26  ;;  %1375 = vmatprep.mubr.msk.f32.mxu0 %vm1903_vm0, %v1904_v27 }
 0x1a0   :  { %1608 = vmatprep.subr.bf16.mxu0 %v1902_v26 }
 0x1a1   :  { %1298 = vmatmul.mubr.msk.f32.gmra.mrb[12].mxu1 %vm249_vm1, %v248_v62  ;;  %1376 = vmatmul.mubr.msk.f32.gmra.mrb[14].mxu0 %vm249_vm1, %v241_v9  ;;  %v765_v9 = vld [vmem:[#allocation7 + $0x30] sm:$0xff] }
 0x1a2   :  { %1592 = vmatpush3.bf16.msra.mxu1 %v1591_v63  ;;  %1332 = vmatprep.mubr.msk.f32.mxu1 %vm1903_vm0, %v1904_v27  ;;  %v1633_v11 = vpack.c.bf16 %v766_v10, %v765_v9  ;;  %v897_v9 = vld [vmem:[#allocation10 + $0x40] sm:$0xff]  ;;  %v898_v10 = vld [vmem:[#allocation10 + $0x48] sm:$0xff] }
 0x1a3   :  { %1593 = vmatprep.subr.bf16.mxu1 %v1902_v26  ;;  %1410 = vmatprep.mubr.msk.f32.mxu0 %vm1903_vm0, %v1904_v27 }
 0x1a4   :  { %1610 = vmatpush3.bf16.msra.mxu0 %v1609_v21 }
 0x1a5   :  { %1611 = vmatprep.subr.bf16.mxu0 %v1902_v26 }
 0x1a6   :  { %1595 = vmatpush3.bf16.msra.mxu1 %v1594_v2  ;;  %v761_v2 = vld [vmem:[#allocation7 + $0x10] sm:$0xff] }
 0x1a7   :  { %1623 = vmatprep.subr.bf16.mxu1 %v1902_v26  ;;  %v1627_v5 = vpack.c.bf16 %v762_v4, %v761_v2  ;;  %v894_v4 = vld [vmem:[#allocation10 + $0x28] sm:$0xff] }
 0x1a8   :  { %1613 = vmatpush3.bf16.msra.mxu0 %v1612_v24 }
 0x1a9   :  { %1614 = vmatprep.subr.bf16.mxu0 %v1902_v26 }
 0x1ac   :  { %1616 = vmatpush3.bf16.msra.mxu0 %v1615_v29  ;;  %v609_v29 = vld [vmem:[#allocation4 + $0x8] sm:$0xff] }
 0x1ad   :  { %1617 = vmatprep.subr.bf16.mxu0 %v1902_v26 }
 0x1b0   :  { %1619 = vmatpush3.bf16.msra.mxu0 %v1618_v32 }
 0x1b1   :  { %1620 = vmatprep.subr.bf16.mxu0 %v1902_v26 }
 0x1b4   :  { %1622 = vmatpush3.bf16.msra.mxu0 %v1621_v51 }
 0x1b5   :  { %1647 = vmatprep.subr.bf16.mxu0 %v1902_v26 }
 0x25c   :  { %v337_v33 = vpop.f32.mrb[0].mxu1  ;;  %v574_v47 = vpop.f32.mrb[2].mxu0 }
 0x25d   :  { %v1281_v34 = vpop.f32.mrb[1].mxu1  ;;  %1333 = vmatmul.mubr.f32.vlgmr.msra.gmra.mrb[14].mxu1 %v337_v33  ;;  %v1359_v50 = vpop.f32.mrb[3].mxu0 }
 0x25e   :  { %1335 = vmatprep.mubr.msk.f32.mxu1 %vm1903_vm0, %v1904_v27  ;;  %1625 = vmatpush3.bf16.msra.mxu1 %v1624_v3  ;;  %v610_v34 = vld [vmem:[#allocation4 + $0x10] sm:$0xff]  ;;  %v893_v3 = vld [vmem:[#allocation10 + $0x20] sm:$0xff] }
 0x25f   :  { %1626 = vmatprep.subr.bf16.mxu1 %v1902_v26 }
 0x260   :  { %v342_v35 = vpop.f32.mrb[2].mxu1  ;;  %v579_v52 = vpop.f32.mrb[4].mxu0 }
 0x261   :  { %v1284_v36 = vpop.f32.mrb[3].mxu1  ;;  %1336 = vmatmul.mubr.f32.gmra.mrb[16].mxu1 %v342_v35  ;;  %v1362_v53 = vpop.f32.mrb[5].mxu0 }
 0x262   :  { %1338 = vmatprep.mubr.msk.f32.mxu1 %vm1903_vm0, %v1904_v27  ;;  %1628 = vmatpush3.bf16.msra.mxu1 %v1627_v5  ;;  %v1654_v5 = vpack.c.bf16 %v894_v4, %v893_v3 }
 0x263   :  { %1629 = vmatprep.subr.bf16.mxu1 %v1902_v26 }
 0x264   :  { %v347_v37 = vpop.f32.mrb[4].mxu1  ;;  %v584_v54 = vpop.f32.mrb[6].mxu0 }
 0x265   :  { %v1287_v38 = vpop.f32.mrb[5].mxu1  ;;  %1339 = vmatmul.mubr.f32.gmra.mrb[18].mxu1 %v347_v37  ;;  %v1365_v55 = vpop.f32.mrb[7].mxu0 }
 0x266   :  { %1341 = vmatprep.mubr.msk.f32.mxu1 %vm1903_vm0, %v1904_v27  ;;  %1631 = vmatpush3.bf16.msra.mxu1 %v1630_v8  ;;  %v1657_v8 = vpack.c.bf16 %v896_v7, %v895_v6 }
 0x267   :  { %1632 = vmatprep.subr.bf16.mxu1 %v1902_v26 }
 0x268   :  { %v352_v39 = vpop.f32.mrb[6].mxu1  ;;  %v2345_v56 = vpop.f32.mrb[8].mxu0 }
 0x269   :  { %v1290_v40 = vpop.f32.mrb[7].mxu1  ;;  %1342 = vmatmul.mubr.f32.gmra.mrb[20].mxu1 %v352_v39  ;;  %v1368_v57 = vpop.f32.mrb[9].mxu0  ;;  %v611_v39 = vld [vmem:[#allocation4 + $0x18] sm:$0xff] }
 0x26a   :  { %1344 = vmatprep.mubr.msk.f32.mxu1 %vm1903_vm0, %v1904_v27  ;;  %1634 = vmatpush3.bf16.msra.mxu1 %v1633_v11  ;;  %v1660_v11 = vpack.c.bf16 %v898_v10, %v897_v9 }
 0x26b   :  { %1635 = vmatprep.subr.bf16.mxu1 %v1902_v26 }
 0x26c   :  { %v357_v41 = vpop.f32.mrb[8].mxu1  ;;  %v2347_v58 = vpop.f32.mrb[10].mxu0 }
 0x26d   :  { %v1293_v42 = vpop.f32.mrb[9].mxu1  ;;  %1345 = vmatmul.mubr.f32.gmra.mrb[22].mxu1 %v357_v41  ;;  %v1371_v59 = vpop.f32.mrb[11].mxu0 }
 0x26e   :  { %1347 = vmatprep.mubr.msk.f32.mxu1 %vm1903_vm0, %v1904_v27  ;;  %1637 = vmatpush3.bf16.msra.mxu1 %v1636_v14  ;;  %v774_v59 = vld [vmem:[#allocation7 + $0x78] sm:$0xff]  ;;  %v1663_v14 = vpack.c.bf16 %v900_v13, %v899_v12 }
 0x26f   :  { %1638 = vmatprep.subr.bf16.mxu1 %v1902_v26 }
 0x270   :  { %v362_v43 = vpop.f32.mrb[10].mxu1  ;;  %v2349_v60 = vpop.f32.mrb[12].mxu0 }
 0x271   :  { %v1296_v44 = vpop.f32.mrb[11].mxu1  ;;  %1348 = vmatmul.mubr.f32.gmra.mrb[24].mxu1 %v362_v43  ;;  %v1374_v61 = vpop.f32.mrb[13].mxu0 }
 0x272   :  { %1350 = vmatprep.mubr.msk.f32.mxu1 %vm1903_vm0, %v1904_v27  ;;  %1640 = vmatpush3.bf16.msra.mxu1 %v1639_v17  ;;  %v612_v44 = vld [vmem:[#allocation4 + $0x20] sm:$0xff]  ;;  %v1666_v17 = vpack.c.bf16 %v902_v16, %v901_v15  ;;  %v1111_v16 = vld [vmem:[#allocation12] ss:$0 sm:$0xff] }
 0x273   :  { %1641 = vmatprep.subr.bf16.mxu1 %v1902_v26  ;;  %v889_v61 = vld [vmem:[#allocation10] sm:$0xff] }
 0x274   :  { %v367_v45 = vpop.f32.mrb[12].mxu1  ;;  %v2351_v62 = vpop.f32.mrb[14].mxu0 }
 0x275   :  { %v1299_v46 = vpop.f32.mrb[13].mxu1  ;;  %1351 = vmatmul.mubr.f32.gmra.mrb[26].mxu1 %v367_v45  ;;  %v1377_v63 = vpop.f32.mrb[15].mxu0 }
 0x276   :  { %1463 = vmatprep.mubr.msk.f32.mxu1 %vm1903_vm0, %v1904_v27  ;;  %1643 = vmatpush3.bf16.msra.mxu1 %v1642_v20  ;;  %v891_v63 = vld [vmem:[#allocation10 + $0x10] sm:$0xff] }
 0x277   :  { %1644 = vmatprep.subr.bf16.mxu1 %v1902_v26  ;;  %v1651_v2 = vpack.c.bf16 %v892_v1, %v891_v63 }
 0x330   :  { %v453_v21 = vpop.f32.mrb[14].mxu1 }
 0x331   :  { %v575_v23 = vadd.f32 %v574_v47, %v453_v21  ;;  %v1334_v24 = vpop.f32.mrb[15].mxu1 }
 0x333   :  { %v615_v25 = vadd.f32 %v608_v22, %v575_v23 }
 0x334   :  { %v458_v28 = vpop.f32.mrb[16].mxu1 }
 0x335   :  { %622 = vst [vmem:[%s2473_s14] sm:$0xff] %v615_v25  ;;  %v580_v30 = vadd.f32 %v579_v52, %v458_v28  ;;  %v1337_v31 = vpop.f32.mrb[17].mxu1  ;;  %1411 = vmatmul.mubr.f32.vlgmr.msra.gmra.mrb[16].mxu0 %v615_v25 }
 0x336   :  { %1413 = vmatprep.mubr.msk.f32.mxu0 %vm1903_vm0, %v1904_v27 }
 0x337   :  { %v616_v32 = vadd.f32 %v609_v29, %v580_v30 }
 0x338   :  { %v463_v33 = vpop.f32.mrb[18].mxu1 }
 0x339   :  { %623 = vst [vmem:[%s2473_s14 + $0x8] sm:$0xff] %v616_v32  ;;  %v585_v35 = vadd.f32 %v584_v54, %v463_v33  ;;  %v1340_v36 = vpop.f32.mrb[19].mxu1  ;;  %1414 = vmatmul.mubr.f32.gmra.mrb[18].mxu0 %v616_v32  ;;  %v614_v54 = vld [vmem:[#allocation4 + $0x30] sm:$0xff] }
 0x33a   :  { %1416 = vmatprep.mubr.msk.f32.mxu0 %vm1903_vm0, %v1904_v27 }
 0x33b   :  { %v617_v37 = vadd.f32 %v610_v34, %v585_v35 }
 0x33c   :  { %v468_v38 = vpop.f32.mrb[20].mxu1 }
 0x33d   :  { %624 = vst [vmem:[%s2473_s14 + $0x10] sm:$0xff] %v617_v37  ;;  %v590_v40 = vadd.f32 %v2345_v56, %v468_v38  ;;  %v1343_v41 = vpop.f32.mrb[21].mxu1  ;;  %1417 = vmatmul.mubr.f32.gmra.mrb[20].mxu0 %v617_v37 }
 0x33e   :  { %1419 = vmatprep.mubr.msk.f32.mxu0 %vm1903_vm0, %v1904_v27 }
 0x33f   :  { %v618_v42 = vadd.f32 %v611_v39, %v590_v40 }
 0x340   :  { %v473_v43 = vpop.f32.mrb[22].mxu1 }
 0x341   :  { %625 = vst [vmem:[%s2473_s14 + $0x18] sm:$0xff] %v618_v42  ;;  %v595_v45 = vadd.f32 %v2347_v58, %v473_v43  ;;  %v1346_v46 = vpop.f32.mrb[23].mxu1  ;;  %1420 = vmatmul.mubr.f32.gmra.mrb[22].mxu0 %v618_v42  ;;  %v773_v58 = vld [vmem:[#allocation7 + $0x70] sm:$0xff] }
 0x342   :  { %1422 = vmatprep.mubr.msk.f32.mxu0 %vm1903_vm0, %v1904_v27 }
 0x343   :  { %v619_v47 = vadd.f32 %v612_v44, %v595_v45 }
 0x344   :  { %v478_v48 = vpop.f32.mrb[24].mxu1 }
 0x345   :  { %626 = vst [vmem:[%s2473_s14 + $0x20] sm:$0xff] %v619_v47  ;;  %v600_v50 = vadd.f32 %v2349_v60, %v478_v48  ;;  %v1349_v51 = vpop.f32.mrb[25].mxu1  ;;  %1423 = vmatmul.mubr.f32.gmra.mrb[24].mxu0 %v619_v47  ;;  %v1645_v60 = vpack.c.bf16 %v774_v59, %v773_v58 }
 0x346   :  { %1425 = vmatprep.mubr.msk.f32.mxu0 %vm1903_vm0, %v1904_v27 }
 0x347   :  { %v620_v52 = vadd.f32 %v613_v49, %v600_v50  ;;  %1646 = vmatpush3.bf16.msra.mxu1 %v1645_v60  ;;  %v903_v49 = vld [vmem:[#allocation10 + $0x70] sm:$0xff]  ;;  %v904_v50 = vld [vmem:[#allocation10 + $0x78] sm:$0xff] }
 0x348   :  { %v483_v53 = vpop.f32.mrb[26].mxu1  ;;  %1671 = vmatprep.subr.bf16.mxu1 %v1902_v26  ;;  %v1669_v51 = vpack.c.bf16 %v904_v50, %v903_v49 }
 0x349   :  { %627 = vst [vmem:[%s2473_s14 + $0x28] sm:$0xff] %v620_v52  ;;  %v605_v55 = vadd.f32 %v2351_v62, %v483_v53  ;;  %v1352_v56 = vpop.f32.mrb[27].mxu1  ;;  %1426 = vmatmul.mubr.f32.gmra.mrb[26].mxu0 %v620_v52  ;;  %v890_v62 = vld [vmem:[#allocation10 + $0x8] sm:$0xff]  ;;  %v1110_v52 = vld [vmem:[#allocation9] ss:$0 sm:$0xff] }
 0x34a   :  { %1428 = vmatprep.mubr.msk.f32.mxu0 %vm1903_vm0, %v1904_v27  ;;  %v1648_v0 = vpack.c.bf16 %v890_v62, %v889_v61 }
 0x34b   :  { %v621_v57 = vadd.f32 %v614_v54, %v605_v55 }
 0x34c   :  { %1649 = vmatpush3.bf16.msra.mxu0 %v1648_v0 }
 0x34d   :  { %628 = vst [vmem:[%s2473_s14 + $0x30] sm:$0xff] %v621_v57  ;;  %1429 = vmatmul.mubr.f32.gmra.mrb[28].mxu0 %v621_v57  ;;  %1650 = vmatprep.subr.bf16.mxu0 %v1902_v26 }
 0x34e   :  { %1516 = vmatprep.mubr.msk.f32.mxu0 %vm1903_vm0, %v1904_v27 }
 0x350   :  { %1652 = vmatpush3.bf16.msra.mxu0 %v1651_v2 }
 0x351   :  { %1653 = vmatprep.subr.bf16.mxu0 %v1902_v26 }
 0x354   :  { %1655 = vmatpush3.bf16.msra.mxu0 %v1654_v5 }
 0x355   :  { %1656 = vmatprep.subr.bf16.mxu0 %v1902_v26 }
 0x358   :  { %1658 = vmatpush3.bf16.msra.mxu0 %v1657_v8 }
 0x359   :  { %1659 = vmatprep.subr.bf16.mxu0 %v1902_v26 }
 0x35c   :  { %1661 = vmatpush3.bf16.msra.mxu0 %v1660_v11 }
 0x35d   :  { %1662 = vmatprep.subr.bf16.mxu0 %v1902_v26 }
 0x360   :  { %1664 = vmatpush3.bf16.msra.mxu0 %v1663_v14 }
 0x361   :  { %1665 = vmatprep.subr.bf16.mxu0 %v1902_v26 }
 0x364   :  { %1667 = vmatpush3.bf16.msra.mxu0 %v1666_v17 }
 0x365   :  { %1668 = vmatprep.subr.bf16.mxu0 %v1902_v26 }
 0x368   :  { %1670 = vmatpush3.bf16.msra.mxu0 %v1669_v51 }
 0x408   :  { %v718_v19 = vpop.f32.mrb[16].mxu0 }
 0x409   :  { %v719_v20 = vadd.f32 %v1109_v18, %v718_v19  ;;  %v1412_v21 = vpop.f32.mrb[17].mxu0 }
 0x40b   :  { %v752_v22 = vmax.f32 %v719_v20, 0.0 }
 0x40c   :  { %v723_v23 = vpop.f32.mrb[18].mxu0 }
 0x40d   :  { %v724_v24 = vadd.f32 %v1109_v18, %v723_v23  ;;  %v1415_v25 = vpop.f32.mrb[19].mxu0  ;;  %1464 = vmatmul.mubr.f32.vlgmr.msra.gmra.mrb[28].mxu1 %v752_v22 }
 0x40e   :  { %1466 = vmatprep.mubr.msk.f32.mxu1 %vm1903_vm0, %v1904_v27  ;;  %1679 = vmatpush3.bf16.msra.mxu1 %v1648_v0 }
 0x40f   :  { %v753_v28 = vmax.f32 %v724_v24, 0.0  ;;  %1672 = vmatprep.subr.bf16.mxu1 %v1902_v26 }
 0x410   :  { %v728_v29 = vpop.f32.mrb[20].mxu0 }
 0x411   :  { %v729_v30 = vadd.f32 %v1109_v18, %v728_v29  ;;  %v1418_v31 = vpop.f32.mrb[21].mxu0  ;;  %1467 = vmatmul.mubr.f32.gmra.mrb[30].mxu1 %v753_v28 }
 0x412   :  { %1469 = vmatprep.mubr.msk.f32.mxu1 %vm1903_vm0, %v1904_v27  ;;  %1680 = vmatpush3.bf16.msra.mxu1 %v1651_v2 }
 0x413   :  { %v754_v32 = vmax.f32 %v729_v30, 0.0  ;;  %1673 = vmatprep.subr.bf16.mxu1 %v1902_v26 }
 0x414   :  { %v733_v33 = vpop.f32.mrb[22].mxu0 }
 0x415   :  { %v734_v34 = vadd.f32 %v1109_v18, %v733_v33  ;;  %v1421_v35 = vpop.f32.mrb[23].mxu0  ;;  %1470 = vmatmul.mubr.f32.gmra.mrb[32].mxu1 %v754_v32 }
 0x416   :  { %1472 = vmatprep.mubr.msk.f32.mxu1 %vm1903_vm0, %v1904_v27  ;;  %1681 = vmatpush3.bf16.msra.mxu1 %v1654_v5 }
 0x417   :  { %v755_v36 = vmax.f32 %v734_v34, 0.0  ;;  %1674 = vmatprep.subr.bf16.mxu1 %v1902_v26 }
 0x418   :  { %v738_v37 = vpop.f32.mrb[24].mxu0 }
 0x419   :  { %v739_v38 = vadd.f32 %v1109_v18, %v738_v37  ;;  %v1424_v39 = vpop.f32.mrb[25].mxu0  ;;  %1473 = vmatmul.mubr.f32.gmra.mrb[34].mxu1 %v755_v36 }
 0x41a   :  { %1475 = vmatprep.mubr.msk.f32.mxu1 %vm1903_vm0, %v1904_v27  ;;  %1682 = vmatpush3.bf16.msra.mxu1 %v1657_v8 }
 0x41b   :  { %v756_v40 = vmax.f32 %v739_v38, 0.0  ;;  %1675 = vmatprep.subr.bf16.mxu1 %v1902_v26 }
 0x41c   :  { %v743_v41 = vpop.f32.mrb[26].mxu0 }
 0x41d   :  { %v744_v42 = vadd.f32 %v1109_v18, %v743_v41  ;;  %v1427_v43 = vpop.f32.mrb[27].mxu0  ;;  %1476 = vmatmul.mubr.f32.gmra.mrb[36].mxu1 %v756_v40 }
 0x41e   :  { %1478 = vmatprep.mubr.msk.f32.mxu1 %vm1903_vm0, %v1904_v27  ;;  %1683 = vmatpush3.bf16.msra.mxu1 %v1660_v11 }
 0x41f   :  { %v757_v44 = vmax.f32 %v744_v42, 0.0  ;;  %1676 = vmatprep.subr.bf16.mxu1 %v1902_v26 }
 0x420   :  { %v748_v45 = vpop.f32.mrb[28].mxu0 }
 0x421   :  { %v749_v46 = vadd.f32 %v1109_v18, %v748_v45  ;;  %v1430_v47 = vpop.f32.mrb[29].mxu0  ;;  %1479 = vmatmul.mubr.f32.gmra.mrb[38].mxu1 %v757_v44 }
 0x422   :  { %1481 = vmatprep.mubr.msk.f32.mxu1 %vm1903_vm0, %v1904_v27  ;;  %1684 = vmatpush3.bf16.msra.mxu1 %v1663_v14 }
 0x423   :  { %v758_v48 = vmax.f32 %v749_v46, 0.0  ;;  %1677 = vmatprep.subr.bf16.mxu1 %v1902_v26 }
 0x425   :  { %1482 = vmatmul.mubr.f32.gmra.mrb[40].mxu1 %v758_v48 }
 0x426   :  { %1685 = vmatpush3.bf16.msra.mxu1 %v1666_v17  ;;  %1528 = vmatprep.mubr.msk.f32.mxu1 %vm1903_vm0, %v1904_v27 }
 0x427   :  { %1678 = vmatprep.subr.bf16.mxu1 %v1902_v26 }
 0x42a   :  { %1686 = vmatpush3.bf16.msra.mxu1 %v1669_v51 }
 0x4e0   :  { %v848_v53 = vpop.f32.mrb[28].mxu1 }
 0x4e1   :  { %v849_v54 = vadd.f32 %v1110_v52, %v848_v53  ;;  %v1465_v55 = vpop.f32.mrb[29].mxu1 }
 0x4e3   :  { %v882_v56 = vmax.f32 %v849_v54, 0.0 }
 0x4e4   :  { %v853_v57 = vpop.f32.mrb[30].mxu1 }
 0x4e5   :  { %v854_v58 = vadd.f32 %v1110_v52, %v853_v57  ;;  %v1468_v59 = vpop.f32.mrb[31].mxu1  ;;  %1517 = vmatmul.mubr.f32.vlgmr.msra.gmra.mrb[30].mxu0 %v882_v56 }
 0x4e6   :  { %1519 = vmatprep.mubr.msk.f32.mxu0 %vm1903_vm0, %v1904_v27 }
 0x4e7   :  { %v883_v60 = vmax.f32 %v854_v58, 0.0 }
 0x4e8   :  { %v858_v61 = vpop.f32.mrb[32].mxu1 }
 0x4e9   :  { %v859_v26 = vadd.f32 %v1110_v52, %v858_v61  ;;  %v1471_v62 = vpop.f32.mrb[33].mxu1  ;;  %1520 = vmatmul.mubr.f32.gmra.mrb[32].mxu0 %v883_v60 }
 0x4ea   :  { %1522 = vmatprep.mubr.msk.f32.mxu0 %vm1903_vm0, %v1904_v27 }
 0x4eb   :  { %v884_v63 = vmax.f32 %v859_v26, 0.0 }
 0x4ec   :  { %v863_v0 = vpop.f32.mrb[34].mxu1 }
 0x4ed   :  { %v864_v1 = vadd.f32 %v1110_v52, %v863_v0  ;;  %v1474_v2 = vpop.f32.mrb[35].mxu1  ;;  %1523 = vmatmul.mubr.f32.gmra.mrb[34].mxu0 %v884_v63 }
 0x4ee   :  { %1525 = vmatprep.mubr.msk.f32.mxu0 %vm1903_vm0, %v1904_v27 }
 0x4ef   :  { %v885_v3 = vmax.f32 %v864_v1, 0.0 }
 0x4f0   :  { %v868_v4 = vpop.f32.mrb[36].mxu1 }
 0x4f1   :  { %v869_v5 = vadd.f32 %v1110_v52, %v868_v4  ;;  %v1477_v6 = vpop.f32.mrb[37].mxu1  ;;  %1526 = vmatmul.mubr.f32.gmra.mrb[36].mxu0 %v885_v3 }
 0x4f3   :  { %v886_v7 = vmax.f32 %v869_v5, 0.0 }
 0x4f4   :  { %v873_v8 = vpop.f32.mrb[38].mxu1 }
 0x4f5   :  { %v874_v9 = vadd.f32 %v1110_v52, %v873_v8  ;;  %v1480_v10 = vpop.f32.mrb[39].mxu1  ;;  %1529 = vmatmul.mubr.f32.vlgmr.msra.gmra.mrb[42].mxu1 %v886_v7 }
 0x4f6   :  { %1531 = vmatprep.mubr.msk.f32.mxu1 %vm1903_vm0, %v1904_v27 }
 0x4f7   :  { %v887_v11 = vmax.f32 %v874_v9, 0.0 }
 0x4f8   :  { %v878_v12 = vpop.f32.mrb[40].mxu1 }
 0x4f9   :  { %v879_v13 = vadd.f32 %v1110_v52, %v878_v12  ;;  %v1483_v14 = vpop.f32.mrb[41].mxu1  ;;  %1532 = vmatmul.mubr.f32.gmra.mrb[44].mxu1 %v887_v11 }
 0x4fa   :  { %1534 = vmatprep.mubr.msk.f32.mxu1 %vm1903_vm0, %v1904_v27 }
 0x4fb   :  { %v888_v15 = vmax.f32 %v879_v13, 0.0 }
 0x4fd   :  { %1535 = vmatmul.mubr.f32.gmra.mrb[46].mxu1 %v888_v15 }
 0x5b8   :  { %v978_v17 = vpop.f32.mrb[30].mxu0 }
 0x5b9   :  { %v979_v18 = vadd.f32 %v1111_v16, %v978_v17  ;;  %v1518_v19 = vpop.f32.mrb[31].mxu0 }
 0x5bb   :  { %1012 = vmax.xlane.f32.xlu0 %v979_v18 }
 0x5bc   :  { %v983_v20 = vpop.f32.mrb[32].mxu0 }
 0x5bd   :  { %v984_v21 = vadd.f32 %v1111_v16, %v983_v20  ;;  %v1521_v22 = vpop.f32.mrb[33].mxu0 }
 0x5bf   :  { %1014 = vmax.xlane.f32.xlu0 %v984_v21 }
 0x5c0   :  { %v988_v23 = vpop.f32.mrb[34].mxu0 }
 0x5c1   :  { %v989_v24 = vadd.f32 %v1111_v16, %v988_v23  ;;  %v1524_v25 = vpop.f32.mrb[35].mxu0 }
 0x5c3   :  { %1016 = vmax.xlane.f32.xlu1 %v989_v24 }
 0x5c4   :  { %v993_v28 = vpop.f32.mrb[36].mxu0 }
 0x5c5   :  { %v994_v29 = vadd.f32 %v1111_v16, %v993_v28  ;;  %v1527_v30 = vpop.f32.mrb[37].mxu0 }
 0x5c7   :  { %1018 = vmax.xlane.f32.xlu1 %v994_v29 }
 0x5c8   :  { %v998_v27 = vpop.f32.mrb[42].mxu1 }
 0x5c9   :  { %v999_v31 = vadd.f32 %v1111_v16, %v998_v27  ;;  %v1530_v32 = vpop.f32.mrb[43].mxu1 }
 0x5cb   :  { %1020 = vmax.xlane.f32.xlu0 %v999_v31 }
 0x5cc   :  { %v1003_v33 = vpop.f32.mrb[44].mxu1 }
 0x5cd   :  { %v1004_v34 = vadd.f32 %v1111_v16, %v1003_v33  ;;  %v1533_v35 = vpop.f32.mrb[45].mxu1 }
 0x5cf   :  { %1022 = vmax.xlane.f32.xlu1 %v1004_v34 }
 0x5d0   :  { %v1008_v36 = vpop.f32.mrb[46].mxu1 }
 0x5d1   :  { %v1009_v37 = vadd.f32 %v1111_v16, %v1008_v36  ;;  %v1536_v38 = vpop.f32.mrb[47].mxu1 }
 0x5d3   :  { %1024 = vmax.xlane.f32.xlu0 %v1009_v37 }
 0x648   :  { %v1013_v39 = vpop.xlane.xlu0 %1012 }
 0x649   :  { %v1026_v40 = vsub.f32 %v979_v18, %v1013_v39 }
 0x64b   :  { %v1033_v41 = vmul.f32 1.442695, %v1026_v40 }
 0x64c   :  { %v1015_v42 = vpop.xlane.xlu0 %1014 }
 0x64d   :  { %1703 = vpow2.f32 %v1033_v41  ;;  %v1027_v43 = vsub.f32 %v984_v21, %v1015_v42 }
 0x64f   :  { %v1035_v44 = vmul.f32 1.442695, %v1027_v43 }
 0x650   :  { %v1017_v45 = vpop.xlane.xlu1 %1016 }
 0x651   :  { %1705 = vpow2.f32 %v1035_v44  ;;  %v1028_v46 = vsub.f32 %v989_v24, %v1017_v45 }
 0x653   :  { %v1037_v47 = vmul.f32 1.442695, %v1028_v46 }
 0x654   :  { %v1019_v48 = vpop.xlane.xlu1 %1018 }
 0x655   :  { %1707 = vpow2.f32 %v1037_v47  ;;  %v1029_v49 = vsub.f32 %v994_v29, %v1019_v48 }
 0x657   :  { %v1704_v50 = vpop.eup %1703  ;;  %v1039_v51 = vmul.f32 1.442695, %v1029_v49 }
 0x658   :  { %v1021_v52 = vpop.xlane.xlu0 %1020  ;;  %1047 = vadd.xlane.f32.xlu1 %v1704_v50 }
 0x659   :  { %1709 = vpow2.f32 %v1039_v51  ;;  %v1030_v53 = vsub.f32 %v999_v31, %v1021_v52 }
 0x65b   :  { %v1706_v54 = vpop.eup %1705  ;;  %v1041_v55 = vmul.f32 1.442695, %v1030_v53 }
 0x65c   :  { %v1023_v56 = vpop.xlane.xlu1 %1022  ;;  %1049 = vadd.xlane.f32.xlu0 %v1706_v54 }
 0x65d   :  { %1711 = vpow2.f32 %v1041_v55  ;;  %v1031_v57 = vsub.f32 %v1004_v34, %v1023_v56 }
 0x65f   :  { %v1708_v58 = vpop.eup %1707  ;;  %v1043_v59 = vmul.f32 1.442695, %v1031_v57 }
 0x660   :  { %1051 = vadd.xlane.f32.xlu1 %v1708_v58  ;;  %v1025_v60 = vpop.xlane.xlu0 %1024 }
 0x661   :  { %1713 = vpow2.f32 %v1043_v59  ;;  %v1032_v61 = vsub.f32 %v1009_v37, %v1025_v60 }
 0x663   :  { %v1710_v26 = vpop.eup %1709  ;;  %v1045_v62 = vmul.f32 1.442695, %v1032_v61 }
 0x664   :  { %1053 = vadd.xlane.f32.xlu0 %v1710_v26 }
 0x665   :  { %1715 = vpow2.f32 %v1045_v62 }
 0x667   :  { %v1712_v63 = vpop.eup %1711 }
 0x668   :  { %1055 = vadd.xlane.f32.xlu1 %v1712_v63 }
 0x66b   :  { %v1714_v0 = vpop.eup %1713 }
 0x66c   :  { %1057 = vadd.xlane.f32.xlu0 %v1714_v0 }
 0x66f   :  { %v1716_v1 = vpop.eup %1715 }
 0x670   :  { %1059 = vadd.xlane.f32.xlu1 %v1716_v1 }
 0x6e5   :  { %v1048_v2 = vpop.xlane.xlu1 %1047 }
 0x6e6   :  { %1717 = vrcp.f32 %v1048_v2 }
 0x6e9   :  { %v1050_v3 = vpop.xlane.xlu0 %1049 }
 0x6ea   :  { %1719 = vrcp.f32 %v1050_v3 }
 0x6ed   :  { %v1052_v4 = vpop.xlane.xlu1 %1051 }
 0x6ee   :  { %1721 = vrcp.f32 %v1052_v4 }
 0x6f0   :  { %v1718_v5 = vpop.eup %1717 }
 0x6f1   :  { %v1062_v6 = vmul.f32 %v1718_v5, %v1704_v50  ;;  %v1054_v7 = vpop.xlane.xlu0 %1053 }
 0x6f2   :  { %1723 = vrcp.f32 %v1054_v7 }
 0x6f3   :  { %1075 = vst [vmem:[%s2472_s13] sm:$0xff] %v1062_v6 }
 0x6f4   :  { %v1720_v8 = vpop.eup %1719 }
 0x6f5   :  { %v1064_v9 = vmul.f32 %v1720_v8, %v1706_v54  ;;  %v1056_v10 = vpop.xlane.xlu1 %1055 }
 0x6f6   :  { %1725 = vrcp.f32 %v1056_v10 }
 0x6f7   :  { %1076 = vst [vmem:[%s2472_s13 + $0x8] sm:$0xff] %v1064_v9 }
 0x6f8   :  { %v1722_v11 = vpop.eup %1721 }
 0x6f9   :  { %v1066_v12 = vmul.f32 %v1722_v11, %v1708_v58  ;;  %v1058_v13 = vpop.xlane.xlu0 %1057 }
 0x6fa   :  { %1727 = vrcp.f32 %v1058_v13 }
 0x6fb   :  { %1077 = vst [vmem:[%s2472_s13 + $0x10] sm:$0xff] %v1066_v12 }
 0x6fc   :  { %v1724_v14 = vpop.eup %1723 }
 0x6fd   :  { %v1068_v15 = vmul.f32 %v1724_v14, %v1710_v26  ;;  %v1060_v16 = vpop.xlane.xlu1 %1059 }
 0x6fe   :  { %1729 = vrcp.f32 %v1060_v16 }
 0x6ff   :  { %1078 = vst [vmem:[%s2472_s13 + $0x18] sm:$0xff] %v1068_v15 }
 0x700   :  { %v1726_v17 = vpop.eup %1725 }
 0x701   :  { %v1070_v18 = vmul.f32 %v1726_v17, %v1712_v63 }
 0x703   :  { %1079 = vst [vmem:[%s2472_s13 + $0x20] sm:$0xff] %v1070_v18 }
 0x704   :  { %v1728_v19 = vpop.eup %1727 }
 0x705   :  { %v1072_v20 = vmul.f32 %v1728_v19, %v1714_v0 }
 0x707   :  { %1080 = vst [vmem:[%s2472_s13 + $0x28] sm:$0xff] %v1072_v20 }
 0x708   :  { %v1730_v21 = vpop.eup %1729 }
 0x709   :  { %v1074_v22 = vmul.f32 %v1730_v21, %v1716_v1 }
 0x70b   :  { %1081 = vst [vmem:[%s2472_s13 + $0x30] sm:$0xff] %v1074_v22 }
 0x70c   :  { %1090 = vsyncpa [#allocation3], 1 }
 0x70d   :  { %1091 = vsyncpa [#allocation5], 1 }
 0x70e   :  { %1092 = vsyncpa [#allocation8], 1 }
 0x70f   :  { %1093 = vsyncpa [#allocation11], 1 }

// kernel: forward.3
= control target key start
LH: loop header
LB: loop body
LE: loop exit
PB: predicated region body
PF: predicated region fallthrough
CT: control target
= control target key end

     0   :  { %s2751_s0 = inlined_call_operand.vmem [shape: s32[2,2], index: 0, kind: input, shape index: {}]   ;;  %s2752_s1 = inlined_call_operand.vmem [shape: s32[2,2], index: 1, kind: input, shape index: {}]   ;;  %s2753_s2 = inlined_call_operand.vmem [shape: s32[26], index: 2, kind: input, shape index: {}]   ;;  %s2754_s3 = inlined_call_operand.vmem [shape: s32[26], index: 3, kind: input, shape index: {}]   ;;  %s2755_s4 = inlined_call_operand.vmem [shape: f32[56,128], index: 4, kind: input, shape index: {}]   ;;  %s2756_s5 = inlined_call_operand.vmem [shape: f32[16,128], index: 5, kind: input, shape index: {}]   ;;  %s2757_s6 = inlined_call_operand.vmem [shape: f32[128,128], index: 6, kind: input, shape index: {}]   ;;  %s2758_s7 = inlined_call_operand.vmem [shape: f32[128,128], index: 7, kind: input, shape index: {}]   ;;  %s2759_s8 = inlined_call_operand.vmem [shape: f32[128,128], index: 8, kind: input, shape index: {}]   ;;  %s2760_s9 = inlined_call_operand.vmem [shape: f32[1,128], index: 9, kind: input, shape index: {}]   ;;  %s2761_s10 = inlined_call_operand.vmem [shape: f32[128,128], index: 10, kind: input, shape index: {}]   ;;  %s2762_s11 = inlined_call_operand.vmem [shape: f32[1,128], index: 11, kind: input, shape index: {}]   ;;  %s2763_s12 = inlined_call_operand.vmem [shape: f32[128,128], index: 12, kind: input, shape index: {}]   ;;  %s2764_s13 = inlined_call_operand.vmem [shape: f32[1,128], index: 13, kind: input, shape index: {}]   ;;  %s2765_s14 = inlined_call_operand.hbm [shape: f32[8,128], index: 14, kind: output, shape index: {}]  }
   0x1   :  { %2773 = sst [smem:[#allocation26_spill]] %s2755_s4 }
   0x2   :  { %2774 = sst [smem:[#allocation27_spill]] %s2756_s5 }
   0x3   :  { %2775 = sst [smem:[#allocation28_spill]] %s2760_s9 }
   0x4   :  { %2776 = sst [smem:[#allocation29_spill]] %s2761_s10 }
   0x5   :  { %2777 = sst [smem:[#allocation30_spill]] %s2762_s11 }
   0x6   :  { %2778 = sst [smem:[#allocation31_spill]] %s2763_s12 }
   0x7   :  { %2779 = sst [smem:[#allocation32_spill]] %s2764_s13 }
   0x8   :  { %2780 = sst [smem:[#allocation33_spill]] %s2765_s14 }
   0x9   :  { %19 = vsyncpa [#allocation7], 0 }
   0xa   :  { %20 = vsyncpa [#allocation9], 0 }
   0xb   :  { %21 = vsyncpa [#allocation12], 0  ;;  %s39_s15 = sshll.u32 %s2752_s1, 4  ;;  %s40_s15 = int_to_ptr.vmem [resolvable:$true] %s39_s15 }
   0xc   :  { %22 = vsyncpa [#allocation6], 0  ;;  %s29_s18 = sshll.u32 %s2751_s0, 4  ;;  %s1695_s19 = scalar_lea.vmem %s40_s15, 32  ;;  %s30_s18 = int_to_ptr.vmem [resolvable:$true] %s29_s18 }
   0xd   :  { %p1696_p0 = scmp.ne.s32.totalorder %s40_s15, %s1695_s19  ;;  %p1700_p1 = scmp.lt.s32.totalorder %s40_s15, %s40_s15 }
   0xe   :  { %p1701_p2 = scmp.lt.s32.totalorder %s1695_s19, %s1695_s19 }
  0x10   :  { %p1702_p3 = por %p1701_p2, %p1700_p1 }
  0x12   :  { %p1703_p4 = pnand %p1702_p3, %p1696_p0 }
  0x14   :  { %1706 = shalt.err (!%p1703_p4)
}
  0x15   :  { %s1773_s20 = smov [#allocation8]   ;;  %s1707_s21 = scalar_lea.vmem %s30_s18, 32 }
  0x16   :  { %42 = dma.vmem_to_smem %s40_s15, 32, %s1773_s20, [#allocation9]  }
  0x17   :  { %p1708_p5 = scmp.ne.s32.totalorder %s30_s18, %s1707_s21  ;;  %p1712_p6 = scmp.lt.s32.totalorder %s30_s18, %s30_s18 }
  0x18   :  { %p1713_p7 = scmp.lt.s32.totalorder %s1707_s21, %s1707_s21 }
  0x1a   :  { %p1714_p8 = por %p1713_p7, %p1712_p6 }
  0x1c   :  { %p1715_p9 = pnand %p1714_p8, %p1708_p5 }
  0x1e   :  { %1718 = shalt.err (!%p1715_p9)
}
  0x1f   :  { %s1774_s1 = smov [#allocation5]   ;;  %s49_s23 = sshll.u32 %s2753_s2, 4  ;;  %s50_s23 = int_to_ptr.vmem [resolvable:$true] %s49_s23 }
  0x20   :  { %32 = dma.vmem_to_smem %s30_s18, 32, %s1774_s1, [#allocation7]  }
  0x21   :  { %s59_s26 = sshll.u32 %s2754_s3, 4  ;;  %s1719_s27 = scalar_lea.vmem %s50_s23, 16  ;;  %s60_s26 = int_to_ptr.vmem [resolvable:$true] %s59_s26 }
  0x22   :  { %p1720_p10 = scmp.ne.s32.totalorder %s50_s23, %s1719_s27  ;;  %p1724_p11 = scmp.lt.s32.totalorder %s50_s23, %s50_s23 }
  0x23   :  { %p1725_p12 = scmp.lt.s32.totalorder %s1719_s27, %s1719_s27 }
  0x25   :  { %p1726_p13 = por %p1725_p12, %p1724_p11 }
  0x27   :  { %p1727_p0 = pnand %p1726_p13, %p1720_p10 }
  0x29   :  { %1730 = shalt.err (!%p1727_p0)
}
  0x2a   :  { %s1775_s28 = smov [#allocation10]   ;;  %s1731_s29 = scalar_lea.vmem %s60_s26, 16 }
  0x2b   :  { %52 = dma.vmem_to_smem %s50_s23, 16, %s1775_s28, [#allocation9]  }
  0x2c   :  { %p1732_p1 = scmp.ne.s32.totalorder %s60_s26, %s1731_s29  ;;  %p1736_p2 = scmp.lt.s32.totalorder %s60_s26, %s60_s26 }
  0x2d   :  { %p1737_p3 = scmp.lt.s32.totalorder %s1731_s29, %s1731_s29 }
  0x2f   :  { %p1738_p4 = por %p1737_p3, %p1736_p2 }
  0x31   :  { %p1739_p5 = pnand %p1738_p4, %p1732_p1 }
  0x33   :  { %1742 = shalt.err (!%p1739_p5)
}
  0x34   :  { %s1776_s2 = smov [#allocation11]  }
  0x35   :  { %62 = dma.vmem_to_smem %s60_s26, 16, %s1776_s2, [#allocation12]  }
  0x36   :  { %1765 = dma.done.wait [#allocation7], 32  }
  0x37   :  { %1766 = vsyncadd [#allocation7], 4294967264 }
  0x38   :  { %1767 = dma.done.wait [#allocation9], 48  }
  0x39   :  { %1768 = vsyncadd [#allocation9], 4294967248 }
  0x3a   :  { %1769 = dma.done.wait [#allocation12], 16  }
  0x3b   :  { %1770 = vsyncadd [#allocation12], 4294967280 }
  0x3c   :  { %95 = sfence }
  0x3d   :  { %v661_v0 = vld [vmem:[%s2758_s7] sm:$0xff]  ;;  %v662_v1 = vld [vmem:[%s2758_s7 + $0x8] sm:$0xff]  ;;  %v1777_v3 = vmov 0.0|0.0   ;;  %v663_v6 = vld [vmem:[%s2758_s7 + $0x10] sm:$0xff]  ;;  %v1778_v8 = vmov 0.0   ;;  %s1891_s23 = sld [smem:[#allocation8]] }
  0x3e   :  { %v644_v2 = vld [vmem:[%s2757_s6] sm:$0xff]  ;;  %1563 = vmatprep.subr.bf16.mxu0 %v1777_v3  ;;  %v1564_v4 = vpack.c.bf16 %v662_v1, %v661_v0  ;;  %1587 = vmatprep.subr.bf16.mxu1 %v1777_v3  ;;  %v645_v5 = vld [vmem:[%s2757_s6 + $0x8] sm:$0xff]  ;;  %v664_v7 = vld [vmem:[%s2758_s7 + $0x18] sm:$0xff]  ;;  %96 = vst [vmem:[#allocation2] sm:$0xff] %v1778_v8  ;;  %vm1779_vm0 = vmmov 0   ;;  %s1901_s28 = sld [smem:[#allocation8 + $0x1]] }
  0x3f   :  { %97 = vst [vmem:[#allocation3] sm:$0xff] %v1778_v8  ;;  %98 = vst [vmem:[#allocation4] sm:$0xff] %v1778_v8  ;;  %v1588_v9 = vpack.c.bf16 %v645_v5, %v644_v2  ;;  %v646_v10 = vld [vmem:[%s2757_s6 + $0x10] sm:$0xff]  ;;  %v647_v11 = vld [vmem:[%s2757_s6 + $0x18] sm:$0xff]  ;;  %1420 = vmatprep.mubr.msk.f32.mxu0 %vm1779_vm0, %v1778_v8  ;;  %1455 = vmatprep.mubr.msk.f32.mxu1 %vm1779_vm0, %v1778_v8  ;;  %v1567_v12 = vpack.c.bf16 %v664_v7, %v663_v6  ;;  %s1912_s15 = sld [smem:[#allocation8 + $0x80]]  ;;  %s1921_s20 = sld [smem:[#allocation8 + $0x81]] }
  0x40   :  { %1565 = vmatpush3.bf16.msra.mxu0 %v1564_v4  ;;  %v1591_v13 = vpack.c.bf16 %v647_v11, %v646_v10  ;;  %v665_v14 = vld [vmem:[%s2758_s7 + $0x20] sm:$0xff]  ;;  %v666_v15 = vld [vmem:[%s2758_s7 + $0x28] sm:$0xff]  ;;  %s1923_s21 = sld [smem:[#allocation5]]  ;;  %s1925_s1 = sld [smem:[#allocation5 + $0x1]]  ;;  %v667_v20 = vld [vmem:[%s2758_s7 + $0x30] sm:$0xff] }
  0x41   :  { %1589 = vmatpush3.bf16.msra.mxu1 %v1588_v9  ;;  %1566 = vmatprep.subr.bf16.mxu0 %v1777_v3  ;;  %v648_v16 = vld [vmem:[%s2757_s6 + $0x20] sm:$0xff]  ;;  %v649_v17 = vld [vmem:[%s2757_s6 + $0x28] sm:$0xff]  ;;  %v1570_v18 = vpack.c.bf16 %v666_v15, %v665_v14  ;;  %v668_v21 = vld [vmem:[%s2758_s7 + $0x38] sm:$0xff]  ;;  %s2079_s9 = sld [smem:[#allocation5 + $0x80]]  ;;  %s2081_s18 = sld [smem:[#allocation5 + $0x81]] }
  0x42   :  { %1590 = vmatprep.subr.bf16.mxu1 %v1777_v3  ;;  %v1594_v19 = vpack.c.bf16 %v649_v17, %v648_v16  ;;  %v650_v22 = vld [vmem:[%s2757_s6 + $0x30] sm:$0xff]  ;;  %v651_v23 = vld [vmem:[%s2757_s6 + $0x38] sm:$0xff]  ;;  %v1573_v25 = vpack.c.bf16 %v668_v21, %v667_v20  ;;  %v669_v29 = vld [vmem:[%s2758_s7 + $0x40] sm:$0xff] }
  0x43   :  { %s1928_s0 = sld [smem:[#allocation10 + %s1891_s23]]  ;;  %s160_s3 = scalar_lea.vmem %s2755_s4, %s1891_s23  ;;  %v1597_v28 = vpack.c.bf16 %v651_v23, %v650_v22  ;;  %v670_v30 = vld [vmem:[%s2758_s7 + $0x48] sm:$0xff]  ;;  %v652_v32 = vld [vmem:[%s2757_s6 + $0x40] sm:$0xff]  ;;  %v671_v40 = vld [vmem:[%s2758_s7 + $0x50] sm:$0xff] }
  0x44   :  { %1568 = vmatpush3.bf16.msra.mxu0 %v1567_v12  ;;  %s1931_s22 = sld [smem:[#allocation11 + %s1891_s23]]  ;;  %s227_s27 = scalar_lea.vmem %s2755_s4, %s1901_s28  ;;  %v161_v24 = vld [vmem:[%s160_s3] sm:$0x1]  ;;  %v653_v33 = vld [vmem:[%s2757_s6 + $0x48] sm:$0xff]  ;;  %v1576_v36 = vpack.c.bf16 %v670_v30, %v669_v29  ;;  %v672_v41 = vld [vmem:[%s2758_s7 + $0x58] sm:$0xff] }
  0x45   :  { %1592 = vmatpush3.bf16.msra.mxu1 %v1591_v13  ;;  %1569 = vmatprep.subr.bf16.mxu0 %v1777_v3  ;;  %s1945_s30 = sld [smem:[#allocation10 + %s1901_s28]]  ;;  %162 = vst [vmem:[#allocation3] sm:$0x1] %v161_v24  ;;  %v228_v26 = vld [vmem:[%s227_s27] sm:$0x1]  ;;  %s1217_s10 = scalar_lea.vmem %s2755_s4, %s1921_s20  ;;  %v1600_v39 = vpack.c.bf16 %v653_v33, %v652_v32  ;;  %v654_v42 = vld [vmem:[%s2757_s6 + $0x50] sm:$0xff]  ;;  %v1579_v45 = vpack.c.bf16 %v672_v41, %v671_v40 }
  0x46   :  { %1593 = vmatprep.subr.bf16.mxu1 %v1777_v3  ;;  %s1955_s24 = sld [smem:[#allocation11 + %s1901_s28]]  ;;  %v295_v27 = vld [vmem:[%s160_s3] sm:$0x1]  ;;  %229 = vst [vmem:[#allocation3 + $0x1] sm:$0x1] %v228_v26  ;;  %v655_v43 = vld [vmem:[%s2757_s6 + $0x58] sm:$0xff]  ;;  %s291_s5 = scalar_lea.vmem %s2755_s4, %s1925_s1 }
  0x47   :  { %s1962_s29 = sld [smem:[#allocation10 + %s1891_s23]]  ;;  %296 = vst [vmem:[#allocation3 + $0x2] sm:$0x1] %v295_v27  ;;  %v362_v31 = vld [vmem:[%s227_s27] sm:$0x1]  ;;  %s1198_s27 = scalar_lea.vmem %s2755_s4, %s1912_s15  ;;  %v1603_v48 = vpack.c.bf16 %v655_v43, %v654_v42  ;;  %v674_v49 = vld [vmem:[%s2758_s7 + $0x68] sm:$0xff] }
  0x48   :  { %s1965_s2 = sld [smem:[#allocation11 + %s1891_s23]]  ;;  %1571 = vmatpush3.bf16.msra.mxu0 %v1570_v18  ;;  %363 = vst [vmem:[#allocation3 + $0x3] sm:$0x1] %v362_v31  ;;  %v1283_v34 = vld [vmem:[%s1198_s27 + $0x1a] sm:$0x1]  ;;  %v673_v44 = vld [vmem:[%s2758_s7 + $0x60] sm:$0xff] }
  0x49   :  { %s1968_s16 = sld [smem:[#allocation10 + %s1901_s28]]  ;;  %1595 = vmatpush3.bf16.msra.mxu1 %v1594_v19  ;;  %1572 = vmatprep.subr.bf16.mxu0 %v1777_v3  ;;  %v1293_v35 = vld [vmem:[%s1198_s27 + $0x1a] sm:$0x1]  ;;  %432 = vst [vmem:[#allocation3 + $0x4] sm:$0x1] %v1283_v34  ;;  %v656_v50 = vld [vmem:[%s2757_s6 + $0x60] sm:$0xff]  ;;  %v1582_v54 = vpack.c.bf16 %v674_v49, %v673_v44 }
  0x4a   :  { %s1971_s17 = sld [smem:[#allocation11 + %s1901_s28]]  ;;  %1596 = vmatprep.subr.bf16.mxu1 %v1777_v3  ;;  %v1288_v37 = vld [vmem:[%s1217_s10 + $0x1a] sm:$0x1]  ;;  %570 = vst [vmem:[#allocation3 + $0x6] sm:$0x1] %v1293_v35  ;;  %v657_v51 = vld [vmem:[%s2757_s6 + $0x68] sm:$0xff] }
  0x4b   :  { %s1981_s28 = sld [smem:[#allocation10 + %s1912_s15]]  ;;  %v1298_v38 = vld [vmem:[%s1217_s10 + $0x1a] sm:$0x1]  ;;  %501 = vst [vmem:[#allocation3 + $0x5] sm:$0x1] %v1288_v37  ;;  %v1606_v55 = vpack.c.bf16 %v657_v51, %v656_v50  ;;  %v675_v56 = vld [vmem:[%s2758_s7 + $0x70] sm:$0xff] }
  0x4c   :  { %s1984_s3 = sld [smem:[#allocation11 + %s1912_s15]]  ;;  %1574 = vmatpush3.bf16.msra.mxu0 %v1573_v25  ;;  %639 = vst [vmem:[#allocation3 + $0x7] sm:$0x1] %v1298_v38  ;;  %v292_v52 = vld [vmem:[%s291_s5] sm:$0x1]  ;;  %v676_v57 = vld [vmem:[%s2758_s7 + $0x78] sm:$0xff] }
  0x4d   :  { %s1998_s13 = sld [smem:[#allocation10 + %s1921_s20]]  ;;  %1598 = vmatpush3.bf16.msra.mxu1 %v1597_v28  ;;  %1575 = vmatprep.subr.bf16.mxu0 %v1777_v3  ;;  %v359_v53 = vld [vmem:[%s291_s5] sm:$0x1]  ;;  %293 = vst [vmem:[#allocation2 + $0x2] sm:$0x1] %v292_v52  ;;  %v658_v58 = vld [vmem:[%s2757_s6 + $0x70] sm:$0xff]  ;;  %v1585_v60 = vpack.c.bf16 %v676_v57, %v675_v56 }
  0x4e   :  { %s2001_s11 = sld [smem:[#allocation11 + %s1921_s20]]  ;;  %1599 = vmatprep.subr.bf16.mxu1 %v1777_v3  ;;  %360 = vst [vmem:[#allocation2 + $0x3] sm:$0x1] %v359_v53  ;;  %v659_v59 = vld [vmem:[%s2757_s6 + $0x78] sm:$0xff]  ;;  %v818_v62 = vld [vmem:[%s2759_s8] sm:$0xff]  ;;  %v819_v63 = vld [vmem:[%s2759_s8 + $0x8] sm:$0xff] }
  0x4f   :  { %s2008_s14 = sld [smem:[#allocation10 + %s1912_s15]]  ;;  %v1609_v61 = vpack.c.bf16 %v659_v59, %v658_v58  ;;  %v1612_v1 = vpack.c.bf16 %v819_v63, %v818_v62  ;;  %v820_v2 = vld [vmem:[%s2759_s8 + $0x10] sm:$0xff]  ;;  %v821_v4 = vld [vmem:[%s2759_s8 + $0x18] sm:$0xff]  ;;  %v822_v6 = vld [vmem:[%s2759_s8 + $0x20] sm:$0xff] }
  0x50   :  { %s2011_s26 = sld [smem:[#allocation11 + %s1912_s15]]  ;;  %1577 = vmatpush3.bf16.msra.mxu0 %v1576_v36  ;;  %v1615_v5 = vpack.c.bf16 %v821_v4, %v820_v2  ;;  %v823_v7 = vld [vmem:[%s2759_s8 + $0x28] sm:$0xff]  ;;  %v824_v10 = vld [vmem:[%s2759_s8 + $0x30] sm:$0xff]  ;;  %v825_v11 = vld [vmem:[%s2759_s8 + $0x38] sm:$0xff] }
  0x51   :  { %2781 = sst [smem:[#allocation18_spill]] %s1981_s28  ;;  %1601 = vmatpush3.bf16.msra.mxu1 %v1600_v39  ;;  %1578 = vmatprep.subr.bf16.mxu0 %v1777_v3  ;;  %v1618_v9 = vpack.c.bf16 %v823_v7, %v822_v6  ;;  %v1621_v12 = vpack.c.bf16 %v825_v11, %v824_v10  ;;  %v826_v13 = vld [vmem:[%s2759_s8 + $0x40] sm:$0xff]  ;;  %v827_v14 = vld [vmem:[%s2759_s8 + $0x48] sm:$0xff]  ;;  %v828_v18 = vld [vmem:[%s2759_s8 + $0x50] sm:$0xff] }
  0x52   :  { %2782 = sst [smem:[#allocation19_spill]] %s1984_s3  ;;  %1602 = vmatprep.subr.bf16.mxu1 %v1777_v3  ;;  %v1624_v17 = vpack.c.bf16 %v827_v14, %v826_v13  ;;  %v829_v19 = vld [vmem:[%s2759_s8 + $0x58] sm:$0xff]  ;;  %v830_v21 = vld [vmem:[%s2759_s8 + $0x60] sm:$0xff]  ;;  %v831_v22 = vld [vmem:[%s2759_s8 + $0x68] sm:$0xff] }
  0x53   :  { %2783 = sst [smem:[#allocation20_spill]] %s1998_s13  ;;  %v660_v0 = vld [vmem:[#allocation3] sm:$0xff]  ;;  %v1627_v20 = vpack.c.bf16 %v829_v19, %v828_v18  ;;  %v1630_v23 = vpack.c.bf16 %v831_v22, %v830_v21  ;;  %v832_v24 = vld [vmem:[%s2759_s8 + $0x70] sm:$0xff]  ;;  %v833_v25 = vld [vmem:[%s2759_s8 + $0x78] sm:$0xff] }
  0x54   :  { %2784 = sst [smem:[#allocation21_spill]] %s2001_s11  ;;  %1580 = vmatpush3.bf16.msra.mxu0 %v1579_v45  ;;  %v1633_v26 = vpack.c.bf16 %v833_v25, %v832_v24 }
  0x55   :  { %2785 = sst [smem:[#allocation22_spill]] %s2008_s14  ;;  %1604 = vmatpush3.bf16.msra.mxu1 %v1603_v48  ;;  %1581 = vmatprep.subr.bf16.mxu0 %v1777_v3 }
  0x56   :  { %2786 = sst [smem:[#allocation23_spill]] %s2011_s26  ;;  %1605 = vmatprep.subr.bf16.mxu1 %v1777_v3 }
  0x57   :  { %s2021_s15 = sld [smem:[#allocation10 + %s1921_s20]] }
  0x58   :  { %s2024_s10 = sld [smem:[#allocation11 + %s1921_s20]]  ;;  %1583 = vmatpush3.bf16.msra.mxu0 %v1582_v54 }
  0x59   :  { %s2034_s12 = sld [smem:[#allocation10 + %s1923_s21]]  ;;  %1607 = vmatpush3.bf16.msra.mxu1 %v1606_v55  ;;  %1584 = vmatprep.subr.bf16.mxu0 %v1777_v3 }
  0x5a   :  { %s2037_s23 = sld [smem:[#allocation11 + %s1923_s21]]  ;;  %1608 = vmatprep.subr.bf16.mxu1 %v1777_v3 }
  0x5b   :  { %s2047_s26 = sld [smem:[#allocation10 + %s1923_s21]] }
  0x5c   :  { %s2050_s19 = sld [smem:[#allocation11 + %s1923_s21]]  ;;  %1586 = vmatpush3.bf16.msra.mxu0 %v1585_v60 }
  0x5d   :  { %2787 = sst [smem:[#allocation24_spill]] %s2021_s15  ;;  %1610 = vmatpush3.bf16.msra.mxu1 %v1609_v61  ;;  %1611 = vmatprep.subr.bf16.mxu0 %v1777_v3 }
  0x5e   :  { %2788 = sst [smem:[#allocation25_spill]] %s2024_s10  ;;  %s157_s10 = scalar_lea.vmem %s2755_s4, %s1923_s21  ;;  %1635 = vmatprep.subr.bf16.mxu1 %v1777_v3 }
  0x5f   :  { %v158_v46 = vld [vmem:[%s157_s10] sm:$0x1]  ;;  %s2053_s25 = sld [smem:[#allocation10 + %s1925_s1]]  ;;  %s109_s11 = ssub.s32 %s2034_s12, %s1931_s22  ;;  %1421 = vmatmul.mubr.f32.vlgmr.msra.gmra.mrb[0].mxu0 %v660_v0 }
  0x60   :  { %v225_v47 = vld [vmem:[%s157_s10] sm:$0x1]  ;;  %159 = vst [vmem:[#allocation2] sm:$0x1] %v158_v46  ;;  %s2066_s21 = sld [smem:[#allocation11 + %s1925_s1]]  ;;  %s105_s20 = ssub.s32 %s2037_s23, %s1928_s0  ;;  %1613 = vmatpush3.bf16.msra.mxu0 %v1612_v1  ;;  %1490 = vmatprep.mubr.msk.f32.mxu0 %vm1779_vm0, %v1778_v8 }
  0x61   :  { %226 = vst [vmem:[#allocation2 + $0x1] sm:$0x1] %v225_v47  ;;  %s2074_s15 = sld [smem:[#allocation10 + %s1925_s1]]  ;;  %s106_s13 = sshra.s32 %s105_s20, 31  ;;  %1614 = vmatprep.subr.bf16.mxu0 %v1777_v3 }
  0x62   :  { %s2077_s27 = sld [smem:[#allocation11 + %s1925_s1]]  ;;  %s110_s28 = sshra.s32 %s109_s11, 31 }
  0x63   :  { %s107_s14 = sadd.s32 %s106_s13, %s105_s20  ;;  %s111_s1 = sadd.s32 %s110_s28, %s109_s11 }
  0x64   :  { %s108_s3 = sxor.u32 %s107_s14, %s106_s13  ;;  %s112_s4 = sxor.u32 %s111_s1, %s110_s28  ;;  %1616 = vmatpush3.bf16.msra.mxu0 %v1615_v5 }
  0x65   :  { %p113_p6 = scmp.lt.s32.totalorder %s108_s3, %s112_s4  ;;  %s172_s7 = ssub.s32 %s2050_s19, %s1945_s30  ;;  %1617 = vmatprep.subr.bf16.mxu0 %v1777_v3 }
  0x66   :  { %s173_s10 = sshra.s32 %s172_s7, 31  ;;  %s176_s5 = ssub.s32 %s2047_s26, %s1955_s24 }
  0x67   :  { %s2807_s3 = smov (!%p113_p6, %s108_s3), %s112_s4  ;;  %s174_s13 = sadd.s32 %s173_s10, %s172_s7 }
  0x68   :  { %s177_s30 = sshra.s32 %s176_s5, 31  ;;  %s175_s28 = sxor.u32 %s174_s13, %s173_s10  ;;  %1619 = vmatpush3.bf16.msra.mxu0 %v1618_v9 }
  0x69   :  { %s178_s24 = sadd.s32 %s177_s30, %s176_s5  ;;  %s239_s19 = ssub.s32 %s2066_s21, %s1962_s29  ;;  %1620 = vmatprep.subr.bf16.mxu0 %v1777_v3 }
  0x6a   :  { %s179_s26 = sxor.u32 %s178_s24, %s177_s30  ;;  %s240_s14 = sshra.s32 %s239_s19, 31 }
  0x6b   :  { %p180_p7 = scmp.lt.s32.totalorder %s175_s28, %s179_s26  ;;  %s241_s1 = sadd.s32 %s240_s14, %s239_s19 }
  0x6c   :  { %s243_s7 = ssub.s32 %s2053_s25, %s1965_s2  ;;  %s242_s29 = sxor.u32 %s241_s1, %s240_s14  ;;  %1622 = vmatpush3.bf16.msra.mxu0 %v1621_v12 }
  0x6d   :  { %s2809_s28 = smov (!%p180_p7, %s175_s28), %s179_s26  ;;  %s244_s21 = sshra.s32 %s243_s7, 31  ;;  %1623 = vmatprep.subr.bf16.mxu0 %v1777_v3 }
  0x6e   :  { %s245_s2 = sadd.s32 %s244_s21, %s243_s7  ;;  %s306_s25 = ssub.s32 %s2077_s27, %s1968_s16 }
  0x6f   :  { %s246_s6 = sxor.u32 %s245_s2, %s244_s21  ;;  %s307_s11 = sshra.s32 %s306_s25, 31 }
  0x70   :  { %p247_p8 = scmp.lt.s32.totalorder %s242_s29, %s246_s6  ;;  %s308_s13 = sadd.s32 %s307_s11, %s306_s25  ;;  %1625 = vmatpush3.bf16.msra.mxu0 %v1624_v17 }
  0x71   :  { %s309_s30 = sxor.u32 %s308_s13, %s307_s11  ;;  %s310_s24 = ssub.s32 %s2074_s15, %s1971_s17  ;;  %1626 = vmatprep.subr.bf16.mxu0 %v1777_v3 }
  0x72   :  { %s2811_s29 = smov (!%p247_p8, %s242_s29), %s246_s6  ;;  %s311_s16 = sshra.s32 %s310_s24, 31 }
  0x73   :  { %s369_s27 = sld [smem:[#allocation10 + %s2079_s9]]  ;;  %s312_s4 = sadd.s32 %s311_s16, %s310_s24 }
  0x74   :  { %s370_s23 = sld [smem:[#allocation11 + %s2079_s9]]  ;;  %s313_s17 = sxor.u32 %s312_s4, %s311_s16  ;;  %1628 = vmatpush3.bf16.msra.mxu0 %v1627_v20 }
  0x75   :  { %s2789_s1 = sld [smem:[#allocation26_spill]]  ;;  %s2790_s7 = sld [smem:[#allocation19_spill]]  ;;  %1629 = vmatprep.subr.bf16.mxu0 %v1777_v3 }
  0x76   :  { %p314_p9 = scmp.lt.s32.totalorder %s309_s30, %s313_s17  ;;  %s2791_s2 = sld [smem:[#allocation18_spill]] }
  0x77   :  { %s2165_s25 = sld [smem:[#allocation10 + %s2079_s9]]  ;;  %p115_p13 = scmp.ge.s32.totalorder %s2807_s3, 0 }
  0x78   :  { %s439_s6 = sld [smem:[#allocation11 + %s2079_s9]]  ;;  %s2813_s30 = smov (!%p314_p9, %s309_s30), %s313_s17  ;;  %1631 = vmatpush3.bf16.msra.mxu0 %v1630_v23 }
  0x79   :  { %s2169_s11 = sld [smem:[#allocation10 + %s2081_s18]]  ;;  %1632 = vmatprep.subr.bf16.mxu0 %v1777_v3  ;;  %p118_p0 = scmp.ge.s32.totalorder %s2807_s3, 1 }
  0x7a   :  { %s2792_s13 = sld [smem:[#allocation20_spill]]  ;;  %s2793_s4 = sld [smem:[#allocation21_spill]] }
  0x7b   :  { %s1196_s21 = scalar_lea.vmem %s2789_s1, %s2079_s9  ;;  %s377_s24 = ssub.s32 %s369_s27, %s2790_s7 }
  0x7c   :  { %v1282_v15 = vld [vmem:[%s1196_s21 + $0x1a] sm:$0x1]  ;;  %s2175_s26 = sld [smem:[#allocation11 + %s2081_s18]]  ;;  %s373_s9 = ssub.s32 %s370_s23, %s2791_s2  ;;  %1634 = vmatpush3.bf16.msra.mxu0 %v1633_v26 }
  0x7d   :  { %v1287_v16 = vld [vmem:[%s1196_s21 + $0x1a] sm:$0x1]  ;;  %428 = vst [vmem:[#allocation2 + $0x4] sm:$0x1] %v1282_v15  ;;  %s378_s17 = sshra.s32 %s377_s24, 31  ;;  %s374_s15 = sshra.s32 %s373_s9, 31  ;;  %1659 = vmatprep.subr.bf16.mxu0 %v1777_v3 }
  0x7e   :  { %497 = vst [vmem:[#allocation2 + $0x5] sm:$0x1] %v1287_v16  ;;  %s379_s14 = sadd.s32 %s378_s17, %s377_s24  ;;  %s375_s21 = sadd.s32 %s374_s15, %s373_s9 }
  0x7f   :  { %s380_s27 = sxor.u32 %s379_s14, %s378_s17  ;;  %s376_s7 = sxor.u32 %s375_s21, %s374_s15 }
  0x80   :  { %s442_s10 = ssub.s32 %s439_s6, %s2792_s13  ;;  %s2794_s22 = sld [smem:[#allocation22_spill]] }
  0x81   :  { %p381_p10 = scmp.lt.s32.totalorder %s376_s7, %s380_s27  ;;  %s443_s24 = sshra.s32 %s442_s10, 31 }
  0x82   :  { %s444_s19 = sadd.s32 %s443_s24, %s442_s10  ;;  %s446_s20 = ssub.s32 %s2165_s25, %s2793_s4 }
  0x83   :  { %s2815_s7 = smov (!%p381_p10, %s376_s7), %s380_s27  ;;  %s2795_s6 = sld [smem:[#allocation23_spill]] }
  0x84   :  { %s445_s13 = sxor.u32 %s444_s19, %s443_s24  ;;  %s447_s12 = sshra.s32 %s446_s20, 31 }
  0x85   :  { %s448_s25 = sadd.s32 %s447_s12, %s446_s20  ;;  %s2796_s2 = sld [smem:[#allocation25_spill]] }
  0x86   :  { %s511_s4 = ssub.s32 %s2175_s26, %s2794_s22  ;;  %s449_s14 = sxor.u32 %s448_s25, %s447_s12 }
  0x87   :  { %s512_s21 = sshra.s32 %s511_s4, 31  ;;  %p450_p11 = scmp.lt.s32.totalorder %s445_s13, %s449_s14 }
  0x88   :  { %s513_s27 = sadd.s32 %s512_s21, %s511_s4  ;;  %s1234_s26 = scalar_lea.vmem %s2789_s1, %s2081_s18 }
  0x89   :  { %s514_s10 = sxor.u32 %s513_s27, %s512_s21  ;;  %s515_s5 = ssub.s32 %s2169_s11, %s2795_s6  ;;  %v1292_v27 = vld [vmem:[%s1234_s26 + $0x1a] sm:$0x1] }
  0x8a   :  { %s2817_s13 = smov (!%p450_p11, %s445_s13), %s449_s14  ;;  %s516_s8 = sshra.s32 %s515_s5, 31  ;;  %v1297_v28 = vld [vmem:[%s1234_s26 + $0x1a] sm:$0x1]  ;;  %566 = vst [vmem:[#allocation2 + $0x6] sm:$0x1] %v1292_v27 }
  0x8b   :  { %s517_s22 = sadd.s32 %s516_s8, %s515_s5  ;;  %s576_s24 = sld [smem:[#allocation10 + %s2081_s18]]  ;;  %635 = vst [vmem:[#allocation2 + $0x7] sm:$0x1] %v1297_v28 }
  0x8c   :  { %s2797_s19 = sld [smem:[#allocation24_spill]]  ;;  %s518_s11 = sxor.u32 %s517_s22, %s516_s8 }
  0x8d   :  { %s577_s20 = sld [smem:[#allocation11 + %s2081_s18]]  ;;  %p519_p12 = scmp.lt.s32.totalorder %s514_s10, %s518_s11 }
  0x8e   :  { %p121_p1 = scmp.ge.s32.totalorder %s2807_s3, 2  ;;  %p124_p2 = scmp.ge.s32.totalorder %s2807_s3, 3 }
  0x8f   :  { %s2819_s10 = smov (!%p519_p12, %s514_s10), %s518_s11  ;;  %p127_p3 = scmp.ge.s32.totalorder %s2807_s3, 4 }
  0x90   :  { %s2223_s1 = scalar_select %p115_p13, 1, 0 }
  0x91   :  { %s584_s6 = ssub.s32 %s576_s24, %s2796_s2  ;;  %p130_p5 = scmp.ge.s32.totalorder %s2807_s3, 5 }
  0x92   :  { %s585_s18 = sshra.s32 %s584_s6, 31  ;;  %v643_v29 = vld [vmem:[#allocation2] sm:$0xff]  ;;  %p133_p6 = scmp.ge.s32.totalorder %s2807_s3, 7 }
  0x93   :  { %s580_s12 = ssub.s32 %s577_s20, %s2797_s19  ;;  %s586_s9 = sadd.s32 %s585_s18, %s584_s6  ;;  %1456 = vmatmul.mubr.f32.vlgmr.msra.gmra.mrb[0].mxu1 %v643_v29 }
  0x94   :  { %s581_s16 = sshra.s32 %s580_s12, 31  ;;  %s587_s15 = sxor.u32 %s586_s9, %s585_s18  ;;  %1525 = vmatprep.mubr.msk.f32.mxu1 %vm1779_vm0, %v1778_v8 }
  0x95   :  { %s582_s17 = sadd.s32 %s581_s16, %s580_s12  ;;  %p136_p7 = scmp.ge.s32.totalorder %s2807_s3, 8 }
  0x96   :  { %s583_s25 = sxor.u32 %s582_s17, %s581_s16  ;;  %p139_p8 = scmp.ge.s32.totalorder %s2807_s3, 15 }
  0x97   :  { %p588_p4 = scmp.lt.s32.totalorder %s583_s25, %s587_s15  ;;  %p142_p9 = scmp.ge.s32.totalorder %s2807_s3, 16 }
  0x98   :  { %s119_s4 = scalar_select %p118_p0, 1, 0 }
  0x99   :  { %s2821_s25 = smov (!%p588_p4, %s583_s25), %s587_s15  ;;  %p145_p10 = scmp.ge.s32.totalorder %s2807_s3, 31 }
  0x9a   :  { %s122_s14 = scalar_select %p121_p1, 1, 0 }
  0x9b   :  { %s125_s21 = scalar_select %p124_p2, 1, 0 }
  0x9c   :  { %s128_s27 = scalar_select %p127_p3, 1, 0 }
  0x9d   :  { %s131_s5 = scalar_select %p130_p5, 1, 0 }
  0x9e   :  { %s134_s8 = scalar_select %p133_p6, 1, 0 }
  0x9f   :  { %s137_s0 = scalar_select %p136_p7, 1, 0 }
  0xa0   :  { %s140_s23 = scalar_select %p139_p8, 1, 0 }
  0xa1   :  { %s143_s26 = scalar_select %p142_p9, 1, 0 }
  0xa2   :  { %p148_p11 = scmp.ge.s32.totalorder %s2807_s3, 32  ;;  %p151_p12 = scmp.ge.s32.totalorder %s2807_s3, 63 }
  0xa3   :  { %p154_p13 = scmp.ge.s32.totalorder %s2807_s3, 64  ;;  %s1130_s11 = sadd.s32 %s119_s4, %s2223_s1 }
  0xa4   :  { %s146_s22 = scalar_select %p145_p10, 1, 0 }
  0xa5   :  { %s149_s2 = scalar_select %p148_p11, 1, 0 }
  0xa6   :  { %s152_s24 = scalar_select %p151_p12, 1, 0 }
  0xa7   :  { %s155_s19 = scalar_select %p154_p13, 1, 0 }
  0xa8   :  { %p182_p0 = scmp.ge.s32.totalorder %s2809_s28, 0  ;;  %s1131_s20 = sadd.s32 %s1130_s11, %s122_s14 }
  0xa9   :  { %p185_p1 = scmp.ge.s32.totalorder %s2809_s28, 1  ;;  %s1132_s6 = sadd.s32 %s1131_s20, %s125_s21 }
  0xaa   :  { %p188_p2 = scmp.ge.s32.totalorder %s2809_s28, 2  ;;  %s1133_s12 = sadd.s32 %s1132_s6, %s128_s27 }
  0xab   :  { %p191_p3 = scmp.ge.s32.totalorder %s2809_s28, 3  ;;  %s1134_s3 = sadd.s32 %s1133_s12, %s131_s5 }
  0xac   :  { %p194_p4 = scmp.ge.s32.totalorder %s2809_s28, 4  ;;  %s1135_s18 = sadd.s32 %s1134_s3, %s134_s8 }
  0xad   :  { %p197_p5 = scmp.ge.s32.totalorder %s2809_s28, 5  ;;  %s1136_s16 = sadd.s32 %s1135_s18, %s137_s0 }
  0xae   :  { %p200_p6 = scmp.ge.s32.totalorder %s2809_s28, 7  ;;  %s1137_s1 = sadd.s32 %s1136_s16, %s140_s23 }
  0xaf   :  { %p203_p7 = scmp.ge.s32.totalorder %s2809_s28, 8  ;;  %s1138_s9 = sadd.s32 %s1137_s1, %s143_s26 }
  0xb0   :  { %p206_p8 = scmp.ge.s32.totalorder %s2809_s28, 15  ;;  %s1139_s17 = sadd.s32 %s1138_s9, %s146_s22 }
  0xb1   :  { %p209_p9 = scmp.ge.s32.totalorder %s2809_s28, 16  ;;  %s1140_s15 = sadd.s32 %s1139_s17, %s149_s2 }
  0xb2   :  { %p212_p10 = scmp.ge.s32.totalorder %s2809_s28, 31  ;;  %s1141_s4 = sadd.s32 %s1140_s15, %s152_s24 }
  0xb3   :  { %p215_p11 = scmp.ge.s32.totalorder %s2809_s28, 32  ;;  %s1142_s14 = sadd.s32 %s1141_s4, %s155_s19 }
  0xb4   :  { %p218_p12 = scmp.ge.s32.totalorder %s2809_s28, 63  ;;  %s2798_s5 = sld [smem:[#allocation27_spill]] }
  0xb5   :  { %p221_p13 = scmp.ge.s32.totalorder %s2809_s28, 64 }
  0xb6   :  { %s183_s0 = scalar_select %p182_p0, 1, 0 }
  0xb7   :  { %s186_s23 = scalar_select %p185_p1, 1, 0 }
  0xb8   :  { %s189_s26 = scalar_select %p188_p2, 1, 0 }
  0xb9   :  { %s192_s22 = scalar_select %p191_p3, 1, 0 }
  0xba   :  { %s1143_s8 = scalar_lea.vmem %s2798_s5, %s1142_s14  ;;  %s1147_s1 = sadd.s32 %s186_s23, %s183_s0 }
  0xbb   :  { %v1272_v30 = vld [vmem:[%s1143_s8 - $0x1] sm:$0x1]  ;;  %s195_s2 = scalar_select %p194_p4, 1, 0 }
  0xbc   :  { %165 = vst [vmem:[#allocation4] sm:$0x1] %v1272_v30  ;;  %s198_s24 = scalar_select %p197_p5, 1, 0 }
  0xbd   :  { %s201_s19 = scalar_select %p200_p6, 1, 0 }
  0xbe   :  { %s204_s11 = scalar_select %p203_p7, 1, 0 }
  0xbf   :  { %s207_s20 = scalar_select %p206_p8, 1, 0 }
  0xc0   :  { %s210_s6 = scalar_select %p209_p9, 1, 0 }
  0xc1   :  { %s213_s12 = scalar_select %p212_p10, 1, 0 }
  0xc2   :  { %s216_s3 = scalar_select %p215_p11, 1, 0 }
  0xc3   :  { %s219_s18 = scalar_select %p218_p12, 1, 0 }
  0xc4   :  { %s222_s16 = scalar_select %p221_p13, 1, 0 }
  0xc5   :  { %p249_p0 = scmp.ge.s32.totalorder %s2811_s29, 0  ;;  %s1148_s9 = sadd.s32 %s1147_s1, %s189_s26 }
  0xc6   :  { %p252_p1 = scmp.ge.s32.totalorder %s2811_s29, 1  ;;  %s1149_s17 = sadd.s32 %s1148_s9, %s192_s22 }
  0xc7   :  { %p255_p2 = scmp.ge.s32.totalorder %s2811_s29, 2  ;;  %s1150_s15 = sadd.s32 %s1149_s17, %s195_s2 }
  0xc8   :  { %p258_p3 = scmp.ge.s32.totalorder %s2811_s29, 3  ;;  %s1151_s4 = sadd.s32 %s1150_s15, %s198_s24 }
  0xc9   :  { %p261_p4 = scmp.ge.s32.totalorder %s2811_s29, 4  ;;  %s1152_s14 = sadd.s32 %s1151_s4, %s201_s19 }
  0xca   :  { %p264_p5 = scmp.ge.s32.totalorder %s2811_s29, 5  ;;  %s1153_s28 = sadd.s32 %s1152_s14, %s204_s11 }
  0xcb   :  { %p267_p6 = scmp.ge.s32.totalorder %s2811_s29, 7  ;;  %s1154_s21 = sadd.s32 %s1153_s28, %s207_s20 }
  0xcc   :  { %p270_p7 = scmp.ge.s32.totalorder %s2811_s29, 8  ;;  %s1155_s27 = sadd.s32 %s1154_s21, %s210_s6 }
  0xcd   :  { %p273_p8 = scmp.ge.s32.totalorder %s2811_s29, 15  ;;  %s1156_s8 = sadd.s32 %s1155_s27, %s213_s12 }
  0xce   :  { %p276_p9 = scmp.ge.s32.totalorder %s2811_s29, 16  ;;  %s1157_s0 = sadd.s32 %s1156_s8, %s216_s3 }
  0xcf   :  { %p279_p10 = scmp.ge.s32.totalorder %s2811_s29, 31  ;;  %s1158_s23 = sadd.s32 %s1157_s0, %s219_s18 }
  0xd0   :  { %p282_p11 = scmp.ge.s32.totalorder %s2811_s29, 32  ;;  %s1159_s26 = sadd.s32 %s1158_s23, %s222_s16 }
  0xd1   :  { %p285_p12 = scmp.ge.s32.totalorder %s2811_s29, 63  ;;  %s1160_s24 = scalar_lea.vmem %s2798_s5, %s1159_s26 }
  0xd2   :  { %p288_p13 = scmp.ge.s32.totalorder %s2811_s29, 64  ;;  %v1274_v31 = vld [vmem:[%s1160_s24 - $0x1] sm:$0x1] }
  0xd3   :  { %s250_s19 = scalar_select %p249_p0, 1, 0  ;;  %232 = vst [vmem:[#allocation4 + $0x1] sm:$0x1] %v1274_v31 }
  0xd4   :  { %s253_s11 = scalar_select %p252_p1, 1, 0 }
  0xd5   :  { %s256_s20 = scalar_select %p255_p2, 1, 0 }
  0xd6   :  { %s259_s6 = scalar_select %p258_p3, 1, 0 }
  0xd7   :  { %s262_s12 = scalar_select %p261_p4, 1, 0 }
  0xd8   :  { %s265_s3 = scalar_select %p264_p5, 1, 0 }
  0xd9   :  { %s268_s18 = scalar_select %p267_p6, 1, 0 }
  0xda   :  { %s271_s16 = scalar_select %p270_p7, 1, 0 }
  0xdb   :  { %s274_s1 = scalar_select %p273_p8, 1, 0 }
  0xdc   :  { %s277_s9 = scalar_select %p276_p9, 1, 0 }
  0xdd   :  { %s280_s17 = scalar_select %p279_p10, 1, 0 }
  0xde   :  { %s283_s15 = scalar_select %p282_p11, 1, 0 }
  0xdf   :  { %s286_s4 = scalar_select %p285_p12, 1, 0 }
  0xe0   :  { %s289_s14 = scalar_select %p288_p13, 1, 0 }
  0xe1   :  { %s1164_s28 = sadd.s32 %s253_s11, %s250_s19  ;;  %p316_p0 = scmp.ge.s32.totalorder %s2813_s30, 0 }
  0xe2   :  { %s1165_s21 = sadd.s32 %s1164_s28, %s256_s20  ;;  %p319_p1 = scmp.ge.s32.totalorder %s2813_s30, 1 }
  0xe3   :  { %s1166_s27 = sadd.s32 %s1165_s21, %s259_s6  ;;  %p322_p2 = scmp.ge.s32.totalorder %s2813_s30, 2 }
  0xe4   :  { %s1167_s8 = sadd.s32 %s1166_s27, %s262_s12  ;;  %p325_p3 = scmp.ge.s32.totalorder %s2813_s30, 3 }
  0xe5   :  { %s1168_s0 = sadd.s32 %s1167_s8, %s265_s3  ;;  %p328_p4 = scmp.ge.s32.totalorder %s2813_s30, 4 }
  0xe6   :  { %s1169_s23 = sadd.s32 %s1168_s0, %s268_s18  ;;  %p331_p5 = scmp.ge.s32.totalorder %s2813_s30, 5 }
  0xe7   :  { %s1170_s29 = sadd.s32 %s1169_s23, %s271_s16  ;;  %p334_p6 = scmp.ge.s32.totalorder %s2813_s30, 7 }
  0xe8   :  { %s1171_s26 = sadd.s32 %s1170_s29, %s274_s1  ;;  %p337_p7 = scmp.ge.s32.totalorder %s2813_s30, 8 }
  0xe9   :  { %s1172_s22 = sadd.s32 %s1171_s26, %s277_s9  ;;  %p340_p8 = scmp.ge.s32.totalorder %s2813_s30, 15 }
  0xea   :  { %s1173_s2 = sadd.s32 %s1172_s22, %s280_s17  ;;  %p343_p9 = scmp.ge.s32.totalorder %s2813_s30, 16 }
  0xeb   :  { %s1174_s24 = sadd.s32 %s1173_s2, %s283_s15  ;;  %p346_p10 = scmp.ge.s32.totalorder %s2813_s30, 31 }
  0xec   :  { %s1175_s19 = sadd.s32 %s1174_s24, %s286_s4  ;;  %p349_p11 = scmp.ge.s32.totalorder %s2813_s30, 32 }
  0xed   :  { %s1176_s11 = sadd.s32 %s1175_s19, %s289_s14  ;;  %p352_p12 = scmp.ge.s32.totalorder %s2813_s30, 63 }
  0xee   :  { %s1177_s12 = scalar_lea.vmem %s2798_s5, %s1176_s11  ;;  %p355_p13 = scmp.ge.s32.totalorder %s2813_s30, 64 }
  0xef   :  { %v1276_v32 = vld [vmem:[%s1177_s12 - $0x1] sm:$0x1]  ;;  %s317_s3 = scalar_select %p316_p0, 1, 0 }
  0xf0   :  { %299 = vst [vmem:[#allocation4 + $0x2] sm:$0x1] %v1276_v32  ;;  %s320_s18 = scalar_select %p319_p1, 1, 0 }
  0xf1   :  { %s323_s16 = scalar_select %p322_p2, 1, 0 }
  0xf2   :  { %s326_s1 = scalar_select %p325_p3, 1, 0 }
  0xf3   :  { %s329_s9 = scalar_select %p328_p4, 1, 0 }
  0xf4   :  { %s332_s17 = scalar_select %p331_p5, 1, 0 }
  0xf5   :  { %s335_s15 = scalar_select %p334_p6, 1, 0 }
  0xf6   :  { %s338_s4 = scalar_select %p337_p7, 1, 0 }
  0xf7   :  { %s341_s14 = scalar_select %p340_p8, 1, 0 }
  0xf8   :  { %s2376_s28 = scalar_select %p343_p9, 1, 0 }
  0xf9   :  { %s347_s21 = scalar_select %p346_p10, 1, 0 }
  0xfa   :  { %s2382_s27 = scalar_select %p349_p11, 1, 0 }
  0xfb   :  { %s2386_s8 = scalar_select %p352_p12, 1, 0 }
  0xfc   :  { %s2390_s0 = scalar_select %p355_p13, 1, 0 }
  0xfd   :  { %s1181_s23 = sadd.s32 %s320_s18, %s317_s3  ;;  %p383_p0 = scmp.ge.s32.totalorder %s2815_s7, 0 }
  0xfe   :  { %s1182_s29 = sadd.s32 %s1181_s23, %s323_s16  ;;  %p386_p1 = scmp.ge.s32.totalorder %s2815_s7, 1 }
  0xff   :  { %s1183_s26 = sadd.s32 %s1182_s29, %s326_s1  ;;  %p389_p2 = scmp.ge.s32.totalorder %s2815_s7, 2 }
 0x100   :  { %s1184_s22 = sadd.s32 %s1183_s26, %s329_s9  ;;  %p392_p3 = scmp.ge.s32.totalorder %s2815_s7, 3 }
 0x101   :  { %s1185_s2 = sadd.s32 %s1184_s22, %s332_s17  ;;  %p395_p4 = scmp.ge.s32.totalorder %s2815_s7, 4 }
 0x102   :  { %s1186_s24 = sadd.s32 %s1185_s2, %s335_s15  ;;  %p398_p5 = scmp.ge.s32.totalorder %s2815_s7, 5 }
 0x103   :  { %s1187_s30 = sadd.s32 %s1186_s24, %s338_s4  ;;  %p401_p6 = scmp.ge.s32.totalorder %s2815_s7, 7 }
 0x104   :  { %s1188_s19 = sadd.s32 %s1187_s30, %s341_s14  ;;  %p404_p7 = scmp.ge.s32.totalorder %s2815_s7, 8 }
 0x105   :  { %s2799_s6 = sld [smem:[#allocation29_spill]]  ;;  %s1189_s1 = sadd.s32 %s1188_s19, %s2376_s28 }
 0x106   :  { %p407_p8 = scmp.ge.s32.totalorder %s2815_s7, 15  ;;  %s1190_s15 = sadd.s32 %s1189_s1, %s347_s21 }
 0x107   :  { %p410_p9 = scmp.ge.s32.totalorder %s2815_s7, 16  ;;  %s1191_s4 = sadd.s32 %s1190_s15, %s2382_s27 }
 0x108   :  { %p413_p10 = scmp.ge.s32.totalorder %s2815_s7, 31  ;;  %s1192_s14 = sadd.s32 %s1191_s4, %s2386_s8 }
 0x109   :  { %p416_p11 = scmp.ge.s32.totalorder %s2815_s7, 32  ;;  %s1193_s21 = sadd.s32 %s1192_s14, %s2390_s0 }
 0x10a   :  { %p419_p12 = scmp.ge.s32.totalorder %s2815_s7, 63  ;;  %s1194_s8 = scalar_lea.vmem %s2798_s5, %s1193_s21 }
 0x10b   :  { %v914_v33 = vld [vmem:[%s2799_s6] sm:$0xff]  ;;  %v915_v34 = vld [vmem:[%s2799_s6 + $0x8] sm:$0xff]  ;;  %v916_v35 = vld [vmem:[%s2799_s6 + $0x10] sm:$0xff]  ;;  %p422_p13 = scmp.ge.s32.totalorder %s2815_s7, 64 }
 0x10c   :  { %v1636_v36 = vpack.c.bf16 %v915_v34, %v914_v33  ;;  %v917_v37 = vld [vmem:[%s2799_s6 + $0x18] sm:$0xff]  ;;  %v918_v39 = vld [vmem:[%s2799_s6 + $0x20] sm:$0xff]  ;;  %v919_v40 = vld [vmem:[%s2799_s6 + $0x28] sm:$0xff]  ;;  %s2434_s2 = scalar_select %p383_p0, 1, 0 }
 0x10d   :  { %v1639_v38 = vpack.c.bf16 %v917_v37, %v916_v35  ;;  %v1279_v41 = vld [vmem:[%s1194_s8 - $0x1] sm:$0x1]  ;;  %v1642_v42 = vpack.c.bf16 %v919_v40, %v918_v39  ;;  %s2438_s24 = scalar_select %p386_p1, 1, 0  ;;  %v920_v43 = vld [vmem:[%s2799_s6 + $0x30] sm:$0xff]  ;;  %v922_v46 = vld [vmem:[%s2799_s6 + $0x40] sm:$0xff] }
 0x10e   :  { %1637 = vmatpush3.bf16.msra.mxu1 %v1636_v36  ;;  %366 = vst [vmem:[#allocation4 + $0x3] sm:$0x1] %v1279_v41  ;;  %v921_v44 = vld [vmem:[%s2799_s6 + $0x38] sm:$0xff]  ;;  %s390_s20 = scalar_select %p389_p2, 1, 0  ;;  %v923_v47 = vld [vmem:[%s2799_s6 + $0x48] sm:$0xff] }
 0x10f   :  { %1638 = vmatprep.subr.bf16.mxu1 %v1777_v3  ;;  %s2451_s12 = scalar_select %p392_p3, 1, 0  ;;  %v1645_v45 = vpack.c.bf16 %v921_v44, %v920_v43  ;;  %v1648_v48 = vpack.c.bf16 %v923_v47, %v922_v46  ;;  %v924_v49 = vld [vmem:[%s2799_s6 + $0x50] sm:$0xff]  ;;  %v925_v50 = vld [vmem:[%s2799_s6 + $0x58] sm:$0xff] }
 0x110   :  { %s2455_s3 = scalar_select %p395_p4, 1, 0  ;;  %v1651_v51 = vpack.c.bf16 %v925_v50, %v924_v49 }
 0x111   :  { %s2459_s18 = scalar_select %p398_p5, 1, 0 }
 0x112   :  { %1640 = vmatpush3.bf16.msra.mxu1 %v1639_v38  ;;  %s402_s15 = scalar_select %p401_p6, 1, 0 }
 0x113   :  { %1641 = vmatprep.subr.bf16.mxu1 %v1777_v3  ;;  %s2472_s4 = scalar_select %p404_p7, 1, 0 }
 0x114   :  { %s2476_s14 = scalar_select %p407_p8, 1, 0 }
 0x115   :  { %s2480_s28 = scalar_select %p410_p9, 1, 0 }
 0x116   :  { %1643 = vmatpush3.bf16.msra.mxu1 %v1642_v42  ;;  %s414_s27 = scalar_select %p413_p10, 1, 0 }
 0x117   :  { %1644 = vmatprep.subr.bf16.mxu1 %v1777_v3  ;;  %s2493_s22 = scalar_select %p416_p11, 1, 0 }
 0x118   :  { %s2497_s8 = scalar_select %p419_p12, 1, 0 }
 0x119   :  { %s2501_s0 = scalar_select %p422_p13, 1, 0 }
 0x11a   :  { %1646 = vmatpush3.bf16.msra.mxu1 %v1645_v45  ;;  %s1200_s30 = sadd.s32 %s2438_s24, %s2434_s2  ;;  %p452_p0 = scmp.ge.s32.totalorder %s2817_s13, 0 }
 0x11b   :  { %1647 = vmatprep.subr.bf16.mxu1 %v1777_v3  ;;  %s1201_s19 = sadd.s32 %s1200_s30, %s390_s20  ;;  %p455_p1 = scmp.ge.s32.totalorder %s2817_s13, 1 }
 0x11c   :  { %s1202_s11 = sadd.s32 %s1201_s19, %s2451_s12  ;;  %p458_p2 = scmp.ge.s32.totalorder %s2817_s13, 2 }
 0x11d   :  { %s1203_s7 = sadd.s32 %s1202_s11, %s2455_s3  ;;  %p461_p3 = scmp.ge.s32.totalorder %s2817_s13, 3 }
 0x11e   :  { %1649 = vmatpush3.bf16.msra.mxu1 %v1648_v48  ;;  %s1204_s2 = sadd.s32 %s1203_s7, %s2459_s18  ;;  %p464_p4 = scmp.ge.s32.totalorder %s2817_s13, 4 }
 0x11f   :  { %1650 = vmatprep.subr.bf16.mxu1 %v1777_v3  ;;  %s1205_s24 = sadd.s32 %s1204_s2, %s402_s15  ;;  %p467_p5 = scmp.ge.s32.totalorder %s2817_s13, 5 }
 0x120   :  { %s1206_s20 = sadd.s32 %s1205_s24, %s2472_s4  ;;  %p470_p6 = scmp.ge.s32.totalorder %s2817_s13, 7 }
 0x121   :  { %s1207_s12 = sadd.s32 %s1206_s20, %s2476_s14  ;;  %p473_p7 = scmp.ge.s32.totalorder %s2817_s13, 8 }
 0x122   :  { %1652 = vmatpush3.bf16.msra.mxu1 %v1651_v51  ;;  %s1208_s3 = sadd.s32 %s1207_s12, %s2480_s28  ;;  %p476_p8 = scmp.ge.s32.totalorder %s2817_s13, 15 }
 0x123   :  { %1653 = vmatprep.subr.bf16.mxu1 %v1777_v3  ;;  %s1209_s16 = sadd.s32 %s1208_s3, %s414_s27  ;;  %p479_p9 = scmp.ge.s32.totalorder %s2817_s13, 16 }
 0x124   :  { %s1210_s18 = sadd.s32 %s1209_s16, %s2493_s22  ;;  %p482_p10 = scmp.ge.s32.totalorder %s2817_s13, 31 }
 0x125   :  { %s1211_s1 = sadd.s32 %s1210_s18, %s2497_s8  ;;  %p485_p11 = scmp.ge.s32.totalorder %s2817_s13, 32 }
 0x126   :  { %s1212_s9 = sadd.s32 %s1211_s1, %s2501_s0  ;;  %p488_p12 = scmp.ge.s32.totalorder %s2817_s13, 63 }
 0x127   :  { %s1213_s4 = scalar_lea.vmem %s2798_s5, %s1212_s9  ;;  %p491_p13 = scmp.ge.s32.totalorder %s2817_s13, 64 }
 0x128   :  { %v1284_v52 = vld [vmem:[%s1213_s4 - $0x1] sm:$0x1]  ;;  %s453_s14 = scalar_select %p452_p0, 1, 0 }
 0x129   :  { %435 = vst [vmem:[#allocation4 + $0x4] sm:$0x1] %v1284_v52  ;;  %s456_s28 = scalar_select %p455_p1, 1, 0 }
 0x12a   :  { %s459_s23 = scalar_select %p458_p2, 1, 0 }
 0x12b   :  { %s462_s29 = scalar_select %p461_p3, 1, 0 }
 0x12c   :  { %s465_s26 = scalar_select %p464_p4, 1, 0 }
 0x12d   :  { %s468_s21 = scalar_select %p467_p5, 1, 0 }
 0x12e   :  { %s471_s27 = scalar_select %p470_p6, 1, 0 }
 0x12f   :  { %s474_s22 = scalar_select %p473_p7, 1, 0 }
 0x130   :  { %s477_s8 = scalar_select %p476_p8, 1, 0 }
 0x131   :  { %s480_s0 = scalar_select %p479_p9, 1, 0 }
 0x132   :  { %s483_s30 = scalar_select %p482_p10, 1, 0  ;;  %v743_v53 = vpop.f32.mrb[0].mxu0 }
 0x133   :  { %s486_s19 = scalar_select %p485_p11, 1, 0  ;;  %v1422_v54 = vpop.f32.mrb[1].mxu0 }
 0x134   :  { %s489_s11 = scalar_select %p488_p12, 1, 0 }
 0x135   :  { %s2561_s7 = scalar_select %p491_p13, 1, 0 }
 0x136   :  { %s1219_s2 = sadd.s32 %s456_s28, %s453_s14  ;;  %p521_p0 = scmp.ge.s32.totalorder %s2819_s10, 0 }
 0x137   :  { %s1220_s24 = sadd.s32 %s1219_s2, %s459_s23  ;;  %p524_p1 = scmp.ge.s32.totalorder %s2819_s10, 1 }
 0x138   :  { %s1221_s20 = sadd.s32 %s1220_s24, %s462_s29  ;;  %p527_p2 = scmp.ge.s32.totalorder %s2819_s10, 2 }
 0x139   :  { %s1222_s12 = sadd.s32 %s1221_s20, %s465_s26  ;;  %p530_p3 = scmp.ge.s32.totalorder %s2819_s10, 3 }
 0x13a   :  { %s1223_s3 = sadd.s32 %s1222_s12, %s468_s21  ;;  %p533_p4 = scmp.ge.s32.totalorder %s2819_s10, 4 }
 0x13b   :  { %s1224_s13 = sadd.s32 %s1223_s3, %s471_s27  ;;  %p536_p5 = scmp.ge.s32.totalorder %s2819_s10, 5 }
 0x13c   :  { %s1225_s16 = sadd.s32 %s1224_s13, %s474_s22  ;;  %p539_p6 = scmp.ge.s32.totalorder %s2819_s10, 7 }
 0x13d   :  { %s1226_s18 = sadd.s32 %s1225_s16, %s477_s8  ;;  %p542_p7 = scmp.ge.s32.totalorder %s2819_s10, 8 }
 0x13e   :  { %s1227_s1 = sadd.s32 %s1226_s18, %s480_s0  ;;  %p545_p8 = scmp.ge.s32.totalorder %s2819_s10, 15 }
 0x13f   :  { %s1228_s9 = sadd.s32 %s1227_s1, %s483_s30  ;;  %p548_p9 = scmp.ge.s32.totalorder %s2819_s10, 16 }
 0x140   :  { %s1229_s17 = sadd.s32 %s1228_s9, %s486_s19  ;;  %p551_p10 = scmp.ge.s32.totalorder %s2819_s10, 31 }
 0x141   :  { %s1230_s15 = sadd.s32 %s1229_s17, %s489_s11  ;;  %p554_p11 = scmp.ge.s32.totalorder %s2819_s10, 32 }
 0x142   :  { %s1231_s4 = sadd.s32 %s1230_s15, %s2561_s7  ;;  %p557_p12 = scmp.ge.s32.totalorder %s2819_s10, 63 }
 0x143   :  { %s1232_s23 = scalar_lea.vmem %s2798_s5, %s1231_s4  ;;  %p560_p13 = scmp.ge.s32.totalorder %s2819_s10, 64 }
 0x144   :  { %v1289_v55 = vld [vmem:[%s1232_s23 - $0x1] sm:$0x1]  ;;  %s522_s29 = scalar_select %p521_p0, 1, 0 }
 0x145   :  { %504 = vst [vmem:[#allocation4 + $0x5] sm:$0x1] %v1289_v55  ;;  %s525_s26 = scalar_select %p524_p1, 1, 0 }
 0x146   :  { %s528_s21 = scalar_select %p527_p2, 1, 0 }
 0x147   :  { %s531_s27 = scalar_select %p530_p3, 1, 0 }
 0x148   :  { %s534_s22 = scalar_select %p533_p4, 1, 0 }
 0x149   :  { %s537_s8 = scalar_select %p536_p5, 1, 0 }
 0x14a   :  { %s540_s0 = scalar_select %p539_p6, 1, 0 }
 0x14b   :  { %s543_s30 = scalar_select %p542_p7, 1, 0 }
 0x14c   :  { %s546_s19 = scalar_select %p545_p8, 1, 0 }
 0x14d   :  { %s549_s11 = scalar_select %p548_p9, 1, 0 }
 0x14e   :  { %s552_s7 = scalar_select %p551_p10, 1, 0 }
 0x14f   :  { %s555_s2 = scalar_select %p554_p11, 1, 0 }
 0x150   :  { %s558_s24 = scalar_select %p557_p12, 1, 0 }
 0x151   :  { %s561_s20 = scalar_select %p560_p13, 1, 0 }
 0x152   :  { %s1238_s12 = sadd.s32 %s525_s26, %s522_s29  ;;  %p590_p0 = scmp.ge.s32.totalorder %s2821_s25, 0 }
 0x153   :  { %s1239_s3 = sadd.s32 %s1238_s12, %s528_s21  ;;  %p593_p1 = scmp.ge.s32.totalorder %s2821_s25, 1 }
 0x154   :  { %s1240_s13 = sadd.s32 %s1239_s3, %s531_s27  ;;  %p596_p2 = scmp.ge.s32.totalorder %s2821_s25, 2 }
 0x155   :  { %s1241_s16 = sadd.s32 %s1240_s13, %s534_s22  ;;  %p599_p3 = scmp.ge.s32.totalorder %s2821_s25, 3 }
 0x156   :  { %s1242_s18 = sadd.s32 %s1241_s16, %s537_s8  ;;  %p602_p4 = scmp.ge.s32.totalorder %s2821_s25, 4 }
 0x157   :  { %s1243_s1 = sadd.s32 %s1242_s18, %s540_s0  ;;  %p605_p5 = scmp.ge.s32.totalorder %s2821_s25, 5 }
 0x158   :  { %s1244_s10 = sadd.s32 %s1243_s1, %s543_s30  ;;  %p608_p6 = scmp.ge.s32.totalorder %s2821_s25, 7 }
 0x159   :  { %s1245_s9 = sadd.s32 %s1244_s10, %s546_s19  ;;  %p611_p7 = scmp.ge.s32.totalorder %s2821_s25, 8 }
 0x15a   :  { %s1246_s17 = sadd.s32 %s1245_s9, %s549_s11  ;;  %p614_p8 = scmp.ge.s32.totalorder %s2821_s25, 15 }
 0x15b   :  { %s1247_s15 = sadd.s32 %s1246_s17, %s552_s7  ;;  %p617_p9 = scmp.ge.s32.totalorder %s2821_s25, 16 }
 0x15c   :  { %s1248_s4 = sadd.s32 %s1247_s15, %s555_s2  ;;  %p620_p10 = scmp.ge.s32.totalorder %s2821_s25, 31 }
 0x15d   :  { %s1249_s14 = sadd.s32 %s1248_s4, %s558_s24  ;;  %p623_p11 = scmp.ge.s32.totalorder %s2821_s25, 32 }
 0x15e   :  { %s1250_s28 = sadd.s32 %s1249_s14, %s561_s20  ;;  %p626_p12 = scmp.ge.s32.totalorder %s2821_s25, 63 }
 0x15f   :  { %s1251_s26 = scalar_lea.vmem %s2798_s5, %s1250_s28  ;;  %p629_p13 = scmp.ge.s32.totalorder %s2821_s25, 64 }
 0x160   :  { %v1294_v56 = vld [vmem:[%s1251_s26 - $0x1] sm:$0x1]  ;;  %s591_s21 = scalar_select %p590_p0, 1, 0 }
 0x161   :  { %573 = vst [vmem:[#allocation4 + $0x6] sm:$0x1] %v1294_v56  ;;  %s594_s27 = scalar_select %p593_p1, 1, 0 }
 0x162   :  { %s597_s22 = scalar_select %p596_p2, 1, 0 }
 0x163   :  { %s600_s8 = scalar_select %p599_p3, 1, 0 }
 0x164   :  { %s603_s0 = scalar_select %p602_p4, 1, 0 }
 0x165   :  { %s606_s30 = scalar_select %p605_p5, 1, 0 }
 0x166   :  { %s609_s19 = scalar_select %p608_p6, 1, 0  ;;  %v813_v57 = vpop.f32.mrb[0].mxu1 }
 0x167   :  { %s612_s11 = scalar_select %p611_p7, 1, 0  ;;  %v2646_v58 = vadd.f32 %v813_v57, %v743_v53  ;;  %v1457_v59 = vpop.f32.mrb[1].mxu1 }
 0x168   :  { %s615_s7 = scalar_select %p614_p8, 1, 0 }
 0x169   :  { %s618_s2 = scalar_select %p617_p9, 1, 0 }
 0x16a   :  { %s621_s24 = scalar_select %p620_p10, 1, 0 }
 0x16b   :  { %s624_s20 = scalar_select %p623_p11, 1, 0 }
 0x16c   :  { %s627_s12 = scalar_select %p626_p12, 1, 0 }
 0x16d   :  { %s630_s3 = scalar_select %p629_p13, 1, 0 }
 0x16e   :  { %s1257_s13 = sadd.s32 %s594_s27, %s591_s21 }
 0x16f   :  { %s1258_s16 = sadd.s32 %s1257_s13, %s597_s22  ;;  %s2800_s22 = sld [smem:[#allocation29_spill]] }
 0x170   :  { %s1259_s18 = sadd.s32 %s1258_s16, %s600_s8  ;;  %s2803_s16 = sld [smem:[#allocation30_spill]] }
 0x171   :  { %s1260_s1 = sadd.s32 %s1259_s18, %s603_s0 }
 0x172   :  { %s1261_s10 = sadd.s32 %s1260_s1, %s606_s30 }
 0x173   :  { %s1262_s9 = sadd.s32 %s1261_s10, %s609_s19  ;;  %s2804_s10 = sld [smem:[#allocation32_spill]] }
 0x174   :  { %s1263_s17 = sadd.s32 %s1262_s9, %s612_s11  ;;  %s2802_s11 = sld [smem:[#allocation28_spill]] }
 0x175   :  { %s1264_s15 = sadd.s32 %s1263_s17, %s615_s7  ;;  %v926_v62 = vld [vmem:[%s2800_s22 + $0x60] sm:$0xff]  ;;  %v927_v63 = vld [vmem:[%s2800_s22 + $0x68] sm:$0xff]  ;;  %v928_v1 = vld [vmem:[%s2800_s22 + $0x70] sm:$0xff] }
 0x176   :  { %s1265_s4 = sadd.s32 %s1264_s15, %s618_s2  ;;  %v1654_v0 = vpack.c.bf16 %v927_v63, %v926_v62  ;;  %s2801_s2 = sld [smem:[#allocation31_spill]]  ;;  %v1301_v34 = vld [vmem:[%s2803_s16] ss:$0 sm:$0xff] }
 0x177   :  { %s1266_s14 = sadd.s32 %s1265_s4, %s621_s24 }
 0x178   :  { %s1267_s28 = sadd.s32 %s1266_s14, %s624_s20  ;;  %1655 = vmatpush3.bf16.msra.mxu1 %v1654_v0 }
 0x179   :  { %s1268_s23 = sadd.s32 %s1267_s28, %s627_s12  ;;  %1656 = vmatprep.subr.bf16.mxu1 %v1777_v3  ;;  %v1302_v39 = vld [vmem:[%s2804_s10] ss:$0 sm:$0xff] }
 0x17a   :  { %s1269_s29 = sadd.s32 %s1268_s23, %s630_s3  ;;  %v1300_v27 = vld [vmem:[%s2802_s11] ss:$0 sm:$0xff] }
 0x17b   :  { %s1270_s25 = scalar_lea.vmem %s2798_s5, %s1269_s29 }
 0x17c   :  { %v1299_v60 = vld [vmem:[%s1270_s25 - $0x1] sm:$0x1]  ;;  %v1008_v4 = vld [vmem:[%s2801_s2] sm:$0xff]  ;;  %v1009_v5 = vld [vmem:[%s2801_s2 + $0x8] sm:$0xff] }
 0x17d   :  { %642 = vst [vmem:[#allocation4 + $0x7] sm:$0x1] %v1299_v60  ;;  %v1010_v6 = vld [vmem:[%s2801_s2 + $0x10] sm:$0xff]  ;;  %v1660_v7 = vpack.c.bf16 %v1009_v5, %v1008_v4  ;;  %v1011_v9 = vld [vmem:[%s2801_s2 + $0x18] sm:$0xff]  ;;  %v1012_v11 = vld [vmem:[%s2801_s2 + $0x20] sm:$0xff] }
 0x17e   :  { %v1663_v10 = vpack.c.bf16 %v1011_v9, %v1010_v6  ;;  %v1013_v12 = vld [vmem:[%s2801_s2 + $0x28] sm:$0xff]  ;;  %v1014_v14 = vld [vmem:[%s2801_s2 + $0x30] sm:$0xff]  ;;  %v1015_v15 = vld [vmem:[%s2801_s2 + $0x38] sm:$0xff] }
 0x17f   :  { %v1666_v13 = vpack.c.bf16 %v1013_v12, %v1012_v11  ;;  %v1669_v16 = vpack.c.bf16 %v1015_v15, %v1014_v14  ;;  %v1016_v17 = vld [vmem:[%s2801_s2 + $0x40] sm:$0xff]  ;;  %v1017_v18 = vld [vmem:[%s2801_s2 + $0x48] sm:$0xff]  ;;  %v1018_v20 = vld [vmem:[%s2801_s2 + $0x50] sm:$0xff] }
 0x180   :  { %v1672_v19 = vpack.c.bf16 %v1017_v18, %v1016_v17  ;;  %v1019_v21 = vld [vmem:[%s2801_s2 + $0x58] sm:$0xff]  ;;  %v1020_v23 = vld [vmem:[%s2801_s2 + $0x60] sm:$0xff]  ;;  %v1021_v24 = vld [vmem:[%s2801_s2 + $0x68] sm:$0xff] }
 0x181   :  { %v1675_v22 = vpack.c.bf16 %v1019_v21, %v1018_v20  ;;  %v1678_v25 = vpack.c.bf16 %v1021_v24, %v1020_v23  ;;  %v1022_v32 = vld [vmem:[%s2801_s2 + $0x70] sm:$0xff]  ;;  %v1023_v33 = vld [vmem:[%s2801_s2 + $0x78] sm:$0xff]  ;;  %s1780_s2 = smov [#allocation13]  }
 0x182   :  { %s1117_s9 = sshll.u32 %s1780_s2, 4  ;;  %s1118_s9 = int_to_ptr.vmem [resolvable:$true] %s1117_s9 }
 0x183   :  { %s1743_s17 = scalar_lea.vmem %s1118_s9, 128  ;;  %p1748_p1 = scmp.lt.s32.totalorder %s1118_s9, %s1118_s9 }
 0x184   :  { %v817_v61 = vld [vmem:[#allocation4] sm:$0xff]  ;;  %p1744_p0 = scmp.ne.s32.totalorder %s1118_s9, %s1743_s17  ;;  %p1749_p2 = scmp.lt.s32.totalorder %s1743_s17, %s1743_s17 }
 0x185   :  { %1491 = vmatmul.mubr.f32.vlgmr.msra.gmra.mrb[2].mxu0 %v817_v61 }
 0x186   :  { %1560 = vmatprep.mubr.msk.f32.mxu0 %vm1779_vm0, %v1778_v8  ;;  %v929_v8 = vld [vmem:[%s2800_s22 + $0x78] sm:$0xff]  ;;  %1661 = vmatpush3.bf16.msra.mxu0 %v1660_v7  ;;  %p1750_p3 = por %p1749_p2, %p1748_p1 }
 0x187   :  { %v1657_v2 = vpack.c.bf16 %v929_v8, %v928_v1  ;;  %1662 = vmatprep.subr.bf16.mxu0 %v1777_v3 }
 0x188   :  { %p1751_p4 = pnand %p1750_p3, %p1744_p0 }
 0x189   :  { %1658 = vmatpush3.bf16.msra.mxu1 %v1657_v2 }
 0x18a   :  { %1664 = vmatpush3.bf16.msra.mxu0 %v1663_v10 }
 0x18b   :  { %1665 = vmatprep.subr.bf16.mxu0 %v1777_v3 }
 0x18e   :  { %1667 = vmatpush3.bf16.msra.mxu0 %v1666_v13 }
 0x18f   :  { %1668 = vmatprep.subr.bf16.mxu0 %v1777_v3 }
 0x192   :  { %1670 = vmatpush3.bf16.msra.mxu0 %v1669_v16 }
 0x193   :  { %1671 = vmatprep.subr.bf16.mxu0 %v1777_v3 }
 0x196   :  { %1673 = vmatpush3.bf16.msra.mxu0 %v1672_v19 }
 0x197   :  { %1674 = vmatprep.subr.bf16.mxu0 %v1777_v3 }
 0x19a   :  { %1676 = vmatpush3.bf16.msra.mxu0 %v1675_v22 }
 0x19b   :  { %1677 = vmatprep.subr.bf16.mxu0 %v1777_v3 }
 0x19e   :  { %1679 = vmatpush3.bf16.msra.mxu0 %v1678_v25 }
 0x19f   :  { %1680 = vmatprep.subr.bf16.mxu0 %v1777_v3  ;;  %v1681_v3 = vpack.c.bf16 %v1023_v33, %v1022_v32 }
 0x1a2   :  { %1682 = vmatpush3.bf16.msra.mxu0 %v1681_v3 }
 0x258   :  { %v900_v26 = vpop.f32.mrb[2].mxu0 }
 0x259   :  { %v904_v28 = vadd.f32 %v900_v26, %v2646_v58  ;;  %v1492_v29 = vpop.f32.mrb[3].mxu0 }
 0x25b   :  { %v912_v30 = vadd.f32 %v1300_v27, %v904_v28 }
 0x25d   :  { %v913_v31 = vmax.f32 %v912_v30, 0.0 }
 0x25f   :  { %1526 = vmatmul.mubr.f32.vlgmr.msra.gmra.mrb[2].mxu1 %v913_v31 }
 0x332   :  { %v1003_v35 = vpop.f32.mrb[2].mxu1 }
 0x333   :  { %v1004_v36 = vadd.f32 %v1301_v34, %v1003_v35  ;;  %v1527_v37 = vpop.f32.mrb[3].mxu1 }
 0x335   :  { %v1007_v38 = vmax.f32 %v1004_v36, 0.0 }
 0x337   :  { %1561 = vmatmul.mubr.f32.vlgmr.msra.gmra.mrb[4].mxu0 %v1007_v38 }
 0x40a   :  { %v1097_v40 = vpop.f32.mrb[4].mxu0 }
 0x40b   :  { %v1098_v41 = vadd.f32 %v1302_v39, %v1097_v40  ;;  %v1562_v42 = vpop.f32.mrb[5].mxu0 }
 0x40d   :  { %1101 = vmax.xlane.f32.xlu0 %v1098_v41 }
 0x49a   :  { %v1102_v43 = vpop.xlane.xlu0 %1101 }
 0x49b   :  { %v1103_v44 = vsub.f32 %v1098_v41, %v1102_v43 }
 0x49d   :  { %v1104_v45 = vmul.f32 1.442695, %v1103_v44 }
 0x49f   :  { %1691 = vpow2.f32 %v1104_v45 }
 0x4a9   :  { %v1692_v46 = vpop.eup %1691 }
 0x4aa   :  { %1106 = vadd.xlane.f32.xlu0 %v1692_v46 }
 0x537   :  { %v1107_v47 = vpop.xlane.xlu0 %1106 }
 0x538   :  { %1693 = vrcp.f32 %v1107_v47 }
 0x542   :  { %v1694_v48 = vpop.eup %1693 }
 0x543   :  { %v1109_v49 = vmul.f32 %v1694_v48, %v1692_v46 }
 0x545   :  { %1110 = vst [vmem:[#allocation13] sm:$0xff] %v1109_v49 }
 0x546   :  { %1754 = shalt.err (!%p1751_p4)
}
 0x547   :  { %s2805_s14 = sld [smem:[#allocation33_spill]] }
 0x54d   :  { %s1755_s28 = scalar_lea.hbm %s2805_s14, 128 }
 0x54e   :  { %p1756_p5 = scmp.ne.s32.totalorder %s2805_s14, %s1755_s28  ;;  %p1759_p6 = scmp.lt.u32.totalorder %s1755_s28, %s2805_s14 }
 0x550   :  { %p1761_p7 = pnand %p1759_p6, %p1756_p5 }
 0x552   :  { %1764 = shalt.err (!%p1761_p7)
}
 0x553   :  { %1120 = dma.vmem_to_hbm [thread:$0]  %s1118_s9, 128, %s2805_s14, [#allocation6]  }
 0x554   :  { %1771 = dma.done.wait [#allocation6], 128  }
 0x555   :  { %1772 = vsyncadd [#allocation6], 4294967168 }
 0x556   :  { %1124 = vsyncpa [#allocation6], 1 }
 0x557   :  { %1125 = vsyncpa [#allocation7], 1 }
 0x558   :  { %1126 = vsyncpa [#allocation9], 1 }
 0x559   :  { %1127 = vsyncpa [#allocation12], 1 }

</bundles_post_ra>
